<compile_context>
chip_gen: v7x
topology: tpu7x:2x2x1
jax: 0.10.0
libtpu: 0.0.40
codegen_flags: <defaults>
</compile_context>

<pallas_src>
import jax
import jax.numpy as jnp
from jax.experimental import pallas as pl
from jax.experimental.pallas import tpu as pltpu

N_CLASSES = 10
OUT_PAD = 128          # pad the 10-wide logits to a lane-dense 128 columns
HIDDEN1 = 512
HIDDEN2 = 128


# ----------------------------------------------------------------------------- kernel
def camera_head_kernel(x_ref, w1_ref, b1_ref, w2_ref, b2_ref, w3_ref, b3_ref, o_ref):
    # x_ref: (TN, HW, C) backbone feature maps, lane-dense in C.
    tn, hw, c = x_ref.shape

    # AdaptiveAvgPool2d(1) + flatten == mean over HW.  The 1/HW scale is folded
    # into w1 (prepare_params), so a plain sum suffices.  Accumulate in f32
    # chunk-by-chunk over HW so no full-tile f32 upcast of x is materialized.
    chunk = 8 * max(1, 4 // jnp.dtype(x_ref.dtype).itemsize)   # sublane-tile-sized chunks
    feats = jnp.zeros((tn, c), jnp.float32)
    start = 0
    while start < hw:                       # static unroll: hw is a block-shape constant
        stop = min(start + chunk, hw)
        feats = feats + jnp.sum(x_ref[:, start:stop, :], axis=1, dtype=jnp.float32)
        start = stop

    # model.fc = nn.Dropout(0.0) -> identity; head Dropout(0.3) -> identity (eval).
    wdt = w1_ref.dtype  # bf16 (MXU-native) or f32; accumulation is f32 either way.

    # Linear(C, 512) + ReLU
    h1 = jnp.dot(feats.astype(wdt), w1_ref[...],
                 preferred_element_type=jnp.float32) + b1_ref[...]
    h1 = jnp.maximum(h1, 0.0)

    # Linear(512, 128) + ReLU
    h2 = jnp.dot(h1.astype(wdt), w2_ref[...],
                 preferred_element_type=jnp.float32) + b2_ref[...]
    h2 = jnp.maximum(h2, 0.0)

    # Linear(128, N_CLASSES), zero-padded to OUT_PAD lanes for unmasked stores.
    out = jnp.dot(h2.astype(wdt), w3_ref[...],
                  preferred_element_type=jnp.float32) + b3_ref[...]
    o_ref[...] = out.astype(o_ref.dtype)


# ----------------------------------------------------------------------------- sizing
def _round_up(v, m):
    return -(-v // m) * m


def _sublane_tile(dtype):
    return {4: 8, 2: 16, 1: 32}.get(jnp.dtype(dtype).itemsize, 8)


def _vmem_budgets():
    """(tile-selection budget, compiler vmem limit) in bytes, per TPU generation."""
    try:
        cap = int(pltpu.get_tpu_info().vmem_capacity_bytes)   # 64 MiB v7x, 128 MiB v5e/v6e
    except Exception:
        cap = 64 * 1024 * 1024                                # conservative (v7x-sized)
    tile_budget = int(cap * 0.70)      # headroom for compiler scratch / semaphores
    vmem_limit = int(cap * 0.85)
    return tile_budget, vmem_limit


def _pick_batch_tile(n, c, hw, x_dtype, w_dtype, vmem_budget_bytes):
    """Largest multiple-of-8 batch tile whose pipelined x blocks + resident weights
    + in-kernel intermediates fit the budget.  Models Mosaic's padding of the last
    two block dims to (sublane_tile, 128)."""
    x_it = jnp.dtype(x_dtype).itemsize
    w_it = jnp.dtype(w_dtype).itemsize
    c_pad = _round_up(c, 128)
    hw_pad = _round_up(hw, _sublane_tile(x_dtype))

    # Weights/biases are VMEM-resident across the grid; model them double-buffered
    # so the choice stays safe even if the single-buffer request is not honored.
    weight_bytes = 2 * (w_it * (c_pad * HIDDEN1 + HIDDEN1 * HIDDEN2 + HIDDEN2 * OUT_PAD)
                        + 4 * 8 * (HIDDEN1 + HIDDEN2 + OUT_PAD))   # (1,H) f32 biases pad to 8 rows

    # Per batch row: double-buffered lane-padded x block, chunked f32 pooling
    # intermediate, pooled feats (+ cast copy at the dot input), hidden
    # activations, and the double-buffered 128-lane output row.
    row_bytes = (2 * hw_pad * c_pad * x_it
                 + _sublane_tile(x_dtype) * c_pad * 4
                 + c_pad * (4 + w_it)
                 + (HIDDEN1 + HIDDEN2) * (4 + w_it)
                 + 3 * OUT_PAD * 4)

    avail = vmem_budget_bytes - weight_bytes
    tn = (avail // row_bytes) // 8 * 8 if avail > row_bytes * 8 else 8
    return int(max(8, min(tn, 512, _round_up(n, 8))))


# ----------------------------------------------------------------------------- wrapper
def _build_head_call(n_pad, tn, hw, c, vmem_limit_bytes, *, single_buffer_weights):
    const = lambda i: (0, 0)   # weights/biases stay VMEM-resident across the grid
    if single_buffer_weights:
        # Constant index_map -> the second pipeline buffer is pure VMEM waste.
        wspec = lambda shape: pl.BlockSpec(shape, const,
                                           pipeline_mode=pl.Buffered(buffer_count=1))
    else:
        wspec = lambda shape: pl.BlockSpec(shape, const)
    return pl.pallas_call(
        camera_head_kernel,
        out_shape=jax.ShapeDtypeStruct((n_pad, OUT_PAD), jnp.float32),
        grid=(n_pad // tn,),
        in_specs=[
            pl.BlockSpec((tn, hw, c), lambda i: (i, 0, 0)),   # batch-tiled, lane-dense in C
            wspec((c, HIDDEN1)),
            wspec((1, HIDDEN1)),
            wspec((HIDDEN1, HIDDEN2)),
            wspec((1, HIDDEN2)),
            wspec((HIDDEN2, OUT_PAD)),
            wspec((1, OUT_PAD)),
        ],
        out_specs=pl.BlockSpec((tn, OUT_PAD), lambda i: (i, 0)),
        compiler_params=pltpu.CompilerParams(
            dimension_semantics=("parallel",),    # shard batch tiles across TensorCores
            vmem_limit_bytes=int(vmem_limit_bytes),
        ),
    )


def prepare_params(params, hw, compute_dtype=jnp.bfloat16):
    """One-time weight prep (hoisted out of the forward): fold the 1/HW pooling
    scale into w1, zero-pad the 10-wide head to OUT_PAD lanes, cast weights to the
    MXU compute dtype.  Biases stay f32 (added after f32 accumulation)."""
    w1, b1, w2, b2, w3, b3 = params
    w1s = (w1.astype(jnp.float32) / float(hw)).astype(compute_dtype)
    w2c = w2.astype(compute_dtype)
    w3p = jnp.zeros((HIDDEN2, OUT_PAD), compute_dtype).at[:, :N_CLASSES].set(
        w3.astype(compute_dtype))
    b1c = b1.astype(jnp.float32).reshape(1, HIDDEN1)
    b2c = b2.astype(jnp.float32).reshape(1, HIDDEN2)
    b3p = jnp.zeros((1, OUT_PAD), jnp.float32).at[:, :N_CLASSES].set(
        b3.astype(jnp.float32).reshape(1, N_CLASSES))
    return (w1s, b1c, w2c, b2c, w3p, b3p)


def camera_architecture_forward(x_nhwc, prepped_params, *, batch_tile=None):
    """x_nhwc: (N, H, W, C) backbone feature maps (channel-last, the layout TPU conv
    backbones emit natively -> no transpose pass; C lands on the 128-lane axis).
    prepped_params: output of prepare_params().  Returns (N, N_CLASSES) f32 logits."""
    n, h, w, c = x_nhwc.shape
    hw = h * w
    x = x_nhwc.reshape(n, hw, c)            # pure merge of the leading spatial dims
    w1s, b1, w2, b2, w3p, b3p = prepped_params

    tile_budget, vmem_limit = _vmem_budgets()
    tn = batch_tile or _pick_batch_tile(n, c, hw, x.dtype, w1s.dtype, tile_budget)

    # Keep >=2 grid steps (>=4 for bigger batches) when the batch allows it, so the
    # "parallel" axis can split across v7x's 2 TensorCores and the pipeline overlaps.
    n_pad8 = _round_up(n, 8)
    if n_pad8 >= 32:
        tn = min(tn, max(8, _round_up(n_pad8 // 4, 8)))
    elif n_pad8 >= 16:
        tn = min(tn, max(8, _round_up(n_pad8 // 2, 8)))

    n_pad = _round_up(n, tn)
    if n_pad != n:
        x = jnp.pad(x, ((0, n_pad - n), (0, 0), (0, 0)))

    args = (x, w1s, b1, w2, b2, w3p, b3p)
    try:
        out = _build_head_call(n_pad, tn, hw, c, vmem_limit,
                               single_buffer_weights=True)(*args)
    except Exception:
        # pl.Buffered(1) not honored by this jax/Mosaic version -> default 2-deep buffers.
        out = _build_head_call(n_pad, tn, hw, c, vmem_limit,
                               single_buffer_weights=False)(*args)
    return out[:n, :N_CLASSES]


# ----------------------------------------------------------------------------- params / reference
def init_params(key, n_features):
    # PyTorch-Linear-style uniform(-1/sqrt(fan_in), 1/sqrt(fan_in)) init.
    def linear(k, fan_in, fan_out):
        kw, kb = jax.random.split(k)
        bound = 1.0 / float(jnp.sqrt(fan_in))
        wgt = jax.random.uniform(kw, (fan_in, fan_out), jnp.float32, -bound, bound)
        bias = jax.random.uniform(kb, (1, fan_out), jnp.float32, -bound, bound)
        return wgt, bias

    k1, k2, k3 = jax.random.split(key, 3)
    w1, b1 = linear(k1, n_features, HIDDEN1)
    w2, b2 = linear(k2, HIDDEN1, HIDDEN2)
    w3, b3 = linear(k3, HIDDEN2, N_CLASSES)
    return (w1, b1, w2, b2, w3, b3)


def reference_forward(x_nhwc, params):
    # Pure-JAX f32 reference (AdaptiveAvgPool2d(1) -> flatten -> head).
    w1, b1, w2, b2, w3, b3 = params
    feats = jnp.mean(x_nhwc.astype(jnp.float32), axis=(1, 2))   # (N, C)
    hid = jnp.maximum(feats @ w1 + b1, 0.0)
    hid = jnp.maximum(hid @ w2 + b2, 0.0)
    return hid @ w3 + b3


if __name__ == "__main__":
    # TODO(synk): the backbone conv body (`arch()`, e.g. a ResNet) is an external
    # constructor argument and is not defined in this module; the kernel consumes
    # its output feature maps (N, H, W, C) directly.
    key = jax.random.PRNGKey(0)
    k_x, k_p = jax.random.split(key)

    N, H, W, C_FEAT = 16, 8, 8, 256               # small backbone feature maps
    x = jax.random.normal(k_x, (N, H, W, C_FEAT), jnp.float32)
    params = init_params(k_p, C_FEAT)
    ref = reference_forward(x, params)

    # f32 features + f32 head weights.
    p_f32 = prepare_params(params, H * W, compute_dtype=jnp.float32)
    logits = camera_architecture_forward(x, p_f32)
    jax.block_until_ready(logits)
    assert logits.shape == (N, N_CLASSES)
    assert jnp.allclose(logits, ref, atol=1e-3, rtol=1e-3), "f32 mismatch vs reference"

    # bf16 features + bf16 head weights (MXU-native; halves HBM / weight VMEM traffic).
    p_bf16 = prepare_params(params, H * W, compute_dtype=jnp.bfloat16)
    logits_bf = camera_architecture_forward(x.astype(jnp.bfloat16), p_bf16)
    jax.block_until_ready(logits_bf)
    assert logits_bf.shape == (N, N_CLASSES)
    assert jnp.allclose(logits_bf, ref, atol=5e-2, rtol=5e-2), "bf16 mismatch vs reference"

    print("KERNEL_OK")
</pallas_src>

<mosaic_0001>
module attributes {stable_mosaic.version = 11 : i64} {
  func.func @camera_head_kernel(%arg0: i32, %arg1: memref<8x64x256xf32, #tpu.memory_space<vmem>>, %arg2: memref<256x512xf32, #tpu.memory_space<vmem>>, %arg3: memref<1x512xf32, #tpu.memory_space<vmem>>, %arg4: memref<512x128xf32, #tpu.memory_space<vmem>>, %arg5: memref<1x128xf32, #tpu.memory_space<vmem>>, %arg6: memref<128x128xf32, #tpu.memory_space<vmem>>, %arg7: memref<1x128xf32, #tpu.memory_space<vmem>>, %arg8: memref<8x128xf32, #tpu.memory_space<vmem>>) attributes {dimension_semantics = [#tpu.dimension_semantics<parallel>], iteration_bounds = array<i64: 2>, scalar_prefetch = 0 : i64, scratch_operands = 0 : i64, tpu.core_type = #tpu.core_type<tc>, window_params = [{transform_indices = @transform_0, window_bounds = array<i64: 8, 64, 256>}, {pipeline_mode = #tpu.pipeline_mode<synchronous>, transform_indices = @transform_1, window_bounds = array<i64: 256, 512>}, {pipeline_mode = #tpu.pipeline_mode<synchronous>, transform_indices = @transform_2, window_bounds = array<i64: 1, 512>}, {pipeline_mode = #tpu.pipeline_mode<synchronous>, transform_indices = @transform_3, window_bounds = array<i64: 512, 128>}, {pipeline_mode = #tpu.pipeline_mode<synchronous>, transform_indices = @transform_4, window_bounds = array<i64: 1, 128>}, {pipeline_mode = #tpu.pipeline_mode<synchronous>, transform_indices = @transform_5, window_bounds = array<i64: 128, 128>}, {pipeline_mode = #tpu.pipeline_mode<synchronous>, transform_indices = @transform_6, window_bounds = array<i64: 1, 128>}, {transform_indices = @transform_7, window_bounds = array<i64: 8, 128>}]} {
    %cst = arith.constant 0.000000e+00 : f32
    %0 = vector.broadcast %cst : f32 to vector<8x256xf32>
    %c0 = arith.constant 0 : index
    %c0_0 = arith.constant 0 : index
    %c0_1 = arith.constant 0 : index
    %1 = vector.load %arg1[%c0, %c0_0, %c0_1] : memref<8x64x256xf32, #tpu.memory_space<vmem>>, vector<8x8x256xf32>
    %cst_2 = arith.constant dense<0.000000e+00> : vector<8x256xf32>
    %2 = vector.multi_reduction <add>, %1, %cst_2 [1] : vector<8x8x256xf32> to vector<8x256xf32>
    %3 = arith.addf %0, %2 : vector<8x256xf32>
    %c0_3 = arith.constant 0 : index
    %c8 = arith.constant 8 : index
    %c0_4 = arith.constant 0 : index
    %4 = vector.load %arg1[%c0_3, %c8, %c0_4] : memref<8x64x256xf32, #tpu.memory_space<vmem>>, vector<8x8x256xf32>
    %cst_5 = arith.constant dense<0.000000e+00> : vector<8x256xf32>
    %5 = vector.multi_reduction <add>, %4, %cst_5 [1] : vector<8x8x256xf32> to vector<8x256xf32>
    %6 = arith.addf %3, %5 : vector<8x256xf32>
    %c0_6 = arith.constant 0 : index
    %c16 = arith.constant 16 : index
    %c0_7 = arith.constant 0 : index
    %7 = vector.load %arg1[%c0_6, %c16, %c0_7] : memref<8x64x256xf32, #tpu.memory_space<vmem>>, vector<8x8x256xf32>
    %cst_8 = arith.constant dense<0.000000e+00> : vector<8x256xf32>
    %8 = vector.multi_reduction <add>, %7, %cst_8 [1] : vector<8x8x256xf32> to vector<8x256xf32>
    %9 = arith.addf %6, %8 : vector<8x256xf32>
    %c0_9 = arith.constant 0 : index
    %c24 = arith.constant 24 : index
    %c0_10 = arith.constant 0 : index
    %10 = vector.load %arg1[%c0_9, %c24, %c0_10] : memref<8x64x256xf32, #tpu.memory_space<vmem>>, vector<8x8x256xf32>
    %cst_11 = arith.constant dense<0.000000e+00> : vector<8x256xf32>
    %11 = vector.multi_reduction <add>, %10, %cst_11 [1] : vector<8x8x256xf32> to vector<8x256xf32>
    %12 = arith.addf %9, %11 : vector<8x256xf32>
    %c0_12 = arith.constant 0 : index
    %c32 = arith.constant 32 : index
    %c0_13 = arith.constant 0 : index
    %13 = vector.load %arg1[%c0_12, %c32, %c0_13] : memref<8x64x256xf32, #tpu.memory_space<vmem>>, vector<8x8x256xf32>
    %cst_14 = arith.constant dense<0.000000e+00> : vector<8x256xf32>
    %14 = vector.multi_reduction <add>, %13, %cst_14 [1] : vector<8x8x256xf32> to vector<8x256xf32>
    %15 = arith.addf %12, %14 : vector<8x256xf32>
    %c0_15 = arith.constant 0 : index
    %c40 = arith.constant 40 : index
    %c0_16 = arith.constant 0 : index
    %16 = vector.load %arg1[%c0_15, %c40, %c0_16] : memref<8x64x256xf32, #tpu.memory_space<vmem>>, vector<8x8x256xf32>
    %cst_17 = arith.constant dense<0.000000e+00> : vector<8x256xf32>
    %17 = vector.multi_reduction <add>, %16, %cst_17 [1] : vector<8x8x256xf32> to vector<8x256xf32>
    %18 = arith.addf %15, %17 : vector<8x256xf32>
    %c0_18 = arith.constant 0 : index
    %c48 = arith.constant 48 : index
    %c0_19 = arith.constant 0 : index
    %19 = vector.load %arg1[%c0_18, %c48, %c0_19] : memref<8x64x256xf32, #tpu.memory_space<vmem>>, vector<8x8x256xf32>
    %cst_20 = arith.constant dense<0.000000e+00> : vector<8x256xf32>
    %20 = vector.multi_reduction <add>, %19, %cst_20 [1] : vector<8x8x256xf32> to vector<8x256xf32>
    %21 = arith.addf %18, %20 : vector<8x256xf32>
    %c0_21 = arith.constant 0 : index
    %c56 = arith.constant 56 : index
    %c0_22 = arith.constant 0 : index
    %22 = vector.load %arg1[%c0_21, %c56, %c0_22] : memref<8x64x256xf32, #tpu.memory_space<vmem>>, vector<8x8x256xf32>
    %cst_23 = arith.constant dense<0.000000e+00> : vector<8x256xf32>
    %23 = vector.multi_reduction <add>, %22, %cst_23 [1] : vector<8x8x256xf32> to vector<8x256xf32>
    %24 = arith.addf %21, %23 : vector<8x256xf32>
    %c0_24 = arith.constant 0 : index
    %c0_25 = arith.constant 0 : index
    %25 = vector.load %arg2[%c0_24, %c0_25] : memref<256x512xf32, #tpu.memory_space<vmem>>, vector<256x512xf32>
    %cst_26 = arith.constant dense<0.000000e+00> : vector<8x512xf32>
    %26 = tpu.matmul %24, %25, %cst_26 {dimension_numbers = #tpu.dot_dimension_numbers<[1], [0], [0], [1], [0, 0, 1, 1], [], []>} : vector<8x256xf32>, vector<256x512xf32>, vector<8x512xf32> -> vector<8x512xf32>
    %c0_27 = arith.constant 0 : index
    %c0_28 = arith.constant 0 : index
    %27 = vector.load %arg3[%c0_27, %c0_28] : memref<1x512xf32, #tpu.memory_space<vmem>>, vector<1x512xf32>
    %28 = vector.broadcast %27 : vector<1x512xf32> to vector<8x512xf32>
    %29 = arith.addf %26, %28 : vector<8x512xf32>
    %cst_29 = arith.constant 0.000000e+00 : f32
    %30 = vector.broadcast %cst_29 : f32 to vector<8x512xf32>
    %31 = arith.maximumf %29, %30 : vector<8x512xf32>
    %c0_30 = arith.constant 0 : index
    %c0_31 = arith.constant 0 : index
    %32 = vector.load %arg4[%c0_30, %c0_31] : memref<512x128xf32, #tpu.memory_space<vmem>>, vector<512x128xf32>
    %cst_32 = arith.constant dense<0.000000e+00> : vector<8x128xf32>
    %33 = tpu.matmul %31, %32, %cst_32 {dimension_numbers = #tpu.dot_dimension_numbers<[1], [0], [0], [1], [0, 0, 1, 1], [], []>} : vector<8x512xf32>, vector<512x128xf32>, vector<8x128xf32> -> vector<8x128xf32>
    %c0_33 = arith.constant 0 : index
    %c0_34 = arith.constant 0 : index
    %34 = vector.load %arg5[%c0_33, %c0_34] : memref<1x128xf32, #tpu.memory_space<vmem>>, vector<1x128xf32>
    %35 = vector.broadcast %34 : vector<1x128xf32> to vector<8x128xf32>
    %36 = arith.addf %33, %35 : vector<8x128xf32>
    %cst_35 = arith.constant 0.000000e+00 : f32
    %37 = vector.broadcast %cst_35 : f32 to vector<8x128xf32>
    %38 = arith.maximumf %36, %37 : vector<8x128xf32>
    %c0_36 = arith.constant 0 : index
    %c0_37 = arith.constant 0 : index
    %39 = vector.load %arg6[%c0_36, %c0_37] : memref<128x128xf32, #tpu.memory_space<vmem>>, vector<128x128xf32>
    %cst_38 = arith.constant dense<0.000000e+00> : vector<8x128xf32>
    %40 = tpu.matmul %38, %39, %cst_38 {dimension_numbers = #tpu.dot_dimension_numbers<[1], [0], [0], [1], [0, 0, 1, 1], [], []>} : vector<8x128xf32>, vector<128x128xf32>, vector<8x128xf32> -> vector<8x128xf32>
    %c0_39 = arith.constant 0 : index
    %c0_40 = arith.constant 0 : index
    %41 = vector.load %arg7[%c0_39, %c0_40] : memref<1x128xf32, #tpu.memory_space<vmem>>, vector<1x128xf32>
    %42 = vector.broadcast %41 : vector<1x128xf32> to vector<8x128xf32>
    %43 = arith.addf %40, %42 : vector<8x128xf32>
    %c0_41 = arith.constant 0 : index
    %c0_42 = arith.constant 0 : index
    %44 = vector.load %arg8[%c0_41, %c0_42] : memref<8x128xf32, #tpu.memory_space<vmem>>, vector<8x128xf32>
    tpu.vector_store %arg8[%c0_41, %c0_42], %43 {strides = array<i32>} : memref<8x128xf32, #tpu.memory_space<vmem>>, vector<8x128xf32>,
    return
  }
  func.func @transform_0(%arg0: i32) -> (i32, i32, i32) {
    %c0_i32 = arith.constant 0 : i32
    %c0_i32_0 = arith.constant 0 : i32
    %c0_i32_1 = arith.constant 0 : i32
    return %arg0, %c0_i32, %c0_i32_0 : i32, i32, i32
  }
  func.func @transform_1(%arg0: i32) -> (i32, i32) {
    %c0_i32 = arith.constant 0 : i32
    %c0_i32_0 = arith.constant 0 : i32
    %c0_i32_1 = arith.constant 0 : i32
    return %c0_i32, %c0_i32_0 : i32, i32
  }
  func.func @transform_2(%arg0: i32) -> (i32, i32) {
    %c0_i32 = arith.constant 0 : i32
    %c0_i32_0 = arith.constant 0 : i32
    %c0_i32_1 = arith.constant 0 : i32
    return %c0_i32, %c0_i32_0 : i32, i32
  }
  func.func @transform_3(%arg0: i32) -> (i32, i32) {
    %c0_i32 = arith.constant 0 : i32
    %c0_i32_0 = arith.constant 0 : i32
    %c0_i32_1 = arith.constant 0 : i32
    return %c0_i32, %c0_i32_0 : i32, i32
  }
  func.func @transform_4(%arg0: i32) -> (i32, i32) {
    %c0_i32 = arith.constant 0 : i32
    %c0_i32_0 = arith.constant 0 : i32
    %c0_i32_1 = arith.constant 0 : i32
    return %c0_i32, %c0_i32_0 : i32, i32
  }
  func.func @transform_5(%arg0: i32) -> (i32, i32) {
    %c0_i32 = arith.constant 0 : i32
    %c0_i32_0 = arith.constant 0 : i32
    %c0_i32_1 = arith.constant 0 : i32
    return %c0_i32, %c0_i32_0 : i32, i32
  }
  func.func @transform_6(%arg0: i32) -> (i32, i32) {
    %c0_i32 = arith.constant 0 : i32
    %c0_i32_0 = arith.constant 0 : i32
    %c0_i32_1 = arith.constant 0 : i32
    return %c0_i32, %c0_i32_0 : i32, i32
  }
  func.func @transform_7(%arg0: i32) -> (i32, i32) {
    %c0_i32 = arith.constant 0 : i32
    %c0_i32_0 = arith.constant 0 : i32
    return %arg0, %c0_i32 : i32, i32
  }
}

module attributes {stable_mosaic.version = 11 : i64} {
  func.func @camera_head_kernel(%arg0: i32, %arg1: memref<8x64x256xf32, #tpu.memory_space<vmem>>, %arg2: memref<256x512xf32, #tpu.memory_space<vmem>>, %arg3: memref<1x512xf32, #tpu.memory_space<vmem>>, %arg4: memref<512x128xf32, #tpu.memory_space<vmem>>, %arg5: memref<1x128xf32, #tpu.memory_space<vmem>>, %arg6: memref<128x128xf32, #tpu.memory_space<vmem>>, %arg7: memref<1x128xf32, #tpu.memory_space<vmem>>, %arg8: memref<8x128xf32, #tpu.memory_space<vmem>>) attributes {dimension_semantics = [#tpu.dimension_semantics<parallel>], iteration_bounds = array<i64: 2>, scalar_prefetch = 0 : i64, scratch_operands = 0 : i64, tpu.core_type = #tpu.core_type<tc>, window_params = [{transform_indices = @transform_0, window_bounds = array<i64: 8, 64, 256>}, {pipeline_mode = #tpu.pipeline_mode<synchronous>, transform_indices = @transform_1, window_bounds = array<i64: 256, 512>}, {pipeline_mode = #tpu.pipeline_mode<synchronous>, transform_indices = @transform_2, window_bounds = array<i64: 1, 512>}, {pipeline_mode = #tpu.pipeline_mode<synchronous>, transform_indices = @transform_3, window_bounds = array<i64: 512, 128>}, {pipeline_mode = #tpu.pipeline_mode<synchronous>, transform_indices = @transform_4, window_bounds = array<i64: 1, 128>}, {pipeline_mode = #tpu.pipeline_mode<synchronous>, transform_indices = @transform_5, window_bounds = array<i64: 128, 128>}, {pipeline_mode = #tpu.pipeline_mode<synchronous>, transform_indices = @transform_6, window_bounds = array<i64: 1, 128>}, {transform_indices = @transform_7, window_bounds = array<i64: 8, 128>}]} {
    %cst = arith.constant 0.000000e+00 : f32
    %0 = vector.broadcast %cst : f32 to vector<8x256xf32>
    %c0 = arith.constant 0 : index
    %c0_0 = arith.constant 0 : index
    %c0_1 = arith.constant 0 : index
    %1 = vector.load %arg1[%c0, %c0_0, %c0_1] : memref<8x64x256xf32, #tpu.memory_space<vmem>>, vector<8x8x256xf32>
    %cst_2 = arith.constant dense<0.000000e+00> : vector<8x256xf32>
    %2 = vector.multi_reduction <add>, %1, %cst_2 [1] : vector<8x8x256xf32> to vector<8x256xf32>
    %3 = arith.addf %0, %2 : vector<8x256xf32>
    %c0_3 = arith.constant 0 : index
    %c8 = arith.constant 8 : index
    %c0_4 = arith.constant 0 : index
    %4 = vector.load %arg1[%c0_3, %c8, %c0_4] : memref<8x64x256xf32, #tpu.memory_space<vmem>>, vector<8x8x256xf32>
    %cst_5 = arith.constant dense<0.000000e+00> : vector<8x256xf32>
    %5 = vector.multi_reduction <add>, %4, %cst_5 [1] : vector<8x8x256xf32> to vector<8x256xf32>
    %6 = arith.addf %3, %5 : vector<8x256xf32>
    %c0_6 = arith.constant 0 : index
    %c16 = arith.constant 16 : index
    %c0_7 = arith.constant 0 : index
    %7 = vector.load %arg1[%c0_6, %c16, %c0_7] : memref<8x64x256xf32, #tpu.memory_space<vmem>>, vector<8x8x256xf32>
    %cst_8 = arith.constant dense<0.000000e+00> : vector<8x256xf32>
    %8 = vector.multi_reduction <add>, %7, %cst_8 [1] : vector<8x8x256xf32> to vector<8x256xf32>
    %9 = arith.addf %6, %8 : vector<8x256xf32>
    %c0_9 = arith.constant 0 : index
    %c24 = arith.constant 24 : index
    %c0_10 = arith.constant 0 : index
    %10 = vector.load %arg1[%c0_9, %c24, %c0_10] : memref<8x64x256xf32, #tpu.memory_space<vmem>>, vector<8x8x256xf32>
    %cst_11 = arith.constant dense<0.000000e+00> : vector<8x256xf32>
    %11 = vector.multi_reduction <add>, %10, %cst_11 [1] : vector<8x8x256xf32> to vector<8x256xf32>
    %12 = arith.addf %9, %11 : vector<8x256xf32>
    %c0_12 = arith.constant 0 : index
    %c32 = arith.constant 32 : index
    %c0_13 = arith.constant 0 : index
    %13 = vector.load %arg1[%c0_12, %c32, %c0_13] : memref<8x64x256xf32, #tpu.memory_space<vmem>>, vector<8x8x256xf32>
    %cst_14 = arith.constant dense<0.000000e+00> : vector<8x256xf32>
    %14 = vector.multi_reduction <add>, %13, %cst_14 [1] : vector<8x8x256xf32> to vector<8x256xf32>
    %15 = arith.addf %12, %14 : vector<8x256xf32>
    %c0_15 = arith.constant 0 : index
    %c40 = arith.constant 40 : index
    %c0_16 = arith.constant 0 : index
    %16 = vector.load %arg1[%c0_15, %c40, %c0_16] : memref<8x64x256xf32, #tpu.memory_space<vmem>>, vector<8x8x256xf32>
    %cst_17 = arith.constant dense<0.000000e+00> : vector<8x256xf32>
    %17 = vector.multi_reduction <add>, %16, %cst_17 [1] : vector<8x8x256xf32> to vector<8x256xf32>
    %18 = arith.addf %15, %17 : vector<8x256xf32>
    %c0_18 = arith.constant 0 : index
    %c48 = arith.constant 48 : index
    %c0_19 = arith.constant 0 : index
    %19 = vector.load %arg1[%c0_18, %c48, %c0_19] : memref<8x64x256xf32, #tpu.memory_space<vmem>>, vector<8x8x256xf32>
    %cst_20 = arith.constant dense<0.000000e+00> : vector<8x256xf32>
    %20 = vector.multi_reduction <add>, %19, %cst_20 [1] : vector<8x8x256xf32> to vector<8x256xf32>
    %21 = arith.addf %18, %20 : vector<8x256xf32>
    %c0_21 = arith.constant 0 : index
    %c56 = arith.constant 56 : index
    %c0_22 = arith.constant 0 : index
    %22 = vector.load %arg1[%c0_21, %c56, %c0_22] : memref<8x64x256xf32, #tpu.memory_space<vmem>>, vector<8x8x256xf32>
    %cst_23 = arith.constant dense<0.000000e+00> : vector<8x256xf32>
    %23 = vector.multi_reduction <add>, %22, %cst_23 [1] : vector<8x8x256xf32> to vector<8x256xf32>
    %24 = arith.addf %21, %23 : vector<8x256xf32>
    %c0_24 = arith.constant 0 : index
    %c0_25 = arith.constant 0 : index
    %25 = vector.load %arg2[%c0_24, %c0_25] : memref<256x512xf32, #tpu.memory_space<vmem>>, vector<256x512xf32>
    %cst_26 = arith.constant dense<0.000000e+00> : vector<8x512xf32>
    %26 = tpu.matmul %24, %25, %cst_26 {dimension_numbers = #tpu.dot_dimension_numbers<[1], [0], [0], [1], [0, 0, 1, 1], [], []>} : vector<8x256xf32>, vector<256x512xf32>, vector<8x512xf32> -> vector<8x512xf32>
    %c0_27 = arith.constant 0 : index
    %c0_28 = arith.constant 0 : index
    %27 = vector.load %arg3[%c0_27, %c0_28] : memref<1x512xf32, #tpu.memory_space<vmem>>, vector<1x512xf32>
    %28 = vector.broadcast %27 : vector<1x512xf32> to vector<8x512xf32>
    %29 = arith.addf %26, %28 : vector<8x512xf32>
    %cst_29 = arith.constant 0.000000e+00 : f32
    %30 = vector.broadcast %cst_29 : f32 to vector<8x512xf32>
    %31 = arith.maximumf %29, %30 : vector<8x512xf32>
    %c0_30 = arith.constant 0 : index
    %c0_31 = arith.constant 0 : index
    %32 = vector.load %arg4[%c0_30, %c0_31] : memref<512x128xf32, #tpu.memory_space<vmem>>, vector<512x128xf32>
    %cst_32 = arith.constant dense<0.000000e+00> : vector<8x128xf32>
    %33 = tpu.matmul %31, %32, %cst_32 {dimension_numbers = #tpu.dot_dimension_numbers<[1], [0], [0], [1], [0, 0, 1, 1], [], []>} : vector<8x512xf32>, vector<512x128xf32>, vector<8x128xf32> -> vector<8x128xf32>
    %c0_33 = arith.constant 0 : index
    %c0_34 = arith.constant 0 : index
    %34 = vector.load %arg5[%c0_33, %c0_34] : memref<1x128xf32, #tpu.memory_space<vmem>>, vector<1x128xf32>
    %35 = vector.broadcast %34 : vector<1x128xf32> to vector<8x128xf32>
    %36 = arith.addf %33, %35 : vector<8x128xf32>
    %cst_35 = arith.constant 0.000000e+00 : f32
    %37 = vector.broadcast %cst_35 : f32 to vector<8x128xf32>
    %38 = arith.maximumf %36, %37 : vector<8x128xf32>
    %c0_36 = arith.constant 0 : index
    %c0_37 = arith.constant 0 : index
    %39 = vector.load %arg6[%c0_36, %c0_37] : memref<128x128xf32, #tpu.memory_space<vmem>>, vector<128x128xf32>
    %cst_38 = arith.constant dense<0.000000e+00> : vector<8x128xf32>
    %40 = tpu.matmul %38, %39, %cst_38 {dimension_numbers = #tpu.dot_dimension_numbers<[1], [0], [0], [1], [0, 0, 1, 1], [], []>} : vector<8x128xf32>, vector<128x128xf32>, vector<8x128xf32> -> vector<8x128xf32>
    %c0_39 = arith.constant 0 : index
    %c0_40 = arith.constant 0 : index
    %41 = vector.load %arg7[%c0_39, %c0_40] : memref<1x128xf32, #tpu.memory_space<vmem>>, vector<1x128xf32>
    %42 = vector.broadcast %41 : vector<1x128xf32> to vector<8x128xf32>
    %43 = arith.addf %40, %42 : vector<8x128xf32>
    %c0_41 = arith.constant 0 : index
    %c0_42 = arith.constant 0 : index
    %44 = vector.load %arg8[%c0_41, %c0_42] : memref<8x128xf32, #tpu.memory_space<vmem>>, vector<8x128xf32>
    tpu.vector_store %arg8[%c0_41, %c0_42], %43 {strides = array<i32>} : memref<8x128xf32, #tpu.memory_space<vmem>>, vector<8x128xf32>,
    return
  }
  func.func @transform_0(%arg0: i32) -> (i32, i32, i32) {
    %c0_i32 = arith.constant 0 : i32
    %c0_i32_0 = arith.constant 0 : i32
    %c0_i32_1 = arith.constant 0 : i32
    return %arg0, %c0_i32, %c0_i32_0 : i32, i32, i32
  }
  func.func @transform_1(%arg0: i32) -> (i32, i32) {
    %c0_i32 = arith.constant 0 : i32
    %c0_i32_0 = arith.constant 0 : i32
    %c0_i32_1 = arith.constant 0 : i32
    return %c0_i32, %c0_i32_0 : i32, i32
  }
  func.func @transform_2(%arg0: i32) -> (i32, i32) {
    %c0_i32 = arith.constant 0 : i32
    %c0_i32_0 = arith.constant 0 : i32
    %c0_i32_1 = arith.constant 0 : i32
    return %c0_i32, %c0_i32_0 : i32, i32
  }
  func.func @transform_3(%arg0: i32) -> (i32, i32) {
    %c0_i32 = arith.constant 0 : i32
    %c0_i32_0 = arith.constant 0 : i32
    %c0_i32_1 = arith.constant 0 : i32
    return %c0_i32, %c0_i32_0 : i32, i32
  }
  func.func @transform_4(%arg0: i32) -> (i32, i32) {
    %c0_i32 = arith.constant 0 : i32
    %c0_i32_0 = arith.constant 0 : i32
    %c0_i32_1 = arith.constant 0 : i32
    return %c0_i32, %c0_i32_0 : i32, i32
  }
  func.func @transform_5(%arg0: i32) -> (i32, i32) {
    %c0_i32 = arith.constant 0 : i32
    %c0_i32_0 = arith.constant 0 : i32
    %c0_i32_1 = arith.constant 0 : i32
    return %c0_i32, %c0_i32_0 : i32, i32
  }
  func.func @transform_6(%arg0: i32) -> (i32, i32) {
    %c0_i32 = arith.constant 0 : i32
    %c0_i32_0 = arith.constant 0 : i32
    %c0_i32_1 = arith.constant 0 : i32
    return %c0_i32, %c0_i32_0 : i32, i32
  }
  func.func @transform_7(%arg0: i32) -> (i32, i32) {
    %c0_i32 = arith.constant 0 : i32
    %c0_i32_0 = arith.constant 0 : i32
    return %arg0, %c0_i32 : i32, i32
  }
}

</mosaic_0001>

<bundles_post_ra>
// kernel: tpu_custom_call.1
= control target key start
LH: loop header
LB: loop body
LE: loop exit
PB: predicated region body
PF: predicated region fallthrough
CT: control target
= control target key end

     0   :  { %s3740_s0 = inlined_call_operand.hbm [shape: f32[16,64,256], index: 0, kind: input, shape index: {}]   ;;  %s3741_s1 = inlined_call_operand.hbm [shape: f32[256,512], index: 1, kind: input, shape index: {}]   ;;  %s3742_s2 = inlined_call_operand.vmem [shape: f32[1,512], index: 2, kind: input, shape index: {}]   ;;  %s3743_s3 = inlined_call_operand.hbm [shape: f32[512,128], index: 3, kind: input, shape index: {}]   ;;  %s3744_s4 = inlined_call_operand.vmem [shape: f32[1,128], index: 4, kind: input, shape index: {}]   ;;  %s3745_s5 = inlined_call_operand.hbm [shape: f32[128,128], index: 5, kind: input, shape index: {}]   ;;  %s3746_s6 = inlined_call_operand.vmem [shape: f32[1,128], index: 6, kind: input, shape index: {}]   ;;  %s3747_s7 = inlined_call_operand.hbm [shape: f32[16,128], index: 7, kind: output, shape index: {}]  }
   0x1   :  { %3753 = sst [smem:[#allocation17_spill]] %s3741_s1 }
   0x2   :  { %12 = vsyncpa [#allocation3], 0 }
   0x3   :  { %14 = vsyncpa [#allocation3 + $0x1], 0 }
   0x4   :  { %15 = vsyncpa [#allocation6], 0 }
   0x5   :  { %16 = vsyncpa [#allocation9], 0 }
   0x6   :  { %17 = vsyncpa [#allocation4], 0 }
   0x7   :  { %19 = vsyncpa [#allocation4 + $0x1], 0  ;;  %s2813_s24 = smov 0   ;;  %s2815_s25 = smov 0  }
   0x8   :  { %s2817_s26 = smov 0   ;;  %s2819_s27 = smov 0  }
   0x9 LB: > { %s2834_s28 = sadd.s32 4294967295, %s2757_s27   ;;  %s2121_s29 = sadd.s32 4294967294, %s2757_s27   ;;  %s2757_s27 = sphi %s2819_s27, %s3795_s27   ;;  %s2753_s26 = sphi %s2817_s26, %s3794_s26   ;;  %s2749_s25 = sphi %s2815_s25, %s3793_s25   ;;  %s2745_s24 = sphi %s2813_s24, %s3792_s24  }
   0xa   : > { %p45_p0 = scmp.ne.s32.totalorder %s2749_s25, %s2745_s24  ;;  %p3748_p1 = scmp.eq.s32.totalorder %s2834_s28, 0 }
   0xb   : > { %p201_p3 = scmp.eq.s32.totalorder %s2121_s29, 1  ;;  %p2122_p5 = scmp.ge.s32.totalorder %s2757_s27, 1 }
   0xc   : > { %p2843_p4 = por %p3748_p1, %p45_p0  ;;  %p208_p7 = scmp.lt.s32.totalorder %s2757_s27, 3 }
   0xd   : > { %p2848_p6 = por %p201_p3, %p45_p0  ;;  %s2759_s10 = smov [#allocation5]  }
   0xe   : > { %s3754_s30 = scalar_select %p2843_p4, 1, 0 }
   0xf   : > { %s3755_s8 = scalar_select %p2848_p6, 1, 0 }
  0x10   : > { %p2853_p8 = pnand %p2122_p5, %p208_p7  ;;  %s220_s11 = sshll.u32 %s2759_s10, 4  ;;  %s2857_s11 = int_to_ptr.vmem [resolvable:$true] %s220_s11 }
  0x11   : > { %3756 = sst [smem:[#allocation15_spill]] %s3755_s8  ;;  %s2760_s13 = smov [#allocation7]  }
  0x12   : > { %s3757_s9 = scalar_select %p2853_p8, 1, 0 }
  0x13   : > { %p2499_p9 = pneg %p2853_p8  ;;  %s236_s14 = sshll.u32 %s2760_s13, 4  ;;  %s2868_s14 = int_to_ptr.vmem [resolvable:$true] %s236_s14 }
  0x14   : > { %s3759_s1 = sld [smem:[#allocation17_spill]] }
  0x15   : > { %p2864_p11 = pnand %p2499_p9, %p3748_p1 }
  0x17   : > { %p2878_p13 = pneg %p2864_p11 }
  0x1a   : > { %s2569_s17 = scalar_lea.hbm %s3759_s1, 16384 }
  0x1b   : > { %p2570_p12 = scmp.ne.s32.totalorder %s3759_s1, %s2569_s17  ;;  %p2576_p5 = scmp.lt.u32.totalorder %s2569_s17, %s3759_s1 }
  0x1d   : > { %p2572_p0 = pnand %p2878_p13, %p2570_p12 }
  0x1f   : > { %p2573_p3 = pneg %p2572_p0 }
  0x21   : > { %p2578_p7 = pnand %p2576_p5, %p2573_p3 }
  0x23   : > { %2581 = shalt.err (!%p2578_p7)
}
  0x24   : > { %s2582_s23 = scalar_lea.vmem %s2857_s11, 16384  ;;  %p2590_p2 = scmp.lt.s32.totalorder %s2857_s11, %s2857_s11 }
  0x25   : > { %p2583_p9 = scmp.ne.s32.totalorder %s2857_s11, %s2582_s23  ;;  %p2591_p6 = scmp.lt.s32.totalorder %s2582_s23, %s2582_s23 }
  0x27   : > { %p2585_p10 = pnand %p2583_p9, %p2878_p13  ;;  %p2592_p12 = por %p2591_p6, %p2590_p2 }
  0x29   : > { %p2586_p1 = pneg %p2585_p10 }
  0x2b   : > { %p2593_p0 = pnand %p2592_p12, %p2586_p1 }
  0x2d   : > { %2596 = shalt.err (!%p2593_p0)
}
  0x2e   : > { %s2761_s29 = smov 512   ;;  %s2762_s10 = smov 32  }
  0x2f   : > { %2502 = dma.hbm_to_vmem [thread:$0]  (!%p2864_p11), %s3759_s1, 16384, %s2857_s11, [#allocation6], %s2761_s29, %s2761_s29, %s2762_s10  }
  0x30   : > { %s2597_s18 = scalar_lea.hbm %s3743_s3, 8192 }
  0x31   : > { %p2598_p2 = scmp.ne.s32.totalorder %s3743_s3, %s2597_s18  ;;  %p2604_p10 = scmp.lt.u32.totalorder %s2597_s18, %s3743_s3 }
  0x33   : > { %p2600_p1 = pnand %p2598_p2, %p2878_p13 }
  0x35   : > { %p2601_p6 = pneg %p2600_p1 }
  0x37   : > { %p2606_p3 = pnand %p2604_p10, %p2601_p6 }
  0x39   : > { %2609 = shalt.err (!%p2606_p3)
}
  0x3a   : > { %s2610_s11 = scalar_lea.vmem %s2868_s14, 8192  ;;  %p2618_p12 = scmp.lt.s32.totalorder %s2868_s14, %s2868_s14 }
  0x3b   : > { %p2611_p5 = scmp.ne.s32.totalorder %s2868_s14, %s2610_s11  ;;  %p2619_p0 = scmp.lt.s32.totalorder %s2610_s11, %s2610_s11 }
  0x3d   : > { %p2613_p7 = pnand %p2611_p5, %p2878_p13  ;;  %p2620_p2 = por %p2619_p0, %p2618_p12 }
  0x3f   : > { %p2614_p9 = pneg %p2613_p7 }
  0x41   : > { %p2621_p1 = pnand %p2620_p2, %p2614_p9 }
  0x43   : > { %2624 = shalt.err (!%p2621_p1)
}
  0x44   : > { %s2763_s29 = smov 128   ;;  %s2764_s10 = smov 8  }
  0x45   : > { %2505 = dma.hbm_to_vmem [thread:$0]  (!%p2864_p11), %s3743_s3, 8192, %s2868_s14, [#allocation6], %s2763_s29, %s2763_s29, %s2764_s10  }
  0x46   : > { %s2765_s16 = smov [#allocation8]   ;;  %s2923_s18 = sadd.s32 1, %s2757_s27  }
  0x47   : > { %s252_s17 = sshll.u32 %s2765_s16, 4  ;;  %s2625_s22 = scalar_lea.hbm %s3745_s5, 2048  ;;  %s253_s17 = int_to_ptr.vmem [resolvable:$true] %s252_s17 }
  0x48   : > { %p2626_p6 = scmp.ne.s32.totalorder %s3745_s5, %s2625_s22  ;;  %p2632_p5 = scmp.lt.u32.totalorder %s2625_s22, %s3745_s5 }
  0x4a   : > { %p2628_p10 = pnand %p2626_p6, %p2878_p13 }
  0x4c   : > { %p2629_p3 = pneg %p2628_p10 }
  0x4e   : > { %p2634_p7 = pnand %p2632_p5, %p2629_p3 }
  0x50   : > { %2637 = shalt.err (!%p2634_p7)
}
  0x51   : > { %s2638_s14 = scalar_lea.vmem %s253_s17, 2048  ;;  %p2646_p2 = scmp.lt.s32.totalorder %s253_s17, %s253_s17 }
  0x52   : > { %p2639_p9 = scmp.ne.s32.totalorder %s253_s17, %s2638_s14  ;;  %p2647_p1 = scmp.lt.s32.totalorder %s2638_s14, %s2638_s14 }
  0x54   : > { %p2641_p12 = pnand %p2639_p9, %p2878_p13  ;;  %p2648_p4 = por %p2647_p1, %p2646_p2 }
  0x56   : > { %p2642_p0 = pneg %p2641_p12 }
  0x58   : > { %p2649_p8 = pnand %p2648_p4, %p2642_p0 }
  0x5a   : > { %2652 = shalt.err (!%p2649_p8)
}
  0x5b   : > { %2508 = dma.hbm_to_vmem [thread:$0]  (!%p2864_p11), %s3745_s5, 2048, %s253_s17, [#allocation9], %s2763_s29, %s2763_s29, %s2764_s10  }
  0x5c   : > { %s29_s1 = ssub.s32 %s2757_s27, %s2923_s18  ;;  %s32_s8 = sadd.s32 1, %s2753_s26 }
  0x5d   : > { %p30_p4 = scmp.eq.s32.totalorder %s29_s1, 0  ;;  %p39_p8 = scmp.ne.s32.totalorder %s2753_s26, %s2749_s25 }
  0x5e   : > { %p40_p13 = scmp.eq.s32.totalorder %s2757_s27, 0  ;;  %p2520_p6 = scmp.lt.s32.totalorder %s2757_s27, 2 }
  0x5f   : > { %s2951_s12 = scalar_select %p30_p4, %s2753_s26, %s32_s8  }
  0x60   : > { %p41_p10 = por %p40_p13, %p39_p8  ;;  %p3761_p3 = scmp.eq.s32.totalorder %s2834_s28, 1 }
  0x61   : > { %s269_s16 = sand.u32 1, %s2753_s26   ;;  %s2144_s19 = sshll.u32 %s2757_s27, 14 }
  0x62   : > { %p2955_p5 = por %p3761_p3, %p39_p8  ;;  %s2127_s21 = sshll.u32 %s269_s16, 10 }
  0x63   : > { %s2964_s29 = scalar_lea.hbm %s3740_s0, %s2144_s19  ;;  %s273_s10 = scalar_lea.vmem [#allocation2], %s2127_s21 }
  0x64   : > { %s281_s17 = sshll.u32 %s273_s10, 4  ;;  %p2966_p11 = pnand %p2520_p6, %p41_p10  ;;  %s2970_s17 = int_to_ptr.vmem [resolvable:$true] %s281_s17 }
  0x65   : > { %s2972_s14 = scalar_lea.sflag [#allocation3], %s269_s16  ;;  %s2653_s13 = scalar_lea.hbm %s2964_s29, 16384 }
  0x66   : > { %p2654_p7 = scmp.ne.s32.totalorder %s2964_s29, %s2653_s13  ;;  %p2655_p9 = pneg %p2966_p11 }
  0x67   : > { %s2658_s8 = scalar_lea.hbm %s3740_s0, 32768  ;;  %p2659_p2 = scmp.lt.u32.totalorder %s2964_s29, %s3740_s0 }
  0x68   : > { %p2656_p12 = pnand %p2655_p9, %p2654_p7  ;;  %p2660_p1 = scmp.lt.u32.totalorder %s2658_s8, %s2653_s13 }
  0x69   : > { %p2662_p8 = scmp.lt.u32.totalorder %s2653_s13, %s2964_s29 }
  0x6a   : > { %p2657_p0 = pneg %p2656_p12  ;;  %p2661_p4 = por %p2660_p1, %p2659_p2 }
  0x6c   : > { %p2663_p13 = por %p2662_p8, %p2661_p4 }
  0x6e   : > { %p2664_p6 = pnand %p2663_p13, %p2657_p0 }
  0x70   : > { %2667 = shalt.err (!%p2664_p6)
}
  0x71   : > { %s2668_s16 = scalar_lea.vmem %s2970_s17, 16384  ;;  %s2766_s22 = smov [#allocation2]  }
  0x72   : > { %p2669_p10 = scmp.ne.s32.totalorder %s2970_s17, %s2668_s16  ;;  %s2673_s23 = sshll.u32 %s2766_s22, 4  ;;  %s2674_s23 = int_to_ptr.vmem [resolvable:$false] %s2673_s23 }
  0x73   : > { %s2675_s10 = scalar_lea.vmem %s2674_s23, 32768  ;;  %p2676_p12 = scmp.lt.s32.totalorder %s2970_s17, %s2674_s23 }
  0x74   : > { %p2671_p3 = pnand %p2669_p10, %p2655_p9  ;;  %p2677_p2 = scmp.lt.s32.totalorder %s2675_s10, %s2668_s16 }
  0x76   : > { %p2672_p7 = pneg %p2671_p3  ;;  %p2678_p1 = por %p2677_p2, %p2676_p12 }
  0x78   : > { %p2679_p4 = pnand %p2678_p1, %p2672_p7 }
  0x7a   : > { %2682 = shalt.err (!%p2679_p4)
}
  0x7b   : > { %s2767_s13 = smov 256   ;;  %s2768_s15 = smov 16  }
  0x7c   : > { %2512 = dma.hbm_to_vmem [thread:$0]  (!%p2966_p11), %s2964_s29, 16384, %s2970_s17, %s2972_s14, %s2767_s13, %s2767_s13, %s2768_s15  }
  0x7d   : > { %p3764_p9 = scmp.ne.s32.totalorder %s3757_s9, 0 }
  0x7f   : > { %293 = sbr.rel (%p3764_p9) target bundleno = 1090 (0x442), region = 48 }
  0x86   : > { %s3003_s1 = sand.u32 1, %s2749_s25   ;;  %p3765_p0 = scmp.ne.s32.totalorder %s3754_s30, 0 }
  0x87   : > { %s2132_s8 = sshll.u32 %s3003_s1, 10  ;;  %s296_s19 = scalar_lea.sflag [#allocation3], %s3003_s1 }
  0x88   : > { %s3007_s21 = scalar_lea.vmem [#allocation2], %s2132_s8 }
  0x89   : > { %2728 = dma.done.wait (%p3765_p0), %s296_s19, 16384  }
  0x8a   : > { %2730 = vsyncadd (%p3765_p0), %s296_s19, 4294950912  ;;  %p3766_p11 = scmp.eq.s32.totalorder %s2834_s28, 0 }
  0x8c   : > { %2732 = dma.done.wait (%p3766_p11), [#allocation6], 24576   ;;  %p3767_p8 = pmov %p3766_p11 }
  0x8e   : > { %2734 = vsyncadd (%p3767_p8), [#allocation6], 4294942720  ;;  %p3768_p13 = pmov %p3767_p8 }
  0x8f   : > { %p3769_p6 = pmov %p3767_p8 }
  0x90   : > { %2736 = dma.done.wait (%p3768_p13), [#allocation9], 2048  }
  0x91   : > { %2738 = vsyncadd (%p3769_p6), [#allocation9], 4294965248  ;;  %v1368_v0 = vld [vmem:[#allocation5 + $0x8] sm:$0xff]  ;;  %v1370_v2 = vld [vmem:[#allocation5 + $0x18] sm:$0xff]  ;;  %vm1533_vm0 = vcmask 1041409   ;;  %vm1535_vm1 = vcmask 1042434  }
  0x92   : > { %v1372_v1 = vld [vmem:[#allocation5 + $0x28] sm:$0xff]  ;;  %v1374_v4 = vld [vmem:[#allocation5 + $0x38] sm:$0xff]  ;;  %v1367_v5 = vld [vmem:[#allocation5] sm:$0xff]  ;;  %vm1537_vm2 = vcmask 1043459   ;;  %vm1539_vm3 = vcmask 1044484   ;;  %vm1541_vm4 = vcmask 1045509  }
  0x93   : > { %v2267_v3 = vpack.c.bf16 %v1372_v1, %v1368_v0  ;;  %v1371_v6 = vld [vmem:[#allocation5 + $0x20] sm:$0xff]  ;;  %v2331_v7 = vpack.c.bf16 %v1374_v4, %v1370_v2  ;;  %v1369_v9 = vld [vmem:[#allocation5 + $0x10] sm:$0xff]  ;;  %v1376_v11 = vld [vmem:[#allocation5 + $0x48] sm:$0xff]  ;;  %vm1543_vm5 = vcmask 1046534   ;;  %vm1545_vm6 = vcmask 1047559   ;;  %s2136_s11 = sshll.u32 %s3003_s1, 3 }
  0x94   : > { %v2269_v8 = vpack.c.bf16 %v1371_v6, %v1367_v5  ;;  %v1373_v10 = vld [vmem:[#allocation5 + $0x30] sm:$0xff]  ;;  %v1380_v13 = vld [vmem:[#allocation5 + $0x68] sm:$0xff]  ;;  %v1378_v14 = vld [vmem:[#allocation5 + $0x58] sm:$0xff]  ;;  %vm2770_vm7 = vmmov 0   ;;  %s2140_s22 = sshll.u32 %s2834_s28, 7  ;;  %s341_s23 = scalar_lea.vmem [#allocation10], %s2136_s11 }
  0x95   : > { %2268 = vmatprep.subr.bf16.mxu0 %v2267_v3  ;;  %v2333_v12 = vpack.c.bf16 %v1373_v10, %v1369_v9  ;;  %v1382_v15 = vld [vmem:[#allocation5 + $0x78] sm:$0xff]  ;;  %2332 = vmatprep.subr.bf16.mxu1 %v2331_v7  ;;  %v2271_v16 = vpack.c.bf16 %v1380_v13, %v1376_v11  ;;  %v1375_v18 = vld [vmem:[#allocation5 + $0x40] sm:$0xff]  ;;  %v1377_v20 = vld [vmem:[#allocation5 + $0x50] sm:$0xff]  ;;  %s2022_s10 = sshll.u32 %s341_s23, 4  ;;  %s3696_s8 = scalar_lea.hbm %s3747_s7, %s2140_s22  ;;  %s3698_s10 = int_to_ptr.vmem [resolvable:$true] %s2022_s10 }
  0x96   : > { %2270 = vmatpush1.bf16.msra.mxu0 %v2269_v8  ;;  %v2335_v17 = vpack.c.bf16 %v1382_v15, %v1378_v14  ;;  %v1379_v19 = vld [vmem:[#allocation5 + $0x60] sm:$0xff]  ;;  %v1381_v22 = vld [vmem:[#allocation5 + $0x70] sm:$0xff]  ;;  %v1384_v23 = vld [vmem:[#allocation5 + $0x88] sm:$0xff]  ;;  %s2009_s19 = scalar_lea.sflag [#allocation4], %s3003_s1  ;;  %s2772_s28 = smov [#allocation10]  }
  0x97   : > { %2334 = vmatpush1.bf16.msra.mxu1 %v2333_v12  ;;  %v2273_v21 = vpack.c.bf16 %v1379_v19, %v1375_v18  ;;  %v1388_v24 = vld [vmem:[#allocation5 + $0xa8] sm:$0xff]  ;;  %2272 = vmatprep.subr.bf16.mxu0 %v2271_v16  ;;  %v2337_v25 = vpack.c.bf16 %v1381_v22, %v1377_v20  ;;  %v1386_v27 = vld [vmem:[#allocation5 + $0x98] sm:$0xff]  ;;  %v1383_v29 = vld [vmem:[#allocation5 + $0x80] sm:$0xff]  ;;  %s2687_s30 = sshll.u32 %s2772_s28, 4  ;;  %s2688_s30 = int_to_ptr.vmem [resolvable:$false] %s2687_s30 }
  0x98   : > { %2336 = vmatprep.subr.bf16.mxu1 %v2335_v17  ;;  %v2275_v26 = vpack.c.bf16 %v1388_v24, %v1384_v23  ;;  %v1390_v28 = vld [vmem:[#allocation5 + $0xb8] sm:$0xff]  ;;  %v1387_v31 = vld [vmem:[#allocation5 + $0xa0] sm:$0xff]  ;;  %v1385_v32 = vld [vmem:[#allocation5 + $0x90] sm:$0xff]  ;;  %s2689_s9 = scalar_lea.vmem %s2688_s30, 256  ;;  %p2690_p12 = scmp.lt.s32.totalorder %s3698_s10, %s2688_s30 }
  0x99   : > { %v2339_v30 = vpack.c.bf16 %v1390_v28, %v1386_v27  ;;  %v1389_v33 = vld [vmem:[#allocation5 + $0xb0] sm:$0xff]  ;;  %v2277_v34 = vpack.c.bf16 %v1387_v31, %v1383_v29  ;;  %v1392_v35 = vld [vmem:[#allocation5 + $0xc8] sm:$0xff]  ;;  %v1394_v37 = vld [vmem:[#allocation5 + $0xd8] sm:$0xff] }
  0x9a   : > { %2274 = vmatpush1.bf16.msra.mxu0 %v2273_v21  ;;  %v1396_v36 = vld [vmem:[#allocation5 + $0xe8] sm:$0xff]  ;;  %v2341_v38 = vpack.c.bf16 %v1389_v33, %v1385_v32  ;;  %v1398_v40 = vld [vmem:[#allocation5 + $0xf8] sm:$0xff]  ;;  %v1391_v41 = vld [vmem:[#allocation5 + $0xc0] sm:$0xff] }
  0x9b   : > { %2338 = vmatpush1.bf16.msra.mxu1 %v2337_v25  ;;  %2276 = vmatprep.subr.bf16.mxu0 %v2275_v26  ;;  %v2279_v39 = vpack.c.bf16 %v1396_v36, %v1392_v35  ;;  %v1395_v42 = vld [vmem:[#allocation5 + $0xe0] sm:$0xff]  ;;  %v2343_v43 = vpack.c.bf16 %v1398_v40, %v1394_v37  ;;  %v1393_v44 = vld [vmem:[#allocation5 + $0xd0] sm:$0xff]  ;;  %v1400_v46 = vld [vmem:[#allocation5 + $0x108] sm:$0xff] }
  0x9c   : > { %2340 = vmatprep.subr.bf16.mxu1 %v2339_v30  ;;  %v1397_v45 = vld [vmem:[#allocation5 + $0xf0] sm:$0xff]  ;;  %v1404_v47 = vld [vmem:[#allocation5 + $0x128] sm:$0xff]  ;;  %v1402_v48 = vld [vmem:[#allocation5 + $0x118] sm:$0xff]  ;;  %v2281_v50 = vpack.c.bf16 %v1395_v42, %v1391_v41 }
  0x9d   : > { %v1406_v49 = vld [vmem:[#allocation5 + $0x138] sm:$0xff]  ;;  %v2345_v51 = vpack.c.bf16 %v1397_v45, %v1393_v44  ;;  %v2283_v52 = vpack.c.bf16 %v1404_v47, %v1400_v46  ;;  %v1399_v53 = vld [vmem:[#allocation5 + $0x100] sm:$0xff]  ;;  %v1401_v55 = vld [vmem:[#allocation5 + $0x110] sm:$0xff] }
  0x9e   : > { %2278 = vmatpush1.bf16.msra.mxu0 %v2277_v34  ;;  %v1403_v54 = vld [vmem:[#allocation5 + $0x120] sm:$0xff]  ;;  %v2347_v56 = vpack.c.bf16 %v1406_v49, %v1402_v48  ;;  %v1405_v57 = vld [vmem:[#allocation5 + $0x130] sm:$0xff]  ;;  %v1408_v58 = vld [vmem:[#allocation5 + $0x148] sm:$0xff] }
  0x9f   : > { %2342 = vmatpush1.bf16.msra.mxu1 %v2341_v38  ;;  %2280 = vmatprep.subr.bf16.mxu0 %v2279_v39  ;;  %v1412_v59 = vld [vmem:[#allocation5 + $0x168] sm:$0xff]  ;;  %v1410_v60 = vld [vmem:[#allocation5 + $0x158] sm:$0xff]  ;;  %v2285_v62 = vpack.c.bf16 %v1403_v54, %v1399_v53  ;;  %v2349_v63 = vpack.c.bf16 %v1405_v57, %v1401_v55  ;;  %v1407_v1 = vld [vmem:[#allocation5 + $0x140] sm:$0xff] }
  0xa0   : > { %2344 = vmatprep.subr.bf16.mxu1 %v2343_v43  ;;  %v1414_v61 = vld [vmem:[#allocation5 + $0x178] sm:$0xff]  ;;  %v2287_v0 = vpack.c.bf16 %v1412_v59, %v1408_v58  ;;  %v1411_v2 = vld [vmem:[#allocation5 + $0x160] sm:$0xff]  ;;  %v1409_v3 = vld [vmem:[#allocation5 + $0x150] sm:$0xff] }
  0xa1   : > { %v2351_v4 = vpack.c.bf16 %v1414_v61, %v1410_v60  ;;  %v1413_v5 = vld [vmem:[#allocation5 + $0x170] sm:$0xff]  ;;  %v1416_v6 = vld [vmem:[#allocation5 + $0x188] sm:$0xff]  ;;  %v1418_v8 = vld [vmem:[#allocation5 + $0x198] sm:$0xff]  ;;  %v2289_v10 = vpack.c.bf16 %v1411_v2, %v1407_v1 }
  0xa2   : > { %2282 = vmatpush1.bf16.msra.mxu0 %v2281_v50  ;;  %v1420_v7 = vld [vmem:[#allocation5 + $0x1a8] sm:$0xff]  ;;  %v1422_v9 = vld [vmem:[#allocation5 + $0x1b8] sm:$0xff]  ;;  %v2353_v11 = vpack.c.bf16 %v1413_v5, %v1409_v3  ;;  %v1415_v13 = vld [vmem:[#allocation5 + $0x180] sm:$0xff] }
  0xa3   : > { %2346 = vmatpush1.bf16.msra.mxu1 %v2345_v51  ;;  %2284 = vmatprep.subr.bf16.mxu0 %v2283_v52  ;;  %v2291_v12 = vpack.c.bf16 %v1420_v7, %v1416_v6  ;;  %v1419_v14 = vld [vmem:[#allocation5 + $0x1a0] sm:$0xff]  ;;  %v1417_v15 = vld [vmem:[#allocation5 + $0x190] sm:$0xff]  ;;  %v2355_v16 = vpack.c.bf16 %v1422_v9, %v1418_v8  ;;  %v1424_v18 = vld [vmem:[#allocation5 + $0x1c8] sm:$0xff] }
  0xa4   : > { %2348 = vmatprep.subr.bf16.mxu1 %v2347_v56  ;;  %v1421_v17 = vld [vmem:[#allocation5 + $0x1b0] sm:$0xff]  ;;  %v1428_v19 = vld [vmem:[#allocation5 + $0x1e8] sm:$0xff]  ;;  %v1426_v20 = vld [vmem:[#allocation5 + $0x1d8] sm:$0xff]  ;;  %v2293_v22 = vpack.c.bf16 %v1419_v14, %v1415_v13 }
  0xa5   : > { %v1430_v21 = vld [vmem:[#allocation5 + $0x1f8] sm:$0xff]  ;;  %v2357_v23 = vpack.c.bf16 %v1421_v17, %v1417_v15  ;;  %v2295_v24 = vpack.c.bf16 %v1428_v19, %v1424_v18  ;;  %v1423_v25 = vld [vmem:[#allocation5 + $0x1c0] sm:$0xff]  ;;  %v1425_v27 = vld [vmem:[#allocation5 + $0x1d0] sm:$0xff] }
  0xa6   : > { %2286 = vmatpush1.bf16.msra.mxu0 %v2285_v62  ;;  %v1427_v26 = vld [vmem:[#allocation5 + $0x1e0] sm:$0xff]  ;;  %v2359_v28 = vpack.c.bf16 %v1430_v21, %v1426_v20  ;;  %v1429_v29 = vld [vmem:[#allocation5 + $0x1f0] sm:$0xff]  ;;  %v1432_v30 = vld [vmem:[#allocation5 + $0x208] sm:$0xff] }
  0xa7   : > { %2350 = vmatpush1.bf16.msra.mxu1 %v2349_v63  ;;  %2288 = vmatprep.subr.bf16.mxu0 %v2287_v0  ;;  %v1436_v31 = vld [vmem:[#allocation5 + $0x228] sm:$0xff]  ;;  %v1434_v32 = vld [vmem:[#allocation5 + $0x218] sm:$0xff]  ;;  %v2297_v34 = vpack.c.bf16 %v1427_v26, %v1423_v25  ;;  %v1431_v35 = vld [vmem:[#allocation5 + $0x200] sm:$0xff]  ;;  %v2361_v36 = vpack.c.bf16 %v1429_v29, %v1425_v27 }
  0xa8   : > { %2352 = vmatprep.subr.bf16.mxu1 %v2351_v4  ;;  %v1438_v33 = vld [vmem:[#allocation5 + $0x238] sm:$0xff]  ;;  %v2299_v37 = vpack.c.bf16 %v1436_v31, %v1432_v30  ;;  %v1435_v38 = vld [vmem:[#allocation5 + $0x220] sm:$0xff]  ;;  %v1433_v39 = vld [vmem:[#allocation5 + $0x210] sm:$0xff] }
  0xa9   : > { %v1437_v40 = vld [vmem:[#allocation5 + $0x230] sm:$0xff]  ;;  %v2363_v41 = vpack.c.bf16 %v1438_v33, %v1434_v32  ;;  %v1440_v42 = vld [vmem:[#allocation5 + $0x248] sm:$0xff]  ;;  %v1442_v44 = vld [vmem:[#allocation5 + $0x258] sm:$0xff]  ;;  %v2301_v48 = vpack.c.bf16 %v1435_v38, %v1431_v35 }
  0xaa   : > { %2290 = vmatpush1.bf16.msra.mxu0 %v2289_v10  ;;  %v1444_v43 = vld [vmem:[#allocation5 + $0x268] sm:$0xff]  ;;  %v1446_v45 = vld [vmem:[#allocation5 + $0x278] sm:$0xff]  ;;  %v3021_v46 = vld [vmem:[#allocation5 + $0x240] sm:$0xff]  ;;  %v2365_v53 = vpack.c.bf16 %v1437_v40, %v1433_v39 }
  0xab   : > { %2354 = vmatpush1.bf16.msra.mxu1 %v2353_v11  ;;  %2292 = vmatprep.subr.bf16.mxu0 %v2291_v12  ;;  %v3023_v47 = vld [vmem:[#allocation5 + $0x260] sm:$0xff]  ;;  %v3025_v49 = vld [vmem:[#allocation5 + $0x250] sm:$0xff]  ;;  %v3029_v51 = vld [vmem:[#allocation5 + $0x288] sm:$0xff]  ;;  %v2303_v54 = vpack.c.bf16 %v1444_v43, %v1440_v42  ;;  %v2367_v63 = vpack.c.bf16 %v1446_v45, %v1442_v44 }
  0xac   : > { %2356 = vmatprep.subr.bf16.mxu1 %v2355_v16  ;;  %v3027_v50 = vld [vmem:[#allocation5 + $0x270] sm:$0xff]  ;;  %v3031_v52 = vld [vmem:[#allocation5 + $0x2a8] sm:$0xff]  ;;  %v3033_v55 = vld [vmem:[#allocation5 + $0x298] sm:$0xff]  ;;  %v2305_v16 = vpack.c.bf16 %v3023_v47, %v3021_v46 }
  0xad   : > { %v3035_v56 = vld [vmem:[#allocation5 + $0x2b8] sm:$0xff]  ;;  %v3037_v57 = vld [vmem:[#allocation5 + $0x280] sm:$0xff]  ;;  %v3041_v59 = vld [vmem:[#allocation5 + $0x290] sm:$0xff] }
  0xae   : > { %2294 = vmatpush1.bf16.msra.mxu0 %v2293_v22  ;;  %v3039_v58 = vld [vmem:[#allocation5 + $0x2a0] sm:$0xff]  ;;  %v3043_v60 = vld [vmem:[#allocation5 + $0x2b0] sm:$0xff]  ;;  %v3045_v61 = vld [vmem:[#allocation5 + $0x2c8] sm:$0xff]  ;;  %v2369_v22 = vpack.c.bf16 %v3027_v50, %v3025_v49  ;;  %v2371_v27 = vpack.c.bf16 %v3035_v56, %v3033_v55 }
  0xaf   : > { %2358 = vmatpush1.bf16.msra.mxu1 %v2357_v23  ;;  %2296 = vmatprep.subr.bf16.mxu0 %v2295_v24  ;;  %v3047_v62 = vld [vmem:[#allocation5 + $0x2e8] sm:$0xff]  ;;  %v3049_v0 = vld [vmem:[#allocation5 + $0x2d8] sm:$0xff]  ;;  %v3053_v2 = vld [vmem:[#allocation5 + $0x2c0] sm:$0xff]  ;;  %v2307_v23 = vpack.c.bf16 %v3031_v52, %v3029_v51  ;;  %v2373_v29 = vpack.c.bf16 %v3043_v60, %v3041_v59 }
  0xb0   : > { %2360 = vmatprep.subr.bf16.mxu1 %v2359_v28  ;;  %v3051_v1 = vld [vmem:[#allocation5 + $0x2f8] sm:$0xff]  ;;  %v3055_v3 = vld [vmem:[#allocation5 + $0x2e0] sm:$0xff]  ;;  %v3057_v4 = vld [vmem:[#allocation5 + $0x2d0] sm:$0xff]  ;;  %v2309_v28 = vpack.c.bf16 %v3039_v58, %v3037_v57  ;;  %v2311_v30 = vpack.c.bf16 %v3047_v62, %v3045_v61 }
  0xb1   : > { %v3059_v5 = vld [vmem:[#allocation5 + $0x2f0] sm:$0xff]  ;;  %v3061_v6 = vld [vmem:[#allocation5 + $0x308] sm:$0xff]  ;;  %v3065_v8 = vld [vmem:[#allocation5 + $0x318] sm:$0xff]  ;;  %v2313_v35 = vpack.c.bf16 %v3055_v3, %v3053_v2 }
  0xb2   : > { %2298 = vmatpush1.bf16.msra.mxu0 %v2297_v34  ;;  %v3063_v7 = vld [vmem:[#allocation5 + $0x328] sm:$0xff]  ;;  %v3067_v9 = vld [vmem:[#allocation5 + $0x338] sm:$0xff]  ;;  %v3069_v10 = vld [vmem:[#allocation5 + $0x300] sm:$0xff]  ;;  %v2375_v34 = vpack.c.bf16 %v3051_v1, %v3049_v0 }
  0xb3   : > { %2362 = vmatpush1.bf16.msra.mxu1 %v2361_v36  ;;  %2300 = vmatprep.subr.bf16.mxu0 %v2299_v37  ;;  %v3071_v11 = vld [vmem:[#allocation5 + $0x320] sm:$0xff]  ;;  %v3073_v12 = vld [vmem:[#allocation5 + $0x310] sm:$0xff]  ;;  %v3077_v14 = vld [vmem:[#allocation5 + $0x348] sm:$0xff] }
  0xb4   : > { %2364 = vmatprep.subr.bf16.mxu1 %v2363_v41  ;;  %v3075_v13 = vld [vmem:[#allocation5 + $0x330] sm:$0xff]  ;;  %v3079_v15 = vld [vmem:[#allocation5 + $0x368] sm:$0xff]  ;;  %v3083_v17 = vld [vmem:[#allocation5 + $0x358] sm:$0xff] }
  0xb5   : > { %v3085_v18 = vld [vmem:[#allocation5 + $0x378] sm:$0xff]  ;;  %v3087_v19 = vld [vmem:[#allocation5 + $0x340] sm:$0xff]  ;;  %v3091_v21 = vld [vmem:[#allocation5 + $0x350] sm:$0xff] }
  0xb6   : > { %2302 = vmatpush1.bf16.msra.mxu0 %v2301_v48  ;;  %v3089_v20 = vld [vmem:[#allocation5 + $0x360] sm:$0xff]  ;;  %v3097_v24 = vld [vmem:[#allocation5 + $0x370] sm:$0xff]  ;;  %v3099_v25 = vld [vmem:[#allocation5 + $0x388] sm:$0xff] }
  0xb7   : > { %2366 = vmatpush1.bf16.msra.mxu1 %v2365_v53  ;;  %2304 = vmatprep.subr.bf16.mxu0 %v2303_v54  ;;  %v3101_v26 = vld [vmem:[#allocation5 + $0x3a8] sm:$0xff]  ;;  %v3111_v31 = vld [vmem:[#allocation5 + $0x398] sm:$0xff]  ;;  %v3115_v33 = vld [vmem:[#allocation5 + $0x380] sm:$0xff] }
  0xb8   : > { %2368 = vmatprep.subr.bf16.mxu1 %v2367_v63  ;;  %v3113_v32 = vld [vmem:[#allocation5 + $0x3b8] sm:$0xff]  ;;  %v3125_v38 = vld [vmem:[#allocation5 + $0x3a0] sm:$0xff]  ;;  %v3127_v39 = vld [vmem:[#allocation5 + $0x390] sm:$0xff] }
  0xb9   : > { %v3129_v40 = vld [vmem:[#allocation5 + $0x3b0] sm:$0xff]  ;;  %v3139_v45 = vld [vmem:[#allocation5 + $0x3c8] sm:$0xff]  ;;  %v3143_v47 = vld [vmem:[#allocation5 + $0x3d8] sm:$0xff] }
  0xba   : > { %2306 = vmatpush1.bf16.msra.mxu0 %v2305_v16  ;;  %v3141_v46 = vld [vmem:[#allocation5 + $0x3e8] sm:$0xff]  ;;  %v3151_v51 = vld [vmem:[#allocation5 + $0x3f8] sm:$0xff]  ;;  %v3153_v52 = vld [vmem:[#allocation5 + $0x3c0] sm:$0xff] }
  0xbb   : > { %2370 = vmatpush1.bf16.msra.mxu1 %v2369_v22  ;;  %2308 = vmatprep.subr.bf16.mxu0 %v2307_v23  ;;  %v3155_v53 = vld [vmem:[#allocation5 + $0x3e0] sm:$0xff]  ;;  %v3165_v58 = vld [vmem:[#allocation5 + $0x3d0] sm:$0xff]  ;;  %v344_v60 = vld [vmem:[%s3007_s21 + $0x8] sm:$0xff] }
  0xbc   : > { %2372 = vmatprep.subr.bf16.mxu1 %v2371_v27  ;;  %3770 = vst [vmem:[#allocation16_spill] sm:$0xff] %v3165_v58  ;;  %v3167_v59 = vld [vmem:[#allocation5 + $0x3f0] sm:$0xff]  ;;  %v346_v0 = vld [vmem:[%s3007_s21 + $0x88] sm:$0xff]  ;;  %v365_v3 = vrot.slane %v344_v60, 4 }
  0xbd   : > { %v348_v1 = vld [vmem:[%s3007_s21 + $0x108] sm:$0xff]  ;;  %v377_v57 = vrot.slane %v346_v0, 4 }
  0xbe   : > { %v350_v2 = vld [vmem:[%s3007_s21 + $0x188] sm:$0xff]  ;;  %2310 = vmatpush1.bf16.msra.mxu0 %v2309_v28  ;;  %v389_v61 = vrot.slane %v348_v1, 4  ;;  %v366_v55 = vadd.f32 %v365_v3, %v344_v60  ;;  %v482_v3 = vld [vmem:[%s3007_s21 + $0x298] sm:$0xff] }
  0xbf   : > { %v352_v22 = vld [vmem:[%s3007_s21 + $0x208] sm:$0xff]  ;;  %v401_v56 = vrot.slane %v350_v2, 4  ;;  %2374 = vmatpush1.bf16.msra.mxu1 %v2373_v29  ;;  %2312 = vmatprep.subr.bf16.mxu0 %v2311_v30  ;;  %v378_v49 = vadd.f32 %v377_v57, %v346_v0  ;;  %v3771_v30 = vpack.c.bf16 %v3059_v5, %v3057_v4 }
  0xc0   : > { %v354_v23 = vld [vmem:[%s3007_s21 + $0x288] sm:$0xff]  ;;  %v413_v54 = vrot.slane %v352_v22, 4  ;;  %2376 = vmatprep.subr.bf16.mxu1 %v2375_v34  ;;  %v390_v48 = vadd.f32 %v389_v61, %v348_v1  ;;  %v367_v43 = vrot.slane %v366_v55, 2  ;;  %v3772_v34 = vpack.c.bf16 %v3063_v7, %v3061_v6 }
  0xc1   : > { %v356_v27 = vld [vmem:[%s3007_s21 + $0x308] sm:$0xff]  ;;  %v425_v63 = vrot.slane %v354_v23, 4  ;;  %v402_v28 = vadd.f32 %v401_v56, %v350_v2  ;;  %v379_v37 = vrot.slane %v378_v49, 2  ;;  %v3774_v7 = vpack.c.bf16 %v3071_v11, %v3069_v10  ;;  %v480_v2 = vld [vmem:[%s3007_s21 + $0x218] sm:$0xff] }
  0xc2   : > { %v358_v62 = vld [vmem:[%s3007_s21 + $0x388] sm:$0xff]  ;;  %v437_v50 = vrot.slane %v356_v27, 4  ;;  %v414_v16 = vadd.f32 %v413_v54, %v352_v22  ;;  %2314 = vmatpush1.bf16.msra.mxu0 %v2313_v35  ;;  %v391_v36 = vrot.slane %v390_v48, 2  ;;  %v368_v57 = vadd.f32 %v367_v43, %v366_v55 }
  0xc3   : > { %v449_v44 = vrot.slane %v358_v62, 4  ;;  %v426_v42 = vadd.f32 %v425_v63, %v354_v23  ;;  %v403_v58 = vrot.slane %v402_v28, 2  ;;  %2378 = vmatpush1.bf16.msra.mxu1 %v3771_v30  ;;  %2316 = vmatprep.subr.bf16.mxu0 %v3772_v34  ;;  %v3773_v35 = vpack.c.bf16 %v3067_v9, %v3065_v8  ;;  %v472_v9 = vld [vmem:[%s3007_s21 + $0x18] sm:$0xff] }
  0xc4   : > { %v438_v41 = vadd.f32 %v437_v50, %v356_v27  ;;  %v415_v56 = vrot.slane %v414_v16, 2  ;;  %v380_v50 = vadd.f32 %v379_v37, %v378_v49  ;;  %v392_v61 = vadd.f32 %v391_v36, %v390_v48  ;;  %v474_v48 = vld [vmem:[%s3007_s21 + $0x98] sm:$0xff] }
  0xc5   : > { %v450_v29 = vadd.f32 %v449_v44, %v358_v62  ;;  %v427_v60 = vrot.slane %v426_v42, 2  ;;  %2380 = vmatprep.subr.bf16.mxu1 %v3773_v35  ;;  %v404_v44 = vadd.f32 %v403_v58, %v402_v28  ;;  %v369_v63 = vrot.slane %v368_v57, 1  ;;  %v476_v49 = vld [vmem:[%s3007_s21 + $0x118] sm:$0xff] }
  0xc6   : > { %v439_v54 = vrot.slane %v438_v41, 2  ;;  %v416_v4 = vadd.f32 %v415_v56, %v414_v16  ;;  %2318 = vmatpush1.bf16.msra.mxu0 %v3774_v7  ;;  %v381_v43 = vrot.slane %v380_v50, 1  ;;  %v393_v55 = vrot.slane %v392_v61, 1  ;;  %v478_v58 = vld [vmem:[%s3007_s21 + $0x198] sm:$0xff] }
  0xc7   : > { %v451_v62 = vrot.slane %v450_v29, 2  ;;  %v428_v5 = vadd.f32 %v427_v60, %v426_v42  ;;  %v405_v0 = vrot.slane %v404_v44, 1  ;;  %v3775_v36 = vpack.c.bf16 %v3075_v13, %v3073_v12  ;;  %v484_v16 = vld [vmem:[%s3007_s21 + $0x318] sm:$0xff] }
  0xc8   : > { %v440_v6 = vadd.f32 %v439_v54, %v438_v41  ;;  %v3776_v37 = vpack.c.bf16 %v3079_v15, %v3077_v14  ;;  %v3204_v41 = vadd.f32 %v369_v63, %v368_v57  ;;  %v417_v10 = vrot.slane %v416_v4, 1  ;;  %v486_v28 = vld [vmem:[%s3007_s21 + $0x398] sm:$0xff] }
  0xc9   : > { %v452_v8 = vadd.f32 %v451_v62, %v450_v29  ;;  %2382 = vmatpush1.bf16.msra.mxu1 %v3775_v36  ;;  %v429_v11 = vrot.slane %v428_v5, 1  ;;  %v3777_v1 = vpack.c.bf16 %v3085_v18, %v3083_v17  ;;  %v3212_v12 = vadd.f32 %v381_v43, %v380_v50 }
  0xca   : > { %2320 = vmatprep.subr.bf16.mxu0 %v3776_v37  ;;  %v441_v42 = vrot.slane %v440_v6, 1  ;;  %v3214_v13 = vadd.f32 %v393_v55, %v392_v61  ;;  %v3216_v14 = vadd.f32 %v405_v0, %v404_v44  ;;  %v3221_v22 = vadd.f32 %v417_v10, %v416_v4 }
  0xcb   : > { %2384 = vmatprep.subr.bf16.mxu1 %v3777_v1  ;;  %v453_v15 = vrot.slane %v452_v8, 1  ;;  %v3223_v23 = vadd.f32 %v429_v11, %v428_v5  ;;  %v493_v29 = vrot.slane %v472_v9, 4  ;;  %v3778_v17 = vpack.c.bf16 %v3089_v20, %v3087_v19 }
  0xcc   : > { %v3225_v27 = vadd.f32 %v441_v42, %v440_v6  ;;  %v505_v30 = vrot.slane %v474_v48, 4  ;;  %v517_v34 = vrot.slane %v476_v49, 4  ;;  %v529_v57 = vrot.slane %v478_v58, 4 }
  0xcd   : > { %2322 = vmatpush1.bf16.msra.mxu0 %v3778_v17  ;;  %v3231_v18 = vadd.f32 %v453_v15, %v452_v8  ;;  %v3779_v56 = vpack.c.bf16 %v3097_v24, %v3091_v21  ;;  %v3780_v60 = vpack.c.bf16 %v3101_v26, %v3099_v25  ;;  %v494_v54 = vadd.f32 %v493_v29, %v472_v9  ;;  %v600_v29 = vld [vmem:[%s3007_s21 + $0x28] sm:$0xff] }
  0xce   : > { %v541_v35 = vrot.slane %v480_v2, 4  ;;  %v553_v50 = vrot.slane %v482_v3, 4  ;;  %v565_v61 = vrot.slane %v484_v16, 4  ;;  %v3781_v19 = vpack.c.bf16 %v3113_v32, %v3111_v31 }
  0xcf   : > { %2386 = vmatpush1.bf16.msra.mxu1 %v3779_v56  ;;  %2324 = vmatprep.subr.bf16.mxu0 %v3780_v60  ;;  %v506_v20 = vadd.f32 %v505_v30, %v474_v48  ;;  %v518_v44 = vadd.f32 %v517_v34, %v476_v49  ;;  %v530_v62 = vadd.f32 %v529_v57, %v478_v58  ;;  %v577_v63 = vrot.slane %v486_v28, 4  ;;  %v602_v57 = vld [vmem:[%s3007_s21 + $0xa8] sm:$0xff] }
  0xd0   : > { %2388 = vmatprep.subr.bf16.mxu1 %v3781_v19  ;;  %v495_v4 = vrot.slane %v494_v54, 2  ;;  %v542_v5 = vadd.f32 %v541_v35, %v480_v2  ;;  %v554_v21 = vadd.f32 %v553_v50, %v482_v3  ;;  %v566_v24 = vadd.f32 %v565_v61, %v484_v16  ;;  %v604_v56 = vld [vmem:[%s3007_s21 + $0x128] sm:$0xff] }
  0xd1   : > { %v3782_v25 = vpack.c.bf16 %v3125_v38, %v3115_v33  ;;  %v507_v26 = vrot.slane %v506_v20, 2  ;;  %v519_v6 = vrot.slane %v518_v44, 2  ;;  %v531_v7 = vrot.slane %v530_v62, 2  ;;  %v606_v60 = vld [vmem:[%s3007_s21 + $0x1a8] sm:$0xff] }
  0xd2   : > { %v578_v43 = vadd.f32 %v577_v63, %v486_v28  ;;  %v3783_v31 = vpack.c.bf16 %v3129_v40, %v3127_v39  ;;  %v3784_v32 = vpack.c.bf16 %v3141_v46, %v3139_v45  ;;  %v496_v55 = vadd.f32 %v495_v4, %v494_v54  ;;  %v608_v19 = vld [vmem:[%s3007_s21 + $0x228] sm:$0xff] }
  0xd3   : > { %2326 = vmatpush1.bf16.msra.mxu0 %v3782_v25  ;;  %v543_v0 = vrot.slane %v542_v5, 2  ;;  %v555_v8 = vrot.slane %v554_v21, 2  ;;  %v567_v9 = vrot.slane %v566_v24, 2  ;;  %v3785_v33 = vpack.c.bf16 %v3151_v51, %v3143_v47  ;;  %v3787_v47 = vld [vmem:[#allocation16_spill] sm:$0xff] }
  0xd4   : > { %2390 = vmatpush1.bf16.msra.mxu1 %v3783_v31  ;;  %2328 = vmatprep.subr.bf16.mxu0 %v3784_v32  ;;  %v508_v38 = vadd.f32 %v507_v26, %v506_v20  ;;  %v520_v36 = vadd.f32 %v519_v6, %v518_v44  ;;  %v532_v37 = vadd.f32 %v531_v7, %v530_v62  ;;  %v579_v10 = vrot.slane %v578_v43, 2  ;;  %v610_v20 = vld [vmem:[%s3007_s21 + $0x2a8] sm:$0xff] }
  0xd5   : > { %2392 = vmatprep.subr.bf16.mxu1 %v3785_v33  ;;  %v497_v11 = vrot.slane %v496_v55, 1  ;;  %v544_v42 = vadd.f32 %v543_v0, %v542_v5  ;;  %v556_v39 = vadd.f32 %v555_v8, %v554_v21  ;;  %v568_v40 = vadd.f32 %v567_v9, %v566_v24  ;;  %v612_v44 = vld [vmem:[%s3007_s21 + $0x328] sm:$0xff] }
  0xd6   : > { %v3786_v45 = vpack.c.bf16 %v3155_v53, %v3153_v52  ;;  %v509_v46 = vrot.slane %v508_v38, 1  ;;  %v521_v48 = vrot.slane %v520_v36, 1  ;;  %v533_v49 = vrot.slane %v532_v37, 1 }
  0xd7   : > { %v580_v58 = vadd.f32 %v579_v10, %v578_v43  ;;  %v3788_v51 = vpack.c.bf16 %v3167_v59, %v3787_v47  ;;  %v498_v1 = vadd.f32 %v497_v11, %v496_v55  ;;  %v545_v15 = vrot.slane %v544_v42, 1 }
  0xd8   : > { %2330 = vmatpush1.bf16.msra.mxu0 %v3786_v45  ;;  %v557_v2 = vrot.slane %v556_v39, 1  ;;  %v569_v3 = vrot.slane %v568_v40, 1  ;;  %v510_v16 = vadd.f32 %v509_v46, %v508_v38  ;;  %v522_v28 = vadd.f32 %v521_v48, %v520_v36 }
  0xd9   : > { %2394 = vmatpush1.bf16.msra.mxu1 %v3788_v51  ;;  %v534_v52 = vadd.f32 %v533_v49, %v532_v37  ;;  %v581_v53 = vrot.slane %v580_v58, 1  ;;  %v546_v17 = vadd.f32 %v545_v15, %v544_v42  ;;  %v3262_v59 = vadd.f32 %v498_v1, %v3204_v41 }
  0xda   : > { %v558_v30 = vadd.f32 %v557_v2, %v556_v39  ;;  %v570_v34 = vadd.f32 %v569_v3, %v568_v40  ;;  %v3268_v35 = vadd.f32 %v510_v16, %v3212_v12  ;;  %v3271_v50 = vadd.f32 %v522_v28, %v3214_v13  ;;  %v614_v12 = vld [vmem:[%s3007_s21 + $0x3a8] sm:$0xff] }
  0xdb   : > { %v582_v54 = vadd.f32 %v581_v53, %v580_v58  ;;  %v3274_v61 = vadd.f32 %v534_v52, %v3216_v14  ;;  %v3280_v62 = vadd.f32 %v546_v17, %v3221_v22  ;;  %v621_v4 = vrot.slane %v600_v29, 4 }
  0xdc   : > { %v3283_v41 = vadd.f32 %v558_v30, %v3223_v23  ;;  %v3286_v63 = vadd.f32 %v570_v34, %v3225_v27  ;;  %v633_v5 = vrot.slane %v602_v57, 4  ;;  %v645_v14 = vrot.slane %v604_v56, 4 }
  0xdd   : > { %v3290_v13 = vadd.f32 %v582_v54, %v3231_v18  ;;  %v657_v21 = vrot.slane %v606_v60, 4  ;;  %v622_v24 = vadd.f32 %v621_v4, %v600_v29  ;;  %v669_v25 = vrot.slane %v608_v19, 4  ;;  %v728_v29 = vld [vmem:[%s3007_s21 + $0x38] sm:$0xff] }
  0xde   : > { %v681_v26 = vrot.slane %v610_v20, 4  ;;  %v693_v6 = vrot.slane %v612_v44, 4  ;;  %v634_v22 = vadd.f32 %v633_v5, %v602_v57  ;;  %v646_v7 = vadd.f32 %v645_v14, %v604_v56  ;;  %v730_v56 = vld [vmem:[%s3007_s21 + $0xb8] sm:$0xff] }
  0xdf   : > { %v658_v43 = vadd.f32 %v657_v21, %v606_v60  ;;  %v705_v23 = vrot.slane %v614_v12, 4  ;;  %v623_v31 = vrot.slane %v622_v24, 2  ;;  %v670_v32 = vadd.f32 %v669_v25, %v608_v19  ;;  %v732_v60 = vld [vmem:[%s3007_s21 + $0x138] sm:$0xff] }
  0xe0   : > { %v682_v27 = vadd.f32 %v681_v26, %v610_v20  ;;  %v694_v55 = vadd.f32 %v693_v6, %v612_v44  ;;  %v635_v0 = vrot.slane %v634_v22, 2  ;;  %v647_v8 = vrot.slane %v646_v7, 2  ;;  %v734_v54 = vld [vmem:[%s3007_s21 + $0x1b8] sm:$0xff] }
  0xe1   : > { %v659_v9 = vrot.slane %v658_v43, 2  ;;  %v706_v18 = vadd.f32 %v705_v23, %v614_v12  ;;  %v624_v33 = vadd.f32 %v623_v31, %v622_v24  ;;  %v671_v38 = vrot.slane %v670_v32, 2  ;;  %v736_v4 = vld [vmem:[%s3007_s21 + $0x238] sm:$0xff] }
  0xe2   : > { %v683_v36 = vrot.slane %v682_v27, 2  ;;  %v695_v37 = vrot.slane %v694_v55, 2  ;;  %v636_v10 = vadd.f32 %v635_v0, %v634_v22  ;;  %v648_v11 = vadd.f32 %v647_v8, %v646_v7  ;;  %v738_v5 = vld [vmem:[%s3007_s21 + $0x2b8] sm:$0xff] }
  0xe3   : > { %v660_v42 = vadd.f32 %v659_v9, %v658_v43  ;;  %v707_v39 = vrot.slane %v706_v18, 2  ;;  %v625_v40 = vrot.slane %v624_v33, 1  ;;  %v672_v45 = vadd.f32 %v671_v38, %v670_v32  ;;  %v740_v14 = vld [vmem:[%s3007_s21 + $0x338] sm:$0xff] }
  0xe4   : > { %v684_v46 = vadd.f32 %v683_v36, %v682_v27  ;;  %v696_v48 = vadd.f32 %v695_v37, %v694_v55  ;;  %v637_v49 = vrot.slane %v636_v10, 1  ;;  %v649_v58 = vrot.slane %v648_v11, 1 }
  0xe5   : > { %v661_v47 = vrot.slane %v660_v42, 1  ;;  %v708_v51 = vadd.f32 %v707_v39, %v706_v18  ;;  %v626_v1 = vadd.f32 %v625_v40, %v624_v33  ;;  %v673_v15 = vrot.slane %v672_v45, 1 }
  0xe6   : > { %v685_v2 = vrot.slane %v684_v46, 1  ;;  %v697_v3 = vrot.slane %v696_v48, 1  ;;  %v638_v16 = vadd.f32 %v637_v49, %v636_v10  ;;  %v650_v28 = vadd.f32 %v649_v58, %v648_v11 }
  0xe7   : > { %v662_v52 = vadd.f32 %v661_v47, %v660_v42  ;;  %v709_v53 = vrot.slane %v708_v51, 1  ;;  %v674_v17 = vadd.f32 %v673_v15, %v672_v45  ;;  %v3294_v57 = vadd.f32 %v626_v1, %v3262_v59 }
  0xe8   : > { %v686_v30 = vadd.f32 %v685_v2, %v684_v46  ;;  %v698_v34 = vadd.f32 %v697_v3, %v696_v48  ;;  %v3300_v20 = vadd.f32 %v638_v16, %v3268_v35  ;;  %v3303_v44 = vadd.f32 %v650_v28, %v3271_v50  ;;  %v742_v35 = vld [vmem:[%s3007_s21 + $0x3b8] sm:$0xff] }
  0xe9   : > { %v710_v19 = vadd.f32 %v709_v53, %v708_v51  ;;  %v3306_v12 = vadd.f32 %v662_v52, %v3274_v61  ;;  %v3312_v21 = vadd.f32 %v674_v17, %v3280_v62  ;;  %v749_v25 = vrot.slane %v728_v29, 4 }
  0xea   : > { %v3315_v59 = vadd.f32 %v686_v30, %v3283_v41  ;;  %v3318_v24 = vadd.f32 %v698_v34, %v3286_v63  ;;  %v761_v26 = vrot.slane %v730_v56, 4  ;;  %v773_v61 = vrot.slane %v732_v60, 4 }
  0xeb   : > { %v3322_v50 = vadd.f32 %v710_v19, %v3290_v13  ;;  %v785_v6 = vrot.slane %v734_v54, 4  ;;  %v750_v22 = vadd.f32 %v749_v25, %v728_v29  ;;  %v797_v7 = vrot.slane %v736_v4, 4  ;;  %v856_v29 = vld [vmem:[%s3007_s21 + $0x48] sm:$0xff] }
  0xec   : > { %v809_v43 = vrot.slane %v738_v5, 4  ;;  %v821_v23 = vrot.slane %v740_v14, 4  ;;  %v762_v62 = vadd.f32 %v761_v26, %v730_v56  ;;  %v774_v31 = vadd.f32 %v773_v61, %v732_v60  ;;  %v858_v60 = vld [vmem:[%s3007_s21 + $0xc8] sm:$0xff] }
  0xed   : > { %v786_v32 = vadd.f32 %v785_v6, %v734_v54  ;;  %v833_v41 = vrot.slane %v742_v35, 4  ;;  %v751_v27 = vrot.slane %v750_v22, 2  ;;  %v798_v55 = vadd.f32 %v797_v7, %v736_v4  ;;  %v860_v54 = vld [vmem:[%s3007_s21 + $0x148] sm:$0xff] }
  0xee   : > { %v810_v63 = vadd.f32 %v809_v43, %v738_v5  ;;  %v822_v0 = vadd.f32 %v821_v23, %v740_v14  ;;  %v763_v8 = vrot.slane %v762_v62, 2  ;;  %v775_v9 = vrot.slane %v774_v31, 2  ;;  %v862_v19 = vld [vmem:[%s3007_s21 + $0x1c8] sm:$0xff] }
  0xef   : > { %v787_v18 = vrot.slane %v786_v32, 2  ;;  %v834_v13 = vadd.f32 %v833_v41, %v742_v35  ;;  %v752_v33 = vadd.f32 %v751_v27, %v750_v22  ;;  %v799_v38 = vrot.slane %v798_v55, 2  ;;  %v864_v25 = vld [vmem:[%s3007_s21 + $0x248] sm:$0xff] }
  0xf0   : > { %v811_v36 = vrot.slane %v810_v63, 2  ;;  %v823_v37 = vrot.slane %v822_v0, 2  ;;  %v764_v10 = vadd.f32 %v763_v8, %v762_v62  ;;  %v776_v11 = vadd.f32 %v775_v9, %v774_v31  ;;  %v866_v26 = vld [vmem:[%s3007_s21 + $0x2c8] sm:$0xff] }
  0xf1   : > { %v788_v42 = vadd.f32 %v787_v18, %v786_v32  ;;  %v835_v39 = vrot.slane %v834_v13, 2  ;;  %v753_v40 = vrot.slane %v752_v33, 1  ;;  %v800_v45 = vadd.f32 %v799_v38, %v798_v55  ;;  %v868_v61 = vld [vmem:[%s3007_s21 + $0x348] sm:$0xff] }
  0xf2   : > { %v812_v46 = vadd.f32 %v811_v36, %v810_v63  ;;  %v824_v48 = vadd.f32 %v823_v37, %v822_v0  ;;  %v765_v49 = vrot.slane %v764_v10, 1  ;;  %v777_v58 = vrot.slane %v776_v11, 1 }
  0xf3   : > { %v789_v47 = vrot.slane %v788_v42, 1  ;;  %v836_v51 = vadd.f32 %v835_v39, %v834_v13  ;;  %v754_v1 = vadd.f32 %v753_v40, %v752_v33  ;;  %v801_v15 = vrot.slane %v800_v45, 1 }
  0xf4   : > { %v813_v2 = vrot.slane %v812_v46, 1  ;;  %v825_v3 = vrot.slane %v824_v48, 1  ;;  %v766_v16 = vadd.f32 %v765_v49, %v764_v10  ;;  %v778_v28 = vadd.f32 %v777_v58, %v776_v11 }
  0xf5   : > { %v790_v52 = vadd.f32 %v789_v47, %v788_v42  ;;  %v837_v53 = vrot.slane %v836_v51, 1  ;;  %v802_v17 = vadd.f32 %v801_v15, %v800_v45  ;;  %v3326_v56 = vadd.f32 %v754_v1, %v3294_v57 }
  0xf6   : > { %v814_v30 = vadd.f32 %v813_v2, %v812_v46  ;;  %v826_v34 = vadd.f32 %v825_v3, %v824_v48  ;;  %v3332_v5 = vadd.f32 %v766_v16, %v3300_v20  ;;  %v3335_v14 = vadd.f32 %v778_v28, %v3303_v44  ;;  %v870_v20 = vld [vmem:[%s3007_s21 + $0x3c8] sm:$0xff] }
  0xf7   : > { %v838_v4 = vadd.f32 %v837_v53, %v836_v51  ;;  %v3338_v35 = vadd.f32 %v790_v52, %v3306_v12  ;;  %v3344_v6 = vadd.f32 %v802_v17, %v3312_v21  ;;  %v877_v7 = vrot.slane %v856_v29, 4 }
  0xf8   : > { %v3347_v57 = vadd.f32 %v814_v30, %v3315_v59  ;;  %v3350_v22 = vadd.f32 %v826_v34, %v3318_v24  ;;  %v889_v43 = vrot.slane %v858_v60, 4  ;;  %v901_v12 = vrot.slane %v860_v54, 4 }
  0xf9   : > { %v3354_v44 = vadd.f32 %v838_v4, %v3322_v50  ;;  %v913_v23 = vrot.slane %v862_v19, 4  ;;  %v878_v62 = vadd.f32 %v877_v7, %v856_v29  ;;  %v925_v31 = vrot.slane %v864_v25, 4  ;;  %v984_v29 = vld [vmem:[%s3007_s21 + $0x58] sm:$0xff] }
  0xfa   : > { %v937_v32 = vrot.slane %v866_v26, 4  ;;  %v949_v41 = vrot.slane %v868_v61, 4  ;;  %v890_v21 = vadd.f32 %v889_v43, %v858_v60  ;;  %v902_v27 = vadd.f32 %v901_v12, %v860_v54  ;;  %v986_v54 = vld [vmem:[%s3007_s21 + $0xd8] sm:$0xff] }
  0xfb   : > { %v914_v55 = vadd.f32 %v913_v23, %v862_v19  ;;  %v961_v59 = vrot.slane %v870_v20, 4  ;;  %v879_v63 = vrot.slane %v878_v62, 2  ;;  %v926_v0 = vadd.f32 %v925_v31, %v864_v25  ;;  %v988_v19 = vld [vmem:[%s3007_s21 + $0x158] sm:$0xff] }
  0xfc   : > { %v938_v24 = vadd.f32 %v937_v32, %v866_v26  ;;  %v950_v8 = vadd.f32 %v949_v41, %v868_v61  ;;  %v891_v9 = vrot.slane %v890_v21, 2  ;;  %v903_v18 = vrot.slane %v902_v27, 2  ;;  %v990_v4 = vld [vmem:[%s3007_s21 + $0x1d8] sm:$0xff] }
  0xfd   : > { %v915_v13 = vrot.slane %v914_v55, 2  ;;  %v962_v50 = vadd.f32 %v961_v59, %v870_v20  ;;  %v880_v33 = vadd.f32 %v879_v63, %v878_v62  ;;  %v927_v38 = vrot.slane %v926_v0, 2  ;;  %v992_v7 = vld [vmem:[%s3007_s21 + $0x258] sm:$0xff] }
  0xfe   : > { %v939_v36 = vrot.slane %v938_v24, 2  ;;  %v951_v37 = vrot.slane %v950_v8, 2  ;;  %v892_v10 = vadd.f32 %v891_v9, %v890_v21  ;;  %v904_v11 = vadd.f32 %v903_v18, %v902_v27  ;;  %v994_v43 = vld [vmem:[%s3007_s21 + $0x2d8] sm:$0xff] }
  0xff   : > { %v916_v42 = vadd.f32 %v915_v13, %v914_v55  ;;  %v963_v39 = vrot.slane %v962_v50, 2  ;;  %v881_v40 = vrot.slane %v880_v33, 1  ;;  %v928_v45 = vadd.f32 %v927_v38, %v926_v0  ;;  %v996_v12 = vld [vmem:[%s3007_s21 + $0x358] sm:$0xff] }
 0x100   : > { %v940_v46 = vadd.f32 %v939_v36, %v938_v24  ;;  %v952_v48 = vadd.f32 %v951_v37, %v950_v8  ;;  %v893_v49 = vrot.slane %v892_v10, 1  ;;  %v905_v58 = vrot.slane %v904_v11, 1 }
 0x101   : > { %v917_v47 = vrot.slane %v916_v42, 1  ;;  %v964_v51 = vadd.f32 %v963_v39, %v962_v50  ;;  %v882_v1 = vadd.f32 %v881_v40, %v880_v33  ;;  %v929_v15 = vrot.slane %v928_v45, 1 }
 0x102   : > { %v941_v2 = vrot.slane %v940_v46, 1  ;;  %v953_v3 = vrot.slane %v952_v48, 1  ;;  %v894_v16 = vadd.f32 %v893_v49, %v892_v10  ;;  %v906_v28 = vadd.f32 %v905_v58, %v904_v11 }
 0x103   : > { %v918_v52 = vadd.f32 %v917_v47, %v916_v42  ;;  %v965_v53 = vrot.slane %v964_v51, 1  ;;  %v930_v17 = vadd.f32 %v929_v15, %v928_v45  ;;  %v3358_v60 = vadd.f32 %v882_v1, %v3326_v56 }
 0x104   : > { %v942_v30 = vadd.f32 %v941_v2, %v940_v46  ;;  %v954_v34 = vadd.f32 %v953_v3, %v952_v48  ;;  %v3364_v26 = vadd.f32 %v894_v16, %v3332_v5  ;;  %v3367_v61 = vadd.f32 %v906_v28, %v3335_v14  ;;  %v998_v5 = vld [vmem:[%s3007_s21 + $0x3d8] sm:$0xff] }
 0x105   : > { %v966_v25 = vadd.f32 %v965_v53, %v964_v51  ;;  %v3370_v20 = vadd.f32 %v918_v52, %v3338_v35  ;;  %v3376_v23 = vadd.f32 %v930_v17, %v3344_v6  ;;  %v1005_v31 = vrot.slane %v984_v29, 4 }
 0x106   : > { %v3379_v56 = vadd.f32 %v942_v30, %v3347_v57  ;;  %v3382_v62 = vadd.f32 %v954_v34, %v3350_v22  ;;  %v1017_v32 = vrot.slane %v986_v54, 4  ;;  %v1029_v35 = vrot.slane %v988_v19, 4 }
 0x107   : > { %v3386_v14 = vadd.f32 %v966_v25, %v3354_v44  ;;  %v1041_v41 = vrot.slane %v990_v4, 4  ;;  %v1006_v21 = vadd.f32 %v1005_v31, %v984_v29  ;;  %v1053_v27 = vrot.slane %v992_v7, 4  ;;  %v1112_v29 = vld [vmem:[%s3007_s21 + $0x68] sm:$0xff] }
 0x108   : > { %v1065_v55 = vrot.slane %v994_v43, 4  ;;  %v1077_v59 = vrot.slane %v996_v12, 4  ;;  %v1018_v6 = vadd.f32 %v1017_v32, %v986_v54  ;;  %v1030_v63 = vadd.f32 %v1029_v35, %v988_v19  ;;  %v1114_v19 = vld [vmem:[%s3007_s21 + $0xe8] sm:$0xff] }
 0x109   : > { %v1042_v0 = vadd.f32 %v1041_v41, %v990_v4  ;;  %v1089_v57 = vrot.slane %v998_v5, 4  ;;  %v1007_v24 = vrot.slane %v1006_v21, 2  ;;  %v1054_v8 = vadd.f32 %v1053_v27, %v992_v7  ;;  %v1116_v4 = vld [vmem:[%s3007_s21 + $0x168] sm:$0xff] }
 0x10a   : > { %v1066_v22 = vadd.f32 %v1065_v55, %v994_v43  ;;  %v1078_v9 = vadd.f32 %v1077_v59, %v996_v12  ;;  %v1019_v18 = vrot.slane %v1018_v6, 2  ;;  %v1031_v13 = vrot.slane %v1030_v63, 2  ;;  %v1118_v25 = vld [vmem:[%s3007_s21 + $0x1e8] sm:$0xff] }
 0x10b   : > { %v1043_v50 = vrot.slane %v1042_v0, 2  ;;  %v1090_v44 = vadd.f32 %v1089_v57, %v998_v5  ;;  %v1008_v33 = vadd.f32 %v1007_v24, %v1006_v21  ;;  %v1055_v38 = vrot.slane %v1054_v8, 2  ;;  %v1120_v31 = vld [vmem:[%s3007_s21 + $0x268] sm:$0xff] }
 0x10c   : > { %v1067_v36 = vrot.slane %v1066_v22, 2  ;;  %v1079_v37 = vrot.slane %v1078_v9, 2  ;;  %v1020_v10 = vadd.f32 %v1019_v18, %v1018_v6  ;;  %v1032_v11 = vadd.f32 %v1031_v13, %v1030_v63  ;;  %v1122_v32 = vld [vmem:[%s3007_s21 + $0x2e8] sm:$0xff] }
 0x10d   : > { %v1044_v42 = vadd.f32 %v1043_v50, %v1042_v0  ;;  %v1091_v39 = vrot.slane %v1090_v44, 2  ;;  %v1009_v40 = vrot.slane %v1008_v33, 1  ;;  %v1056_v45 = vadd.f32 %v1055_v38, %v1054_v8  ;;  %v1124_v35 = vld [vmem:[%s3007_s21 + $0x368] sm:$0xff] }
 0x10e   : > { %v1068_v46 = vadd.f32 %v1067_v36, %v1066_v22  ;;  %v1080_v48 = vadd.f32 %v1079_v37, %v1078_v9  ;;  %v1021_v49 = vrot.slane %v1020_v10, 1  ;;  %v1033_v58 = vrot.slane %v1032_v11, 1 }
 0x10f   : > { %v1045_v47 = vrot.slane %v1044_v42, 1  ;;  %v1092_v51 = vadd.f32 %v1091_v39, %v1090_v44  ;;  %v1010_v1 = vadd.f32 %v1009_v40, %v1008_v33  ;;  %v1057_v15 = vrot.slane %v1056_v45, 1 }
 0x110   : > { %v1069_v2 = vrot.slane %v1068_v46, 1  ;;  %v1081_v3 = vrot.slane %v1080_v48, 1  ;;  %v1022_v16 = vadd.f32 %v1021_v49, %v1020_v10  ;;  %v1034_v28 = vadd.f32 %v1033_v58, %v1032_v11 }
 0x111   : > { %v1046_v52 = vadd.f32 %v1045_v47, %v1044_v42  ;;  %v1093_v53 = vrot.slane %v1092_v51, 1  ;;  %v1058_v17 = vadd.f32 %v1057_v15, %v1056_v45  ;;  %v3390_v54 = vadd.f32 %v1010_v1, %v3358_v60 }
 0x112   : > { %v1070_v30 = vadd.f32 %v1069_v2, %v1068_v46  ;;  %v1082_v34 = vadd.f32 %v1081_v3, %v1080_v48  ;;  %v3396_v43 = vadd.f32 %v1022_v16, %v3364_v26  ;;  %v3399_v12 = vadd.f32 %v1034_v28, %v3367_v61  ;;  %v1126_v26 = vld [vmem:[%s3007_s21 + $0x3e8] sm:$0xff] }
 0x113   : > { %v1094_v7 = vadd.f32 %v1093_v53, %v1092_v51  ;;  %v3402_v5 = vadd.f32 %v1046_v52, %v3370_v20  ;;  %v3408_v41 = vadd.f32 %v1058_v17, %v3376_v23  ;;  %v1133_v27 = vrot.slane %v1112_v29, 4 }
 0x114   : > { %v3411_v60 = vadd.f32 %v1070_v30, %v3379_v56  ;;  %v3414_v21 = vadd.f32 %v1082_v34, %v3382_v62  ;;  %v1145_v55 = vrot.slane %v1114_v19, 4  ;;  %v1157_v20 = vrot.slane %v1116_v4, 4 }
 0x115   : > { %v3418_v61 = vadd.f32 %v1094_v7, %v3386_v14  ;;  %v1169_v59 = vrot.slane %v1118_v25, 4  ;;  %v1134_v6 = vadd.f32 %v1133_v27, %v1112_v29  ;;  %v1181_v63 = vrot.slane %v1120_v31, 4  ;;  %v1240_v29 = vld [vmem:[%s3007_s21 + $0x78] sm:$0xff] }
 0x116   : > { %v1193_v0 = vrot.slane %v1122_v32, 4  ;;  %v1205_v57 = vrot.slane %v1124_v35, 4  ;;  %v1146_v23 = vadd.f32 %v1145_v55, %v1114_v19  ;;  %v1158_v24 = vadd.f32 %v1157_v20, %v1116_v4  ;;  %v1242_v4 = vld [vmem:[%s3007_s21 + $0xf8] sm:$0xff] }
 0x117   : > { %v1170_v8 = vadd.f32 %v1169_v59, %v1118_v25  ;;  %v1217_v56 = vrot.slane %v1126_v26, 4  ;;  %v1135_v22 = vrot.slane %v1134_v6, 2  ;;  %v1182_v9 = vadd.f32 %v1181_v63, %v1120_v31  ;;  %v1244_v25 = vld [vmem:[%s3007_s21 + $0x178] sm:$0xff] }
 0x118   : > { %v1194_v62 = vadd.f32 %v1193_v0, %v1122_v32  ;;  %v1206_v18 = vadd.f32 %v1205_v57, %v1124_v35  ;;  %v1147_v13 = vrot.slane %v1146_v23, 2  ;;  %v1159_v50 = vrot.slane %v1158_v24, 2  ;;  %v1246_v7 = vld [vmem:[%s3007_s21 + $0x1f8] sm:$0xff] }
 0x119   : > { %v1171_v44 = vrot.slane %v1170_v8, 2  ;;  %v1218_v14 = vadd.f32 %v1217_v56, %v1126_v26  ;;  %v1136_v33 = vadd.f32 %v1135_v22, %v1134_v6  ;;  %v1183_v38 = vrot.slane %v1182_v9, 2  ;;  %v1248_v27 = vld [vmem:[%s3007_s21 + $0x278] sm:$0xff] }
 0x11a   : > { %v1195_v36 = vrot.slane %v1194_v62, 2  ;;  %v1207_v37 = vrot.slane %v1206_v18, 2  ;;  %v1148_v10 = vadd.f32 %v1147_v13, %v1146_v23  ;;  %v1160_v11 = vadd.f32 %v1159_v50, %v1158_v24  ;;  %v1250_v55 = vld [vmem:[%s3007_s21 + $0x2f8] sm:$0xff] }
 0x11b   : > { %v1172_v42 = vadd.f32 %v1171_v44, %v1170_v8  ;;  %v1219_v39 = vrot.slane %v1218_v14, 2  ;;  %v1137_v40 = vrot.slane %v1136_v33, 1  ;;  %v1184_v45 = vadd.f32 %v1183_v38, %v1182_v9  ;;  %v1252_v20 = vld [vmem:[%s3007_s21 + $0x378] sm:$0xff] }
 0x11c   : > { %v1196_v46 = vadd.f32 %v1195_v36, %v1194_v62  ;;  %v1208_v48 = vadd.f32 %v1207_v37, %v1206_v18  ;;  %v1149_v49 = vrot.slane %v1148_v10, 1  ;;  %v1161_v58 = vrot.slane %v1160_v11, 1 }
 0x11d   : > { %v1173_v47 = vrot.slane %v1172_v42, 1  ;;  %v1220_v51 = vadd.f32 %v1219_v39, %v1218_v14  ;;  %v1138_v1 = vadd.f32 %v1137_v40, %v1136_v33  ;;  %v1185_v15 = vrot.slane %v1184_v45, 1 }
 0x11e   : > { %v1197_v2 = vrot.slane %v1196_v46, 1  ;;  %v1209_v3 = vrot.slane %v1208_v48, 1  ;;  %v1150_v16 = vadd.f32 %v1149_v49, %v1148_v10  ;;  %v1162_v28 = vadd.f32 %v1161_v58, %v1160_v11 }
 0x11f   : > { %v1174_v52 = vadd.f32 %v1173_v47, %v1172_v42  ;;  %v1221_v53 = vrot.slane %v1220_v51, 1  ;;  %v1186_v17 = vadd.f32 %v1185_v15, %v1184_v45  ;;  %v3422_v19 = vadd.f32 %v1138_v1, %v3390_v54 }
 0x120   : > { %v1198_v30 = vadd.f32 %v1197_v2, %v1196_v46  ;;  %v1210_v34 = vadd.f32 %v1209_v3, %v1208_v48  ;;  %v3428_v32 = vadd.f32 %v1150_v16, %v3396_v43  ;;  %v3431_v35 = vadd.f32 %v1162_v28, %v3399_v12  ;;  %v1254_v43 = vld [vmem:[%s3007_s21 + $0x3f8] sm:$0xff] }
 0x121   : > { %v1222_v31 = vadd.f32 %v1221_v53, %v1220_v51  ;;  %v3434_v26 = vadd.f32 %v1174_v52, %v3402_v5  ;;  %v3440_v59 = vadd.f32 %v1186_v17, %v3408_v41  ;;  %v1261_v63 = vrot.slane %v1240_v29, 4 }
 0x122   : > { %v3443_v54 = vadd.f32 %v1198_v30, %v3411_v60  ;;  %v3446_v6 = vadd.f32 %v1210_v34, %v3414_v21  ;;  %v1273_v0 = vrot.slane %v1242_v4, 4  ;;  %v1285_v5 = vrot.slane %v1244_v25, 4 }
 0x123   : > { %v3450_v12 = vadd.f32 %v1222_v31, %v3418_v61  ;;  %v1297_v57 = vrot.slane %v1246_v7, 4  ;;  %v1262_v23 = vadd.f32 %v1261_v63, %v1240_v29  ;;  %v1309_v24 = vrot.slane %v1248_v27, 4  ;;  %v343_v29 = vld [vmem:[%s3007_s21] sm:$0xff] }
 0x124   : > { %v1321_v8 = vrot.slane %v1250_v55, 4  ;;  %v1333_v56 = vrot.slane %v1252_v20, 4  ;;  %v1274_v41 = vadd.f32 %v1273_v0, %v1242_v4  ;;  %v1286_v22 = vadd.f32 %v1285_v5, %v1244_v25  ;;  %v345_v25 = vld [vmem:[%s3007_s21 + $0x80] sm:$0xff] }
 0x125   : > { %v1298_v9 = vadd.f32 %v1297_v57, %v1246_v7  ;;  %v1345_v60 = vrot.slane %v1254_v43, 4  ;;  %v1263_v62 = vrot.slane %v1262_v23, 2  ;;  %v1310_v18 = vadd.f32 %v1309_v24, %v1248_v27  ;;  %v347_v7 = vld [vmem:[%s3007_s21 + $0x100] sm:$0xff] }
 0x126   : > { %v1322_v21 = vadd.f32 %v1321_v8, %v1250_v55  ;;  %v1334_v13 = vadd.f32 %v1333_v56, %v1252_v20  ;;  %v1275_v50 = vrot.slane %v1274_v41, 2  ;;  %v1287_v44 = vrot.slane %v1286_v22, 2  ;;  %v351_v63 = vld [vmem:[%s3007_s21 + $0x200] sm:$0xff] }
 0x127   : > { %v1299_v61 = vrot.slane %v1298_v9, 2  ;;  %v1346_v14 = vadd.f32 %v1345_v60, %v1254_v43  ;;  %v1264_v33 = vadd.f32 %v1263_v62, %v1262_v23  ;;  %v1311_v38 = vrot.slane %v1310_v18, 2  ;;  %v349_v43 = vld [vmem:[%s3007_s21 + $0x180] sm:$0xff] }
 0x128   : > { %v1323_v36 = vrot.slane %v1322_v21, 2  ;;  %v1335_v37 = vrot.slane %v1334_v13, 2  ;;  %v1276_v10 = vadd.f32 %v1275_v50, %v1274_v41  ;;  %v1288_v11 = vadd.f32 %v1287_v44, %v1286_v22  ;;  %v353_v23 = vld [vmem:[%s3007_s21 + $0x280] sm:$0xff] }
 0x129   : > { %v1300_v42 = vadd.f32 %v1299_v61, %v1298_v9  ;;  %v1347_v39 = vrot.slane %v1346_v14, 2  ;;  %v1265_v40 = vrot.slane %v1264_v33, 1  ;;  %v1312_v45 = vadd.f32 %v1311_v38, %v1310_v18 }
 0x12a   : > { %v1324_v46 = vadd.f32 %v1323_v36, %v1322_v21  ;;  %v1336_v48 = vadd.f32 %v1335_v37, %v1334_v13  ;;  %v1277_v49 = vrot.slane %v1276_v10, 1  ;;  %v1289_v58 = vrot.slane %v1288_v11, 1  ;;  %v355_v13 = vld [vmem:[%s3007_s21 + $0x300] sm:$0xff] }
 0x12b   : > { %v1301_v47 = vrot.slane %v1300_v42, 1  ;;  %v1348_v51 = vadd.f32 %v1347_v39, %v1346_v14  ;;  %v1266_v1 = vadd.f32 %v1265_v40, %v1264_v33  ;;  %v1313_v15 = vrot.slane %v1312_v45, 1  ;;  %v357_v33 = vld [vmem:[%s3007_s21 + $0x380] sm:$0xff] }
 0x12c   : > { %v1325_v2 = vrot.slane %v1324_v46, 1  ;;  %v1337_v3 = vrot.slane %v1336_v48, 1  ;;  %v1278_v16 = vadd.f32 %v1277_v49, %v1276_v10  ;;  %v1290_v28 = vadd.f32 %v1289_v58, %v1288_v11 }
 0x12d   : > { %v1302_v52 = vadd.f32 %v1301_v47, %v1300_v42  ;;  %v1349_v53 = vrot.slane %v1348_v51, 1  ;;  %v1314_v17 = vadd.f32 %v1313_v15, %v1312_v45  ;;  %v1352_v4 = vadd.f32 %v1266_v1, %v3422_v19  ;;  %v471_v1 = vld [vmem:[%s3007_s21 + $0x10] sm:$0xff] }
 0x12e   : > { %v1326_v30 = vadd.f32 %v1325_v2, %v1324_v46  ;;  %v1338_v34 = vadd.f32 %v1337_v3, %v1336_v48  ;;  %v1354_v27 = vadd.f32 %v1278_v16, %v3428_v32  ;;  %v1356_v55 = vadd.f32 %v1290_v28, %v3431_v35  ;;  %v473_v3 = vld [vmem:[%s3007_s21 + $0x90] sm:$0xff] }
 0x12f   : > { %v1350_v31 = vadd.f32 %v1349_v53, %v1348_v51  ;;  %v1358_v20 = vadd.f32 %v1302_v52, %v3434_v26  ;;  %v1360_v0 = vadd.f32 %v1314_v17, %v3440_v59  ;;  %v359_v24 = vrot.slane %v343_v29, 4  ;;  %v475_v16 = vld [vmem:[%s3007_s21 + $0x110] sm:$0xff] }
 0x130   : > { %v1362_v5 = vadd.f32 %v1326_v30, %v3443_v54  ;;  %v1364_v57 = vadd.f32 %v1338_v34, %v3446_v6  ;;  %v1547_v8 = vsel %vm1533_vm0, %v1354_v27, %v1352_v4  ;;  %v371_v32 = vrot.slane %v345_v25, 4  ;;  %v477_v17 = vld [vmem:[%s3007_s21 + $0x190] sm:$0xff] }
 0x131   : > { %v1366_v19 = vadd.f32 %v1350_v31, %v3450_v12  ;;  %v383_v56 = vrot.slane %v347_v7, 4  ;;  %v1548_v35 = vsel %vm1535_vm1, %v1356_v55, %v1547_v8  ;;  %v360_v26 = vadd.f32 %v359_v24, %v343_v29  ;;  %v479_v30 = vld [vmem:[%s3007_s21 + $0x210] sm:$0xff] }
 0x132   : > { %v395_v41 = vrot.slane %v349_v43, 4  ;;  %v407_v22 = vrot.slane %v351_v63, 4  ;;  %v1549_v59 = vsel %vm1537_vm2, %v1358_v20, %v1548_v35  ;;  %v372_v54 = vadd.f32 %v371_v32, %v345_v25 }
 0x133   : > { %v384_v9 = vadd.f32 %v383_v56, %v347_v7  ;;  %v419_v6 = vrot.slane %v353_v23, 4  ;;  %v1550_v60 = vsel %vm1539_vm3, %v1360_v0, %v1549_v59  ;;  %v361_v62 = vrot.slane %v360_v26, 2  ;;  %v481_v7 = vld [vmem:[%s3007_s21 + $0x290] sm:$0xff] }
 0x134   : > { %v396_v12 = vadd.f32 %v395_v41, %v349_v43  ;;  %v408_v18 = vadd.f32 %v407_v22, %v351_v63  ;;  %v1551_v21 = vsel %vm1541_vm4, %v1362_v5, %v1550_v60  ;;  %v373_v50 = vrot.slane %v372_v54, 2  ;;  %v483_v22 = vld [vmem:[%s3007_s21 + $0x310] sm:$0xff] }
 0x135   : > { %v385_v44 = vrot.slane %v384_v9, 2  ;;  %v420_v61 = vadd.f32 %v419_v6, %v353_v23  ;;  %v1552_v14 = vsel %vm1543_vm5, %v1364_v57, %v1551_v21  ;;  %v362_v38 = vadd.f32 %v361_v62, %v360_v26  ;;  %v485_v60 = vld [vmem:[%s3007_s21 + $0x390] sm:$0xff] }
 0x136   : > { %v397_v36 = vrot.slane %v396_v12, 2  ;;  %v409_v37 = vrot.slane %v408_v18, 2  ;;  %v1553_v10 = vsel %vm1545_vm6, %v1366_v19, %v1552_v14  ;;  %v374_v11 = vadd.f32 %v373_v50, %v372_v54 }
 0x137   : > { %v386_v42 = vadd.f32 %v385_v44, %v384_v9  ;;  %v421_v39 = vrot.slane %v420_v61, 2  ;;  %1620 = vmatprep.mubr.f32.mxu0 %v1553_v10  ;;  %1691 = vmatprep.mubr.f32.mxu1 %v1553_v10  ;;  %v363_v40 = vrot.slane %v362_v38, 1  ;;  %v431_v48 = vrot.slane %v355_v13, 4 }
 0x138   : > { %v398_v45 = vadd.f32 %v397_v36, %v396_v12  ;;  %v410_v46 = vadd.f32 %v409_v37, %v408_v18  ;;  %v375_v49 = vrot.slane %v374_v11, 1  ;;  %v443_v51 = vrot.slane %v357_v33, 4 }
 0x139   : > { %v387_v58 = vrot.slane %v386_v42, 1  ;;  %v422_v47 = vadd.f32 %v421_v39, %v420_v61  ;;  %v432_v2 = vadd.f32 %v431_v48, %v355_v13  ;;  %v3478_v28 = vadd.f32 %v363_v40, %v362_v38 }
 0x13a   : > { %v399_v15 = vrot.slane %v398_v45, 1  ;;  %v3480_v52 = vadd.f32 %v375_v49, %v374_v11  ;;  %v411_v53 = vrot.slane %v410_v46, 1  ;;  %v444_v29 = vadd.f32 %v443_v51, %v357_v33 }
 0x13b   : > { %v3484_v34 = vadd.f32 %v387_v58, %v386_v42  ;;  %v423_v4 = vrot.slane %v422_v47, 1  ;;  %v433_v25 = vrot.slane %v432_v2, 2  ;;  %v487_v31 = vrot.slane %v471_v1, 4 }
 0x13c   : > { %v3487_v27 = vadd.f32 %v399_v15, %v398_v45  ;;  %v445_v55 = vrot.slane %v444_v29, 2  ;;  %v499_v20 = vrot.slane %v473_v3, 4  ;;  %v511_v43 = vrot.slane %v475_v16, 4 }
 0x13d   : > { %v434_v63 = vadd.f32 %v433_v25, %v432_v2  ;;  %v488_v0 = vadd.f32 %v487_v31, %v471_v1  ;;  %v523_v5 = vrot.slane %v477_v17, 4  ;;  %v535_v57 = vrot.slane %v479_v30, 4  ;;  %v607_v25 = vld [vmem:[%s3007_s21 + $0x220] sm:$0xff] }
 0x13e   : > { %v446_v23 = vadd.f32 %v445_v55, %v444_v29  ;;  %v500_v24 = vadd.f32 %v499_v20, %v473_v3  ;;  %v512_v19 = vadd.f32 %v511_v43, %v475_v16  ;;  %v547_v8 = vrot.slane %v481_v7, 4  ;;  %v601_v3 = vld [vmem:[%s3007_s21 + $0xa0] sm:$0xff] }
 0x13f   : > { %v3489_v32 = vadd.f32 %v411_v53, %v410_v46  ;;  %v489_v56 = vrot.slane %v488_v0, 2  ;;  %v524_v35 = vadd.f32 %v523_v5, %v477_v17  ;;  %v536_v26 = vadd.f32 %v535_v57, %v479_v30  ;;  %v603_v16 = vld [vmem:[%s3007_s21 + $0x120] sm:$0xff] }
 0x140   : > { %v3491_v41 = vadd.f32 %v423_v4, %v422_v47  ;;  %v501_v59 = vrot.slane %v500_v24, 2  ;;  %v513_v54 = vrot.slane %v512_v19, 2  ;;  %v548_v9 = vadd.f32 %v547_v8, %v481_v7  ;;  %v599_v47 = vld [vmem:[%s3007_s21 + $0x20] sm:$0xff] }
 0x141   : > { %v435_v6 = vrot.slane %v434_v63, 1  ;;  %v490_v62 = vadd.f32 %v489_v56, %v488_v0  ;;  %v525_v12 = vrot.slane %v524_v35, 2  ;;  %v537_v18 = vrot.slane %v536_v26, 2  ;;  %v605_v4 = vld [vmem:[%s3007_s21 + $0x1a0] sm:$0xff] }
 0x142   : > { %v447_v21 = vrot.slane %v446_v23, 1  ;;  %v502_v13 = vadd.f32 %v501_v59, %v500_v24  ;;  %v514_v50 = vadd.f32 %v513_v54, %v512_v19  ;;  %v549_v44 = vrot.slane %v548_v9, 2  ;;  %v609_v20 = vld [vmem:[%s3007_s21 + $0x2a0] sm:$0xff] }
 0x143   : > { %v491_v61 = vrot.slane %v490_v62, 1  ;;  %v526_v14 = vadd.f32 %v525_v12, %v524_v35  ;;  %v538_v33 = vadd.f32 %v537_v18, %v536_v26  ;;  %v559_v38 = vrot.slane %v483_v22, 4  ;;  %v611_v54 = vld [vmem:[%s3007_s21 + $0x320] sm:$0xff] }
 0x144   : > { %v503_v36 = vrot.slane %v502_v13, 1  ;;  %v515_v37 = vrot.slane %v514_v50, 1  ;;  %v550_v10 = vadd.f32 %v549_v44, %v548_v9  ;;  %v571_v11 = vrot.slane %v485_v60, 4  ;;  %v613_v12 = vld [vmem:[%s3007_s21 + $0x3a0] sm:$0xff] }
 0x145   : > { %v492_v42 = vadd.f32 %v491_v61, %v490_v62  ;;  %v527_v39 = vrot.slane %v526_v14, 1  ;;  %v539_v40 = vrot.slane %v538_v33, 1  ;;  %v560_v45 = vadd.f32 %v559_v38, %v483_v22 }
 0x146   : > { %v504_v46 = vadd.f32 %v503_v36, %v502_v13  ;;  %v516_v48 = vadd.f32 %v515_v37, %v514_v50  ;;  %v551_v49 = vrot.slane %v550_v10, 1  ;;  %v572_v58 = vadd.f32 %v571_v11, %v485_v60 }
 0x147   : > { %v3496_v51 = vadd.f32 %v435_v6, %v434_v63  ;;  %v3498_v1 = vadd.f32 %v447_v21, %v446_v23  ;;  %v528_v15 = vadd.f32 %v527_v39, %v526_v14  ;;  %v561_v2 = vrot.slane %v560_v45, 2 }
 0x148   : > { %v540_v53 = vadd.f32 %v539_v40, %v538_v33  ;;  %v552_v29 = vadd.f32 %v551_v49, %v550_v10  ;;  %v573_v17 = vrot.slane %v572_v58, 2  ;;  %v3503_v30 = vadd.f32 %v492_v42, %v3478_v28 }
 0x149   : > { %v562_v7 = vadd.f32 %v561_v2, %v560_v45  ;;  %v3508_v31 = vadd.f32 %v504_v46, %v3480_v52  ;;  %v3511_v55 = vadd.f32 %v516_v48, %v3484_v34  ;;  %v615_v43 = vrot.slane %v599_v47, 4 }
 0x14a   : > { %v574_v63 = vadd.f32 %v573_v17, %v572_v58  ;;  %v3515_v0 = vadd.f32 %v528_v15, %v3487_v27  ;;  %v627_v5 = vrot.slane %v601_v3, 4  ;;  %v639_v57 = vrot.slane %v603_v16, 4 }
 0x14b   : > { %v563_v28 = vrot.slane %v562_v7, 1  ;;  %v616_v23 = vadd.f32 %v615_v43, %v599_v47  ;;  %v651_v24 = vrot.slane %v605_v4, 4  ;;  %v663_v19 = vrot.slane %v607_v25, 4  ;;  %v727_v47 = vld [vmem:[%s3007_s21 + $0x30] sm:$0xff] }
 0x14c   : > { %v575_v8 = vrot.slane %v574_v63, 1  ;;  %v628_v52 = vadd.f32 %v627_v5, %v601_v3  ;;  %v640_v56 = vadd.f32 %v639_v57, %v603_v16  ;;  %v675_v35 = vrot.slane %v609_v20, 4  ;;  %v735_v43 = vld [vmem:[%s3007_s21 + $0x230] sm:$0xff] }
 0x14d   : > { %v3518_v34 = vadd.f32 %v540_v53, %v3489_v32  ;;  %v617_v26 = vrot.slane %v616_v23, 2  ;;  %v652_v22 = vadd.f32 %v651_v24, %v605_v4  ;;  %v664_v59 = vadd.f32 %v663_v19, %v607_v25  ;;  %v729_v53 = vld [vmem:[%s3007_s21 + $0xb0] sm:$0xff] }
 0x14e   : > { %v3521_v27 = vadd.f32 %v552_v29, %v3491_v41  ;;  %v629_v9 = vrot.slane %v628_v52, 2  ;;  %v641_v6 = vrot.slane %v640_v56, 2  ;;  %v676_v60 = vadd.f32 %v675_v35, %v609_v20  ;;  %v731_v29 = vld [vmem:[%s3007_s21 + $0x130] sm:$0xff] }
 0x14f   : > { %v564_v62 = vadd.f32 %v563_v28, %v562_v7  ;;  %v618_v18 = vadd.f32 %v617_v26, %v616_v23  ;;  %v653_v21 = vrot.slane %v652_v22, 2  ;;  %v665_v13 = vrot.slane %v664_v59, 2  ;;  %v733_v20 = vld [vmem:[%s3007_s21 + $0x1b0] sm:$0xff] }
 0x150   : > { %v576_v50 = vadd.f32 %v575_v8, %v574_v63  ;;  %v630_v44 = vadd.f32 %v629_v9, %v628_v52  ;;  %v642_v61 = vadd.f32 %v641_v6, %v640_v56  ;;  %v677_v32 = vrot.slane %v676_v60, 2  ;;  %v739_v6 = vld [vmem:[%s3007_s21 + $0x330] sm:$0xff] }
 0x151   : > { %v619_v14 = vrot.slane %v618_v18, 1  ;;  %v654_v33 = vadd.f32 %v653_v21, %v652_v22  ;;  %v666_v38 = vadd.f32 %v665_v13, %v664_v59  ;;  %v687_v36 = vrot.slane %v611_v54, 4  ;;  %v741_v21 = vld [vmem:[%s3007_s21 + $0x3b0] sm:$0xff] }
 0x152   : > { %v631_v41 = vrot.slane %v630_v44, 1  ;;  %v643_v37 = vrot.slane %v642_v61, 1  ;;  %v678_v10 = vadd.f32 %v677_v32, %v676_v60  ;;  %v699_v11 = vrot.slane %v613_v12, 4 }
 0x153   : > { %v620_v42 = vadd.f32 %v619_v14, %v618_v18  ;;  %v655_v39 = vrot.slane %v654_v33, 1  ;;  %v667_v40 = vrot.slane %v666_v38, 1  ;;  %v688_v45 = vadd.f32 %v687_v36, %v611_v54 }
 0x154   : > { %v632_v46 = vadd.f32 %v631_v41, %v630_v44  ;;  %v644_v48 = vadd.f32 %v643_v37, %v642_v61  ;;  %v679_v49 = vrot.slane %v678_v10, 1  ;;  %v700_v58 = vadd.f32 %v699_v11, %v613_v12 }
 0x155   : > { %v3527_v15 = vadd.f32 %v564_v62, %v3496_v51  ;;  %v3530_v2 = vadd.f32 %v576_v50, %v3498_v1  ;;  %v656_v3 = vadd.f32 %v655_v39, %v654_v33  ;;  %v689_v16 = vrot.slane %v688_v45, 2  ;;  %v737_v1 = vld [vmem:[%s3007_s21 + $0x2b0] sm:$0xff] }
 0x156   : > { %v668_v17 = vadd.f32 %v667_v40, %v666_v38  ;;  %v680_v4 = vadd.f32 %v679_v49, %v678_v10  ;;  %v701_v25 = vrot.slane %v700_v58, 2  ;;  %v3535_v7 = vadd.f32 %v620_v42, %v3503_v30 }
 0x157   : > { %v690_v63 = vadd.f32 %v689_v16, %v688_v45  ;;  %v3540_v5 = vadd.f32 %v632_v46, %v3508_v31  ;;  %v3543_v51 = vadd.f32 %v644_v48, %v3511_v55  ;;  %v743_v57 = vrot.slane %v727_v47, 4 }
 0x158   : > { %v702_v28 = vadd.f32 %v701_v25, %v700_v58  ;;  %v3547_v23 = vadd.f32 %v656_v3, %v3515_v0  ;;  %v755_v24 = vrot.slane %v729_v53, 4  ;;  %v767_v19 = vrot.slane %v731_v29, 4 }
 0x159   : > { %v691_v30 = vrot.slane %v690_v63, 1  ;;  %v744_v8 = vadd.f32 %v743_v57, %v727_v47  ;;  %v779_v52 = vrot.slane %v733_v20, 4  ;;  %v791_v56 = vrot.slane %v735_v43, 4  ;;  %v855_v47 = vld [vmem:[%s3007_s21 + $0x40] sm:$0xff] }
 0x15a   : > { %v703_v35 = vrot.slane %v702_v28, 1  ;;  %v756_v31 = vadd.f32 %v755_v24, %v729_v53  ;;  %v768_v26 = vadd.f32 %v767_v19, %v731_v29  ;;  %v803_v22 = vrot.slane %v737_v1, 4  ;;  %v863_v57 = vld [vmem:[%s3007_s21 + $0x240] sm:$0xff] }
 0x15b   : > { %v3550_v55 = vadd.f32 %v668_v17, %v3518_v34  ;;  %v745_v59 = vrot.slane %v744_v8, 2  ;;  %v780_v54 = vadd.f32 %v779_v52, %v733_v20  ;;  %v792_v9 = vadd.f32 %v791_v56, %v735_v43  ;;  %v857_v17 = vld [vmem:[%s3007_s21 + $0xc0] sm:$0xff] }
 0x15c   : > { %v3553_v0 = vadd.f32 %v680_v4, %v3521_v27  ;;  %v757_v60 = vrot.slane %v756_v31, 2  ;;  %v769_v62 = vrot.slane %v768_v26, 2  ;;  %v804_v12 = vadd.f32 %v803_v22, %v737_v1  ;;  %v859_v4 = vld [vmem:[%s3007_s21 + $0x140] sm:$0xff] }
 0x15d   : > { %v692_v18 = vadd.f32 %v691_v30, %v690_v63  ;;  %v746_v13 = vadd.f32 %v745_v59, %v744_v8  ;;  %v781_v50 = vrot.slane %v780_v54, 2  ;;  %v793_v44 = vrot.slane %v792_v9, 2  ;;  %v861_v1 = vld [vmem:[%s3007_s21 + $0x1c0] sm:$0xff] }
 0x15e   : > { %v704_v61 = vadd.f32 %v703_v35, %v702_v28  ;;  %v758_v32 = vadd.f32 %v757_v60, %v756_v31  ;;  %v770_v14 = vadd.f32 %v769_v62, %v768_v26  ;;  %v805_v34 = vrot.slane %v804_v12, 2  ;;  %v867_v62 = vld [vmem:[%s3007_s21 + $0x340] sm:$0xff] }
 0x15f   : > { %v747_v33 = vrot.slane %v746_v13, 1  ;;  %v782_v38 = vadd.f32 %v781_v50, %v780_v54  ;;  %v794_v36 = vadd.f32 %v793_v44, %v792_v9  ;;  %v815_v41 = vrot.slane %v739_v6, 4  ;;  %v869_v50 = vld [vmem:[%s3007_s21 + $0x3c0] sm:$0xff] }
 0x160   : > { %v759_v27 = vrot.slane %v758_v32, 1  ;;  %v771_v37 = vrot.slane %v770_v14, 1  ;;  %v806_v10 = vadd.f32 %v805_v34, %v804_v12  ;;  %v827_v11 = vrot.slane %v741_v21, 4 }
 0x161   : > { %v748_v42 = vadd.f32 %v747_v33, %v746_v13  ;;  %v783_v39 = vrot.slane %v782_v38, 1  ;;  %v795_v40 = vrot.slane %v794_v36, 1  ;;  %v816_v45 = vadd.f32 %v815_v41, %v739_v6 }
 0x162   : > { %v760_v46 = vadd.f32 %v759_v27, %v758_v32  ;;  %v772_v48 = vadd.f32 %v771_v37, %v770_v14  ;;  %v807_v49 = vrot.slane %v806_v10, 1  ;;  %v828_v58 = vadd.f32 %v827_v11, %v741_v21 }
 0x163   : > { %v3559_v3 = vadd.f32 %v692_v18, %v3527_v15  ;;  %v3562_v16 = vadd.f32 %v704_v61, %v3530_v2  ;;  %v784_v53 = vadd.f32 %v783_v39, %v782_v38  ;;  %v817_v29 = vrot.slane %v816_v45, 2  ;;  %v865_v2 = vld [vmem:[%s3007_s21 + $0x2c0] sm:$0xff] }
 0x164   : > { %v796_v25 = vadd.f32 %v795_v40, %v794_v36  ;;  %v808_v20 = vadd.f32 %v807_v49, %v806_v10  ;;  %v829_v43 = vrot.slane %v828_v58, 2  ;;  %v3567_v63 = vadd.f32 %v748_v42, %v3535_v7 }
 0x165   : > { %v818_v28 = vadd.f32 %v817_v29, %v816_v45  ;;  %v3572_v24 = vadd.f32 %v760_v46, %v3540_v5  ;;  %v3575_v15 = vadd.f32 %v772_v48, %v3543_v51  ;;  %v871_v19 = vrot.slane %v855_v47, 4 }
 0x166   : > { %v830_v30 = vadd.f32 %v829_v43, %v828_v58  ;;  %v3579_v8 = vadd.f32 %v784_v53, %v3547_v23  ;;  %v883_v52 = vrot.slane %v857_v17, 4  ;;  %v895_v56 = vrot.slane %v859_v4, 4 }
 0x167   : > { %v819_v7 = vrot.slane %v818_v28, 1  ;;  %v872_v35 = vadd.f32 %v871_v19, %v855_v47  ;;  %v907_v31 = vrot.slane %v861_v1, 4  ;;  %v919_v26 = vrot.slane %v863_v57, 4  ;;  %v983_v47 = vld [vmem:[%s3007_s21 + $0x50] sm:$0xff] }
 0x168   : > { %v831_v22 = vrot.slane %v830_v30, 1  ;;  %v884_v5 = vadd.f32 %v883_v52, %v857_v17  ;;  %v896_v59 = vadd.f32 %v895_v56, %v859_v4  ;;  %v931_v54 = vrot.slane %v865_v2, 4  ;;  %v991_v19 = vld [vmem:[%s3007_s21 + $0x250] sm:$0xff] }
 0x169   : > { %v3582_v51 = vadd.f32 %v796_v25, %v3550_v55  ;;  %v873_v9 = vrot.slane %v872_v35, 2  ;;  %v908_v6 = vadd.f32 %v907_v31, %v861_v1  ;;  %v920_v60 = vadd.f32 %v919_v26, %v863_v57  ;;  %v985_v25 = vld [vmem:[%s3007_s21 + $0xd0] sm:$0xff] }
 0x16a   : > { %v3585_v23 = vadd.f32 %v808_v20, %v3553_v0  ;;  %v885_v12 = vrot.slane %v884_v5, 2  ;;  %v897_v18 = vrot.slane %v896_v59, 2  ;;  %v932_v21 = vadd.f32 %v931_v54, %v865_v2  ;;  %v987_v20 = vld [vmem:[%s3007_s21 + $0x150] sm:$0xff] }
 0x16b   : > { %v820_v13 = vadd.f32 %v819_v7, %v818_v28  ;;  %v874_v44 = vadd.f32 %v873_v9, %v872_v35  ;;  %v909_v61 = vrot.slane %v908_v6, 2  ;;  %v921_v32 = vrot.slane %v920_v60, 2  ;;  %v989_v2 = vld [vmem:[%s3007_s21 + $0x1d0] sm:$0xff] }
 0x16c   : > { %v832_v14 = vadd.f32 %v831_v22, %v830_v30  ;;  %v886_v34 = vadd.f32 %v885_v12, %v884_v5  ;;  %v898_v33 = vadd.f32 %v897_v18, %v896_v59  ;;  %v933_v55 = vrot.slane %v932_v21, 2  ;;  %v995_v18 = vld [vmem:[%s3007_s21 + $0x350] sm:$0xff] }
 0x16d   : > { %v875_v38 = vrot.slane %v874_v44, 1  ;;  %v910_v36 = vadd.f32 %v909_v61, %v908_v6  ;;  %v922_v41 = vadd.f32 %v921_v32, %v920_v60  ;;  %v943_v27 = vrot.slane %v867_v62, 4  ;;  %v997_v61 = vld [vmem:[%s3007_s21 + $0x3d0] sm:$0xff] }
 0x16e   : > { %v887_v0 = vrot.slane %v886_v34, 1  ;;  %v899_v37 = vrot.slane %v898_v33, 1  ;;  %v934_v10 = vadd.f32 %v933_v55, %v932_v21  ;;  %v955_v11 = vrot.slane %v869_v50, 4 }
 0x16f   : > { %v876_v42 = vadd.f32 %v875_v38, %v874_v44  ;;  %v911_v39 = vrot.slane %v910_v36, 1  ;;  %v923_v40 = vrot.slane %v922_v41, 1  ;;  %v944_v45 = vadd.f32 %v943_v27, %v867_v62 }
 0x170   : > { %v888_v46 = vadd.f32 %v887_v0, %v886_v34  ;;  %v900_v48 = vadd.f32 %v899_v37, %v898_v33  ;;  %v935_v49 = vrot.slane %v934_v10, 1  ;;  %v956_v58 = vadd.f32 %v955_v11, %v869_v50 }
 0x171   : > { %v3591_v53 = vadd.f32 %v820_v13, %v3559_v3  ;;  %v3594_v29 = vadd.f32 %v832_v14, %v3562_v16  ;;  %v912_v17 = vadd.f32 %v911_v39, %v910_v36  ;;  %v945_v4 = vrot.slane %v944_v45, 2  ;;  %v993_v16 = vld [vmem:[%s3007_s21 + $0x2d0] sm:$0xff] }
 0x172   : > { %v924_v43 = vadd.f32 %v923_v40, %v922_v41  ;;  %v936_v1 = vadd.f32 %v935_v49, %v934_v10  ;;  %v957_v57 = vrot.slane %v956_v58, 2  ;;  %v3599_v28 = vadd.f32 %v876_v42, %v3567_v63 }
 0x173   : > { %v946_v30 = vadd.f32 %v945_v4, %v944_v45  ;;  %v3604_v52 = vadd.f32 %v888_v46, %v3572_v24  ;;  %v3607_v3 = vadd.f32 %v900_v48, %v3575_v15  ;;  %v999_v56 = vrot.slane %v983_v47, 4 }
 0x174   : > { %v958_v7 = vadd.f32 %v957_v57, %v956_v58  ;;  %v3611_v35 = vadd.f32 %v912_v17, %v3579_v8  ;;  %v1011_v31 = vrot.slane %v985_v25, 4  ;;  %v1023_v26 = vrot.slane %v987_v20, 4 }
 0x175   : > { %v947_v63 = vrot.slane %v946_v30, 1  ;;  %v1000_v22 = vadd.f32 %v999_v56, %v983_v47  ;;  %v1035_v5 = vrot.slane %v989_v2, 4  ;;  %v1047_v59 = vrot.slane %v991_v19, 4  ;;  %v1111_v47 = vld [vmem:[%s3007_s21 + $0x60] sm:$0xff] }
 0x176   : > { %v959_v54 = vrot.slane %v958_v7, 1  ;;  %v1012_v24 = vadd.f32 %v1011_v31, %v985_v25  ;;  %v1024_v9 = vadd.f32 %v1023_v26, %v987_v20  ;;  %v1059_v6 = vrot.slane %v993_v16, 4  ;;  %v1119_v56 = vld [vmem:[%s3007_s21 + $0x260] sm:$0xff] }
 0x177   : > { %v3614_v15 = vadd.f32 %v924_v43, %v3582_v51  ;;  %v1001_v60 = vrot.slane %v1000_v22, 2  ;;  %v1036_v62 = vadd.f32 %v1035_v5, %v989_v2  ;;  %v1048_v12 = vadd.f32 %v1047_v59, %v991_v19  ;;  %v1113_v43 = vld [vmem:[%s3007_s21 + $0xe0] sm:$0xff] }
 0x178   : > { %v3617_v8 = vadd.f32 %v936_v1, %v3585_v23  ;;  %v1013_v21 = vrot.slane %v1012_v24, 2  ;;  %v1025_v13 = vrot.slane %v1024_v9, 2  ;;  %v1060_v50 = vadd.f32 %v1059_v6, %v993_v16  ;;  %v1115_v1 = vld [vmem:[%s3007_s21 + $0x160] sm:$0xff] }
 0x179   : > { %v948_v44 = vadd.f32 %v947_v63, %v946_v30  ;;  %v1002_v32 = vadd.f32 %v1001_v60, %v1000_v22  ;;  %v1037_v14 = vrot.slane %v1036_v62, 2  ;;  %v1049_v34 = vrot.slane %v1048_v12, 2  ;;  %v1117_v16 = vld [vmem:[%s3007_s21 + $0x1e0] sm:$0xff] }
 0x17a   : > { %v960_v33 = vadd.f32 %v959_v54, %v958_v7  ;;  %v1014_v55 = vadd.f32 %v1013_v21, %v1012_v24  ;;  %v1026_v38 = vadd.f32 %v1025_v13, %v1024_v9  ;;  %v1061_v51 = vrot.slane %v1060_v50, 2  ;;  %v1123_v13 = vld [vmem:[%s3007_s21 + $0x360] sm:$0xff] }
 0x17b   : > { %v1003_v36 = vrot.slane %v1002_v32, 1  ;;  %v1038_v41 = vadd.f32 %v1037_v14, %v1036_v62  ;;  %v1050_v27 = vadd.f32 %v1049_v34, %v1048_v12  ;;  %v1071_v0 = vrot.slane %v995_v18, 4  ;;  %v1125_v14 = vld [vmem:[%s3007_s21 + $0x3e0] sm:$0xff] }
 0x17c   : > { %v1015_v23 = vrot.slane %v1014_v55, 1  ;;  %v1027_v37 = vrot.slane %v1026_v38, 1  ;;  %v1062_v10 = vadd.f32 %v1061_v51, %v1060_v50  ;;  %v1083_v11 = vrot.slane %v997_v61, 4 }
 0x17d   : > { %v1004_v42 = vadd.f32 %v1003_v36, %v1002_v32  ;;  %v1039_v39 = vrot.slane %v1038_v41, 1  ;;  %v1051_v40 = vrot.slane %v1050_v27, 1  ;;  %v1072_v45 = vadd.f32 %v1071_v0, %v995_v18 }
 0x17e   : > { %v1016_v46 = vadd.f32 %v1015_v23, %v1014_v55  ;;  %v1028_v48 = vadd.f32 %v1027_v37, %v1026_v38  ;;  %v1063_v49 = vrot.slane %v1062_v10, 1  ;;  %v1084_v58 = vadd.f32 %v1083_v11, %v997_v61 }
 0x17f   : > { %v3623_v17 = vadd.f32 %v948_v44, %v3591_v53  ;;  %v3626_v4 = vadd.f32 %v960_v33, %v3594_v29  ;;  %v1040_v25 = vadd.f32 %v1039_v39, %v1038_v41  ;;  %v1073_v20 = vrot.slane %v1072_v45, 2  ;;  %v1121_v29 = vld [vmem:[%s3007_s21 + $0x2e0] sm:$0xff] }
 0x180   : > { %v1052_v57 = vadd.f32 %v1051_v40, %v1050_v27  ;;  %v1064_v2 = vadd.f32 %v1063_v49, %v1062_v10  ;;  %v1085_v19 = vrot.slane %v1084_v58, 2  ;;  %v3631_v30 = vadd.f32 %v1004_v42, %v3599_v28 }
 0x181   : > { %v1074_v7 = vadd.f32 %v1073_v20, %v1072_v45  ;;  %v3636_v31 = vadd.f32 %v1016_v46, %v3604_v52  ;;  %v3639_v53 = vadd.f32 %v1028_v48, %v3607_v3  ;;  %v1127_v26 = vrot.slane %v1111_v47, 4 }
 0x182   : > { %v1086_v63 = vadd.f32 %v1085_v19, %v1084_v58  ;;  %v3643_v22 = vadd.f32 %v1040_v25, %v3611_v35  ;;  %v1139_v5 = vrot.slane %v1113_v43, 4  ;;  %v1151_v59 = vrot.slane %v1115_v1, 4 }
 0x183   : > { %v1075_v28 = vrot.slane %v1074_v7, 1  ;;  %v1128_v54 = vadd.f32 %v1127_v26, %v1111_v47  ;;  %v1163_v24 = vrot.slane %v1117_v16, 4  ;;  %v1175_v9 = vrot.slane %v1119_v56, 4  ;;  %v1239_v47 = vld [vmem:[%s3007_s21 + $0x70] sm:$0xff] }
 0x184   : > { %v1087_v6 = vrot.slane %v1086_v63, 1  ;;  %v1140_v52 = vadd.f32 %v1139_v5, %v1113_v43  ;;  %v1152_v60 = vadd.f32 %v1151_v59, %v1115_v1  ;;  %v1187_v62 = vrot.slane %v1121_v29, 4  ;;  %v1247_v26 = vld [vmem:[%s3007_s21 + $0x270] sm:$0xff] }
 0x185   : > { %v3646_v3 = vadd.f32 %v1052_v57, %v3614_v15  ;;  %v1129_v12 = vrot.slane %v1128_v54, 2  ;;  %v1164_v18 = vadd.f32 %v1163_v24, %v1117_v16  ;;  %v1176_v21 = vadd.f32 %v1175_v9, %v1119_v56  ;;  %v1241_v57 = vld [vmem:[%s3007_s21 + $0xf0] sm:$0xff] }
 0x186   : > { %v3649_v35 = vadd.f32 %v1064_v2, %v3617_v8  ;;  %v1141_v50 = vrot.slane %v1140_v52, 2  ;;  %v1153_v44 = vrot.slane %v1152_v60, 2  ;;  %v1188_v61 = vadd.f32 %v1187_v62, %v1121_v29  ;;  %v1243_v2 = vld [vmem:[%s3007_s21 + $0x170] sm:$0xff] }
 0x187   : > { %v1076_v32 = vadd.f32 %v1075_v28, %v1074_v7  ;;  %v1130_v34 = vadd.f32 %v1129_v12, %v1128_v54  ;;  %v1165_v33 = vrot.slane %v1164_v18, 2  ;;  %v1177_v55 = vrot.slane %v1176_v21, 2  ;;  %v1245_v29 = vld [vmem:[%s3007_s21 + $0x1f0] sm:$0xff] }
 0x188   : > { %v1088_v38 = vadd.f32 %v1087_v6, %v1086_v63  ;;  %v1142_v51 = vadd.f32 %v1141_v50, %v1140_v52  ;;  %v1154_v36 = vadd.f32 %v1153_v44, %v1152_v60  ;;  %v1189_v15 = vrot.slane %v1188_v61, 2  ;;  %v1249_v59 = vld [vmem:[%s3007_s21 + $0x2f0] sm:$0xff] }
 0x189   : > { %v1131_v41 = vrot.slane %v1130_v34, 1  ;;  %v1166_v27 = vadd.f32 %v1165_v33, %v1164_v18  ;;  %v1178_v0 = vadd.f32 %v1177_v55, %v1176_v21  ;;  %v1199_v23 = vrot.slane %v1123_v13, 4  ;;  %v1253_v33 = vld [vmem:[%s3007_s21 + $0x3f0] sm:$0xff] }
 0x18a   : > { %v1143_v8 = vrot.slane %v1142_v51, 1  ;;  %v1155_v37 = vrot.slane %v1154_v36, 1  ;;  %v1190_v10 = vadd.f32 %v1189_v15, %v1188_v61  ;;  %v1211_v11 = vrot.slane %v1125_v14, 4 }
 0x18b   : > { %v1132_v42 = vadd.f32 %v1131_v41, %v1130_v34  ;;  %v1167_v39 = vrot.slane %v1166_v27, 1  ;;  %v1179_v40 = vrot.slane %v1178_v0, 1  ;;  %v1200_v45 = vadd.f32 %v1199_v23, %v1123_v13 }
 0x18c   : > { %v1144_v46 = vadd.f32 %v1143_v8, %v1142_v51  ;;  %v1156_v48 = vadd.f32 %v1155_v37, %v1154_v36  ;;  %v1191_v49 = vrot.slane %v1190_v10, 1  ;;  %v1212_v58 = vadd.f32 %v1211_v11, %v1125_v14 }
 0x18d   : > { %v3655_v25 = vadd.f32 %v1076_v32, %v3623_v17  ;;  %v3658_v20 = vadd.f32 %v1088_v38, %v3626_v4  ;;  %v1168_v43 = vadd.f32 %v1167_v39, %v1166_v27  ;;  %v1201_v1 = vrot.slane %v1200_v45, 2 }
 0x18e   : > { %v1180_v19 = vadd.f32 %v1179_v40, %v1178_v0  ;;  %v1192_v16 = vadd.f32 %v1191_v49, %v1190_v10  ;;  %v1213_v56 = vrot.slane %v1212_v58, 2  ;;  %v1223_v7 = vadd.f32 %v1132_v42, %v3631_v30 }
 0x18f   : > { %v1202_v63 = vadd.f32 %v1201_v1, %v1200_v45  ;;  %v1225_v5 = vadd.f32 %v1144_v46, %v3636_v31  ;;  %v1227_v17 = vadd.f32 %v1156_v48, %v3639_v53  ;;  %v1255_v28 = vrot.slane %v1239_v47, 4 }
 0x190   : > { %v1214_v4 = vadd.f32 %v1213_v56, %v1212_v58  ;;  %v1229_v54 = vadd.f32 %v1168_v43, %v3643_v22  ;;  %v1267_v24 = vrot.slane %v1241_v57, 4  ;;  %v1279_v9 = vrot.slane %v1243_v2, 4  ;;  %v1251_v22 = vld [vmem:[%s3007_s21 + $0x370] sm:$0xff]  ;;  %v1719_v43 = vld [vmem:[#allocation7 + $0x88] sm:$0xff]  ;;  %s2683_s21 = scalar_lea.vmem %s3698_s10, 128 }
 0x191   : > { %v1203_v6 = vrot.slane %v1202_v63, 1  ;;  %v1256_v52 = vadd.f32 %v1255_v28, %v1239_v47  ;;  %v1291_v60 = vrot.slane %v1245_v29, 4  ;;  %v1303_v30 = vrot.slane %v1247_v26, 4  ;;  %v1718_v47 = vld [vmem:[#allocation7 + $0x80] sm:$0xff]  ;;  %v1751_v56 = vld [vmem:[#allocation7 + $0x188] sm:$0xff]  ;;  %p2684_p10 = scmp.ne.s32.totalorder %s3698_s10, %s2683_s21  ;;  %p2691_p2 = scmp.lt.s32.totalorder %s2689_s9, %s2683_s21 }
 0x192   : > { %v1215_v62 = vrot.slane %v1214_v4, 1  ;;  %v1268_v12 = vadd.f32 %v1267_v24, %v1241_v57  ;;  %v1280_v18 = vadd.f32 %v1279_v9, %v1243_v2  ;;  %v1315_v21 = vrot.slane %v1249_v59, 4 }
 0x193   : > { %v1231_v31 = vadd.f32 %v1180_v19, %v3646_v3  ;;  %v1257_v53 = vrot.slane %v1256_v52, 2  ;;  %v1292_v13 = vadd.f32 %v1291_v60, %v1245_v29  ;;  %v1304_v50 = vadd.f32 %v1303_v30, %v1247_v26  ;;  %p2685_p3 = pnand %p2684_p10, %p2955_p5  ;;  %p2692_p1 = por %p2691_p2, %p2690_p12 }
 0x194   : > { %v1233_v44 = vadd.f32 %v1192_v16, %v3649_v35  ;;  %v1269_v61 = vrot.slane %v1268_v12, 2  ;;  %v1281_v32 = vrot.slane %v1280_v18, 2  ;;  %v1316_v14 = vadd.f32 %v1315_v21, %v1249_v59  ;;  %v1750_v16 = vld [vmem:[#allocation7 + $0x180] sm:$0xff] }
 0x195   : > { %v1204_v34 = vadd.f32 %v1203_v6, %v1202_v63  ;;  %v1258_v55 = vadd.f32 %v1257_v53, %v1256_v52  ;;  %v1293_v38 = vrot.slane %v1292_v13, 2  ;;  %v1305_v51 = vrot.slane %v1304_v50, 2  ;;  %p2686_p7 = pneg %p2685_p3 }
 0x196   : > { %v1216_v36 = vadd.f32 %v1215_v62, %v1214_v4  ;;  %v1270_v15 = vadd.f32 %v1269_v61, %v1268_v12  ;;  %v1282_v41 = vadd.f32 %v1281_v32, %v1280_v18  ;;  %v1317_v27 = vrot.slane %v1316_v14, 2  ;;  %v1721_v61 = vld [vmem:[#allocation7 + $0x98] sm:$0xff]  ;;  %v1752_v32 = vld [vmem:[#allocation7 + $0x190] sm:$0xff] }
 0x197   : > { %v1259_v0 = vrot.slane %v1258_v55, 1  ;;  %v1294_v3 = vadd.f32 %v1293_v38, %v1292_v13  ;;  %v1306_v23 = vadd.f32 %v1305_v51, %v1304_v50  ;;  %v1327_v8 = vrot.slane %v1251_v22, 4  ;;  %v1734_v13 = vld [vmem:[#allocation7 + $0x100] sm:$0xff]  ;;  %v1735_v50 = vld [vmem:[#allocation7 + $0x108] sm:$0xff]  ;;  %v1704_v38 = vld [vmem:[#allocation7 + $0x10] sm:$0xff]  ;;  %p2693_p4 = pnand %p2692_p1, %p2686_p7 }
 0x198   : > { %v1271_v37 = vrot.slane %v1270_v15, 1  ;;  %v1283_v10 = vrot.slane %v1282_v41, 1  ;;  %v1318_v35 = vadd.f32 %v1317_v27, %v1316_v14  ;;  %v1339_v11 = vrot.slane %v1253_v33, 4  ;;  %v1753_v14 = vld [vmem:[#allocation7 + $0x198] sm:$0xff]  ;;  %v1736_v27 = vld [vmem:[#allocation7 + $0x110] sm:$0xff] }
 0x199   : > { %v1260_v42 = vadd.f32 %v1259_v0, %v1258_v55  ;;  %v1295_v39 = vrot.slane %v1294_v3, 1  ;;  %v1307_v40 = vrot.slane %v1306_v23, 1  ;;  %v1328_v45 = vadd.f32 %v1327_v8, %v1251_v22  ;;  %v1705_v51 = vld [vmem:[#allocation7 + $0x18] sm:$0xff]  ;;  %v1723_v8 = vld [vmem:[#allocation7 + $0xa8] sm:$0xff] }
 0x19a   : > { %v1272_v46 = vadd.f32 %v1271_v37, %v1270_v15  ;;  %v1284_v48 = vadd.f32 %v1283_v10, %v1282_v41  ;;  %v1319_v49 = vrot.slane %v1318_v35, 1  ;;  %v1340_v58 = vadd.f32 %v1339_v11, %v1253_v33  ;;  %v1737_v0 = vld [vmem:[#allocation7 + $0x118] sm:$0xff]  ;;  %v1754_v37 = vld [vmem:[#allocation7 + $0x1a0] sm:$0xff]  ;;  %v1755_v10 = vld [vmem:[#allocation7 + $0x1a8] sm:$0xff] }
 0x19b   : > { %v1296_v1 = vadd.f32 %v1295_v39, %v1294_v3  ;;  %v1308_v57 = vadd.f32 %v1307_v40, %v1306_v23  ;;  %v1329_v2 = vrot.slane %v1328_v45, 2  ;;  %v1351_v19 = vadd.f32 %v1260_v42, %v1223_v7  ;;  %v1722_v3 = vld [vmem:[#allocation7 + $0xa0] sm:$0xff]  ;;  %v1707_v39 = vld [vmem:[#allocation7 + $0x28] sm:$0xff] }
 0x19c   : > { %v1320_v29 = vadd.f32 %v1319_v49, %v1318_v35  ;;  %v1341_v26 = vrot.slane %v1340_v58, 2  ;;  %v1353_v63 = vadd.f32 %v1272_v46, %v1225_v5  ;;  %v1355_v59 = vadd.f32 %v1284_v48, %v1227_v17  ;;  %v1702_v17 = vld [vmem:[#allocation7] sm:$0xff]  ;;  %v1739_v48 = vld [vmem:[#allocation7 + $0x128] sm:$0xff]  ;;  %v1724_v49 = vld [vmem:[#allocation7 + $0xb0] sm:$0xff] }
 0x19d   : > { %v1330_v28 = vadd.f32 %v1329_v2, %v1328_v45  ;;  %v1357_v4 = vadd.f32 %v1296_v1, %v1229_v54  ;;  %v1359_v24 = vadd.f32 %v1308_v57, %v1231_v31  ;;  %v2395_v9 = vpack.c.bf16 %v1719_v43, %v1718_v47  ;;  %v1703_v54 = vld [vmem:[#allocation7 + $0x8] sm:$0xff]  ;;  %v1706_v42 = vld [vmem:[#allocation7 + $0x20] sm:$0xff]  ;;  %v1756_v47 = vld [vmem:[#allocation7 + $0x1b0] sm:$0xff] }
 0x19e   : > { %v1342_v6 = vadd.f32 %v1341_v26, %v1340_v58  ;;  %v1361_v52 = vadd.f32 %v1320_v29, %v1233_v44  ;;  %v1534_v60 = vsel %vm1533_vm0, %v1353_v63, %v1351_v19  ;;  %v2427_v30 = vpack.c.bf16 %v1751_v56, %v1750_v16  ;;  %v1720_v44 = vld [vmem:[#allocation7 + $0x90] sm:$0xff]  ;;  %v1738_v46 = vld [vmem:[#allocation7 + $0x120] sm:$0xff]  ;;  %v1725_v58 = vld [vmem:[#allocation7 + $0xb8] sm:$0xff] }
 0x19f   : > { %v1235_v62 = vadd.f32 %v1204_v34, %v3655_v25  ;;  %v1331_v12 = vrot.slane %v1330_v28, 1  ;;  %v1536_v7 = vsel %vm1535_vm1, %v1355_v59, %v1534_v60  ;;  %2396 = vmatprep.subr.bf16.mxu0 %v2395_v9  ;;  %v1237_v18 = vadd.f32 %v1216_v36, %v3658_v20  ;;  %v1757_v43 = vld [vmem:[#allocation7 + $0x1b8] sm:$0xff]  ;;  %v1708_v2 = vld [vmem:[#allocation7 + $0x30] sm:$0xff]  ;;  %v1726_v63 = vld [vmem:[#allocation7 + $0xc0] sm:$0xff] }
 0x1a0   : > { %v1343_v21 = vrot.slane %v1342_v6, 1  ;;  %v1538_v5 = vsel %vm1537_vm2, %v1357_v4, %v1536_v7  ;;  %2428 = vmatprep.subr.bf16.mxu1 %v2427_v30  ;;  %v2397_v33 = vpack.c.bf16 %v1703_v54, %v1702_v17  ;;  %v2429_v55 = vpack.c.bf16 %v1735_v50, %v1734_v13  ;;  %v1709_v19 = vld [vmem:[#allocation7 + $0x38] sm:$0xff]  ;;  %v1740_v29 = vld [vmem:[#allocation7 + $0x130] sm:$0xff]  ;;  %v1727_v59 = vld [vmem:[#allocation7 + $0xc8] sm:$0xff] }
 0x1a1   : > { %v1332_v31 = vadd.f32 %v1331_v12, %v1330_v28  ;;  %v1540_v53 = vsel %vm1539_vm3, %v1359_v24, %v1538_v5  ;;  %v2399_v15 = vpack.c.bf16 %v1721_v61, %v1720_v44  ;;  %v2431_v41 = vpack.c.bf16 %v1753_v14, %v1752_v32  ;;  %v1741_v26 = vld [vmem:[#allocation7 + $0x138] sm:$0xff]  ;;  %v1758_v28 = vld [vmem:[#allocation7 + $0x1c0] sm:$0xff]  ;;  %v1759_v4 = vld [vmem:[#allocation7 + $0x1c8] sm:$0xff] }
 0x1a2   : > { %v1344_v22 = vadd.f32 %v1343_v21, %v1342_v6  ;;  %v1542_v25 = vsel %vm1541_vm4, %v1361_v52, %v1540_v53  ;;  %v2401_v35 = vpack.c.bf16 %v1705_v51, %v1704_v38  ;;  %v2433_v11 = vpack.c.bf16 %v1737_v0, %v1736_v27  ;;  %v1710_v6 = vld [vmem:[#allocation7 + $0x40] sm:$0xff]  ;;  %v1711_v52 = vld [vmem:[#allocation7 + $0x48] sm:$0xff]  ;;  %v1728_v7 = vld [vmem:[#allocation7 + $0xd0] sm:$0xff] }
 0x1a3   : > { %v1363_v34 = vadd.f32 %v1332_v31, %v1235_v62  ;;  %v2403_v40 = vpack.c.bf16 %v1723_v8, %v1722_v3  ;;  %v2435_v45 = vpack.c.bf16 %v1755_v10, %v1754_v37  ;;  %v2405_v1 = vpack.c.bf16 %v1707_v39, %v1706_v42  ;;  %v1742_v62 = vld [vmem:[#allocation7 + $0x140] sm:$0xff]  ;;  %v1743_v12 = vld [vmem:[#allocation7 + $0x148] sm:$0xff]  ;;  %v1760_v21 = vld [vmem:[#allocation7 + $0x1d0] sm:$0xff] }
 0x1a4   : > { %v1365_v20 = vadd.f32 %v1344_v22, %v1237_v18  ;;  %v2437_v57 = vpack.c.bf16 %v1739_v48, %v1738_v46  ;;  %v2407_v16 = vpack.c.bf16 %v1725_v58, %v1724_v49  ;;  %v2439_v56 = vpack.c.bf16 %v1757_v43, %v1756_v47  ;;  %v1729_v18 = vld [vmem:[#allocation7 + $0xd8] sm:$0xff]  ;;  %v1712_v31 = vld [vmem:[#allocation7 + $0x50] sm:$0xff]  ;;  %v1731_v61 = vld [vmem:[#allocation7 + $0xe8] sm:$0xff] }
 0x1a5   : > { %v1544_v36 = vsel %vm1543_vm5, %v1363_v34, %v1542_v25  ;;  %v2409_v24 = vpack.c.bf16 %v1709_v19, %v1708_v2  ;;  %v2441_v9 = vpack.c.bf16 %v1741_v26, %v1740_v29  ;;  %v2411_v60 = vpack.c.bf16 %v1727_v59, %v1726_v63  ;;  %v1761_v5 = vld [vmem:[#allocation7 + $0x1d8] sm:$0xff]  ;;  %v1744_v44 = vld [vmem:[#allocation7 + $0x150] sm:$0xff]  ;;  %v1730_v25 = vld [vmem:[#allocation7 + $0xe0] sm:$0xff] }
 0x1a6   : > { %v1546_v23 = vsel %vm1545_vm6, %v1365_v20, %v1544_v36  ;;  %v2443_v30 = vpack.c.bf16 %v1759_v4, %v1758_v28  ;;  %v2413_v17 = vpack.c.bf16 %v1711_v52, %v1710_v6  ;;  %v2445_v54 = vpack.c.bf16 %v1743_v12, %v1742_v62  ;;  %v1713_v53 = vld [vmem:[#allocation7 + $0x58] sm:$0xff]  ;;  %v1762_v32 = vld [vmem:[#allocation7 + $0x1e0] sm:$0xff]  ;;  %v1763_v14 = vld [vmem:[#allocation7 + $0x1e8] sm:$0xff] }
 0x1a7   : > { %1621 = vmatmul.mubr.f32.vlgmr.msra.gmra.mrb[0].mxu0 %v1546_v23  ;;  %1692 = vmatmul.mubr.f32.vlgmr.msra.gmra.mrb[0].mxu1 %v1546_v23  ;;  %v2415_v13 = vpack.c.bf16 %v1729_v18, %v1728_v7  ;;  %v2447_v50 = vpack.c.bf16 %v1761_v5, %v1760_v21  ;;  %v1745_v22 = vld [vmem:[#allocation7 + $0x158] sm:$0xff]  ;;  %v2417_v34 = vpack.c.bf16 %v1713_v53, %v1712_v31  ;;  %v1714_v38 = vld [vmem:[#allocation7 + $0x60] sm:$0xff]  ;;  %v1715_v51 = vld [vmem:[#allocation7 + $0x68] sm:$0xff]  ;;  %v2769_v46 = vmov 0.0|0.0  }
 0x1a8   : > { %2398 = vmatpush3.bf16.msra.mxu0 %v2397_v33  ;;  %2430 = vmatpush3.bf16.msra.mxu1 %v2429_v55  ;;  %v2449_v20 = vpack.c.bf16 %v1745_v22, %v1744_v44  ;;  %v2419_v33 = vpack.c.bf16 %v1731_v61, %v1730_v25  ;;  %v2451_v55 = vpack.c.bf16 %v1763_v14, %v1762_v32  ;;  %v1746_v36 = vld [vmem:[#allocation7 + $0x160] sm:$0xff]  ;;  %v1732_v0 = vld [vmem:[#allocation7 + $0xf0] sm:$0xff]  ;;  %v1733_v3 = vld [vmem:[#allocation7 + $0xf8] sm:$0xff]  ;;  %v1497_v48 = vlaneseq }
 0x1a9   : > { %2400 = vmatprep.subr.bf16.mxu0 %v2399_v15  ;;  %2432 = vmatprep.subr.bf16.mxu1 %v2431_v41  ;;  %v2421_v15 = vpack.c.bf16 %v1715_v51, %v1714_v38  ;;  %v1747_v41 = vld [vmem:[#allocation7 + $0x168] sm:$0xff]  ;;  %v1764_v23 = vld [vmem:[#allocation7 + $0x1f0] sm:$0xff]  ;;  %v2423_v8 = vpack.c.bf16 %v1733_v3, %v1732_v0  ;;  %v1765_v37 = vld [vmem:[#allocation7 + $0x1f8] sm:$0xff] }
 0x1aa   : > { %v2453_v27 = vpack.c.bf16 %v1747_v41, %v1746_v36  ;;  %v1716_v10 = vld [vmem:[#allocation7 + $0x70] sm:$0xff]  ;;  %v1498_v49 = vshrl.u32 %v1497_v48, 7  ;;  %v1495_v43 = vld [vmem:[%s3742_s2] sm:$0xf]  ;;  %v1917_v21 = vld [vmem:[#allocation8 + $0x18] sm:$0xff]  ;;  %v2771_v36 = vmov 0.0  }
 0x1ab   : > { %v1748_v39 = vld [vmem:[#allocation7 + $0x170] sm:$0xff]  ;;  %v1922_v44 = vld [vmem:[#allocation8 + $0x40] sm:$0xff]  ;;  %v1923_v22 = vld [vmem:[#allocation8 + $0x48] sm:$0xff] }
 0x1ac   : > { %2402 = vmatpush3.bf16.msra.mxu0 %v2401_v35  ;;  %2434 = vmatpush3.bf16.msra.mxu1 %v2433_v11  ;;  %v1717_v35 = vld [vmem:[#allocation7 + $0x78] sm:$0xff]  ;;  %v2455_v11 = vpack.c.bf16 %v1765_v37, %v1764_v23  ;;  %v1499_v58 = vsub.s32 0, %v1498_v49  ;;  %v1507_v47 = vsub.s32 2, %v1498_v49  ;;  %v1916_v18 = vld [vmem:[#allocation8 + $0x10] sm:$0xff]  ;;  %v2472_v25 = vpack.c.bf16 %v1923_v22, %v1922_v44 }
 0x1ad   : > { %2404 = vmatprep.subr.bf16.mxu0 %v2403_v40  ;;  %2436 = vmatprep.subr.bf16.mxu1 %v2435_v45  ;;  %v2425_v42 = vpack.c.bf16 %v1717_v35, %v1716_v10  ;;  %v1749_v40 = vld [vmem:[#allocation7 + $0x178] sm:$0xff]  ;;  %v2463_v5 = vpack.c.bf16 %v1917_v21, %v1916_v18  ;;  %v1920_v53 = vld [vmem:[#allocation8 + $0x30] sm:$0xff] }
 0x1ae   : > { %v2457_v45 = vpack.c.bf16 %v1749_v40, %v1748_v39  ;;  %v1500_v2 = vrot.slane %v1495_v43, %v1499_v58  ;;  %v1508_v19 = vrot.slane %v1495_v43, %v1507_v47  ;;  %v1924_v61 = vld [vmem:[#allocation8 + $0x50] sm:$0xff]  ;;  %v1925_v32 = vld [vmem:[#allocation8 + $0x58] sm:$0xff] }
 0x1af   : > { %v2475_v14 = vpack.c.bf16 %v1925_v32, %v1924_v61  ;;  %v1929_v38 = vld [vmem:[#allocation8 + $0x78] sm:$0xff] }
 0x1b0   : > { %2406 = vmatpush3.bf16.msra.mxu0 %v2405_v1  ;;  %2438 = vmatpush3.bf16.msra.mxu1 %v2437_v57  ;;  %v1503_v1 = vsub.s32 1, %v1498_v49  ;;  %v1511_v57 = vsub.s32 3, %v1498_v49 }
 0x1b1   : > { %2408 = vmatprep.subr.bf16.mxu0 %v2407_v16  ;;  %2440 = vmatprep.subr.bf16.mxu1 %v2439_v56 }
 0x1b2   : > { %v1504_v16 = vrot.slane %v1495_v43, %v1503_v1  ;;  %v1512_v56 = vrot.slane %v1495_v43, %v1511_v57 }
 0x1b4   : > { %2410 = vmatpush3.bf16.msra.mxu0 %v2409_v24  ;;  %2442 = vmatpush3.bf16.msra.mxu1 %v2441_v9  ;;  %v1914_v24 = vld [vmem:[#allocation8] sm:$0xff]  ;;  %v1915_v9 = vld [vmem:[#allocation8 + $0x8] sm:$0xff] }
 0x1b5   : > { %2412 = vmatprep.subr.bf16.mxu0 %v2411_v60  ;;  %2444 = vmatprep.subr.bf16.mxu1 %v2443_v30  ;;  %v2460_v12 = vpack.c.bf16 %v1915_v9, %v1914_v24 }
 0x1b8   : > { %2414 = vmatpush3.bf16.msra.mxu0 %v2413_v17  ;;  %2446 = vmatpush3.bf16.msra.mxu1 %v2445_v54  ;;  %v1918_v17 = vld [vmem:[#allocation8 + $0x20] sm:$0xff]  ;;  %v1919_v54 = vld [vmem:[#allocation8 + $0x28] sm:$0xff] }
 0x1b9   : > { %2416 = vmatprep.subr.bf16.mxu0 %v2415_v13  ;;  %2448 = vmatprep.subr.bf16.mxu1 %v2447_v50  ;;  %v2466_v31 = vpack.c.bf16 %v1919_v54, %v1918_v17  ;;  %v1921_v13 = vld [vmem:[#allocation8 + $0x38] sm:$0xff] }
 0x1ba   : > { %v2469_v50 = vpack.c.bf16 %v1921_v13, %v1920_v53 }
 0x1bc   : > { %2418 = vmatpush3.bf16.msra.mxu0 %v2417_v34  ;;  %2450 = vmatpush3.bf16.msra.mxu1 %v2449_v20  ;;  %v1926_v34 = vld [vmem:[#allocation8 + $0x60] sm:$0xff]  ;;  %v1927_v20 = vld [vmem:[#allocation8 + $0x68] sm:$0xff] }
 0x1bd   : > { %2420 = vmatprep.subr.bf16.mxu0 %v2419_v33  ;;  %2452 = vmatprep.subr.bf16.mxu1 %v2451_v55  ;;  %v2478_v33 = vpack.c.bf16 %v1927_v20, %v1926_v34  ;;  %v1928_v55 = vld [vmem:[#allocation8 + $0x70] sm:$0xff] }
 0x1be   : > { %v2481_v51 = vpack.c.bf16 %v1929_v38, %v1928_v55 }
 0x1c0   : > { %2422 = vmatpush3.bf16.msra.mxu0 %v2421_v15  ;;  %2454 = vmatpush3.bf16.msra.mxu1 %v2453_v27  ;;  %v2137_v27 = vld [vmem:[%s3744_s4] ss:$0 sm:$0xff] }
 0x1c1   : > { %2424 = vmatprep.subr.bf16.mxu0 %v2423_v8  ;;  %2456 = vmatprep.subr.bf16.mxu1 %v2455_v11  ;;  %v2138_v11 = vld [vmem:[%s3746_s6] ss:$0 sm:$0xff] }
 0x1c4   : > { %2426 = vmatpush3.bf16.msra.mxu0 %v2425_v42  ;;  %2458 = vmatpush3.bf16.msra.mxu1 %v2457_v45 }
 0x1c5   : > { %2459 = vmatprep.subr.bf16.mxu0 %v2769_v46 }
 0x27a   : > { %v1622_v29 = vpop.f32.mrb[0].mxu0  ;;  %v1693_v26 = vpop.f32.mrb[0].mxu1 }
 0x27b   : > { %v1623_v63 = vadd.f32 %v1622_v29, %v1500_v2  ;;  %v1694_v59 = vadd.f32 %v1693_v26, %v1508_v19  ;;  %v1624_v28 = vpop.f32.mrb[1].mxu0  ;;  %v1695_v4 = vpop.f32.mrb[1].mxu1 }
 0x27c   : > { %v1625_v6 = vadd.f32 %v1624_v28, %v1504_v16  ;;  %v1696_v52 = vadd.f32 %v1695_v4, %v1512_v56 }
 0x27d   : > { %v1700_v60 = vmax.f32 %v1694_v59, 0.0  ;;  %v1698_v7 = vmax.f32 %v1623_v63, 0.0 }
 0x27e   : > { %v1699_v30 = vmax.f32 %v1625_v6, 0.0  ;;  %v1701_v62 = vmax.f32 %v1696_v52, 0.0 }
 0x280   : > { %1837 = vmatprep.mubr.f32.mxu0 %v1699_v30  ;;  %1907 = vmatprep.mubr.f32.mxu1 %v1701_v62 }
 0x281   : > { %1838 = vmatmul.mubr.f32.vlgmr.msra.gmra.mrb[2].mxu0 %v1698_v7  ;;  %1908 = vmatmul.mubr.f32.vlgmr.msra.gmra.mrb[2].mxu1 %v1700_v60 }
 0x282   : > { %2461 = vmatpush3.bf16.msra.mxu0 %v2460_v12  ;;  %2264 = vmatprep.mubr.msk.f32.mxu0 %vm2770_vm7, %v2771_v36 }
 0x283   : > { %2462 = vmatprep.subr.bf16.mxu0 %v2769_v46 }
 0x286   : > { %2464 = vmatpush3.bf16.msra.mxu0 %v2463_v5 }
 0x287   : > { %2465 = vmatprep.subr.bf16.mxu0 %v2769_v46 }
 0x28a   : > { %2467 = vmatpush3.bf16.msra.mxu0 %v2466_v31 }
 0x28b   : > { %2468 = vmatprep.subr.bf16.mxu0 %v2769_v46 }
 0x28e   : > { %2470 = vmatpush3.bf16.msra.mxu0 %v2469_v50 }
 0x28f   : > { %2471 = vmatprep.subr.bf16.mxu0 %v2769_v46 }
 0x292   : > { %2473 = vmatpush3.bf16.msra.mxu0 %v2472_v25 }
 0x293   : > { %2474 = vmatprep.subr.bf16.mxu0 %v2769_v46 }
 0x296   : > { %2476 = vmatpush3.bf16.msra.mxu0 %v2475_v14 }
 0x297   : > { %2477 = vmatprep.subr.bf16.mxu0 %v2769_v46 }
 0x29a   : > { %2479 = vmatpush3.bf16.msra.mxu0 %v2478_v33 }
 0x29b   : > { %2480 = vmatprep.subr.bf16.mxu0 %v2769_v46 }
 0x29e   : > { %2482 = vmatpush3.bf16.msra.mxu0 %v2481_v51 }
 0x354   : > { %v2177_v15 = vpop.f32.mrb[2].mxu0  ;;  %v2212_v41 = vpop.f32.mrb[2].mxu1 }
 0x355   : > { %v2178_v0 = vpop.f32.mrb[3].mxu0  ;;  %v2213_v3 = vpop.f32.mrb[3].mxu1 }
 0x356   : > { %v2179_v23 = vadd.f32 %v2178_v0, %v2177_v15  ;;  %v2214_v8 = vadd.f32 %v2213_v3, %v2212_v41 }
 0x358   : > { %v1840_v37 = vadd.f32 %v2179_v23, %v2137_v27 }
 0x35a   : > { %v1910_v10 = vadd.f32 %v2214_v8, %v1840_v37 }
 0x35c   : > { %v1913_v35 = vmax.f32 %v1910_v10, 0.0 }
 0x35e   : > { %2265 = vmatmul.mubr.f32.vlgmr.msra.gmra.mrb[4].mxu0 %v1913_v35 }
 0x431   : > { %v2003_v42 = vpop.f32.mrb[4].mxu0 }
 0x432   : > { %v2004_v39 = vadd.f32 %v2138_v11, %v2003_v42  ;;  %v2266_v40 = vpop.f32.mrb[5].mxu0 }
 0x434   : > { %2007 = vst [vmem:[%s341_s23] sm:$0xff] %v2004_v39 }
 0x435   : > { %2696 = shalt.err (!%p2693_p4)
}
 0x436   : > { %s2697_s1 = scalar_lea.hbm %s3696_s8, 128  ;;  %s2701_s11 = scalar_lea.hbm %s3747_s7, 256 }
 0x437   : > { %p2698_p9 = scmp.ne.s32.totalorder %s3696_s8, %s2697_s1  ;;  %p2702_p8 = scmp.lt.u32.totalorder %s3696_s8, %s3747_s7 }
 0x438   : > { %p2703_p13 = scmp.lt.u32.totalorder %s2701_s11, %s2697_s1  ;;  %p2705_p10 = scmp.lt.u32.totalorder %s2697_s1, %s3696_s8 }
 0x439   : > { %p2699_p0 = pnand %p2698_p9, %p2955_p5 }
 0x43a   : > { %p2704_p6 = por %p2703_p13, %p2702_p8 }
 0x43b   : > { %p2700_p11 = pneg %p2699_p0 }
 0x43c   : > { %p2706_p3 = por %p2705_p10, %p2704_p6 }
 0x43e   : > { %p2707_p7 = pnand %p2706_p3, %p2700_p11 }
 0x440   : > { %2710 = shalt.err (!%p2707_p7)
}
 0x441   : > { %2497 = dma.vmem_to_hbm [thread:$0]  (%p2955_p5), %s3698_s10, 128, %s3696_s8, %s2009_s19  }
 0x442 PF: > { %s3789_s22 = sld [smem:[#allocation15_spill]]  ;;  %s2034_s23 = sand.u32 1, %s2745_s24  }
 0x443   : > { %p3791_p2 = scmp.ge.s32.totalorder %s2757_s27, 2  ;;  %s2035_s13 = scalar_lea.sflag [#allocation4], %s2034_s23 }
 0x448   : > { %p3790_p12 = scmp.ne.s32.totalorder %s3789_s22, 0 }
 0x44a   : > { %p2514_p1 = pnand %p3791_p2, %p3790_p12 }
 0x44c   : > { %2740 = dma.done.wait (!%p2514_p1), %s2035_s13, 128  }
 0x44d   : > { %2742 = vsyncadd (!%p2514_p1), %s2035_s13, 4294967168  ;;  %p22_p4 = scmp.ge.s32.totalorder %s2923_s18, 4   ;;  %s3792_s24 = smov %s2749_s25 }
 0x44e   : > { %s3793_s25 = smov %s2753_s26  ;;  %s3794_s26 = smov %s2951_s12 }
 0x44f   : > { %s3795_s27 = smov %s2923_s18  ;;  %24 = sbr.rel (!%p22_p4) target bundleno = 9 (0x9), region = 105 }
 0x456   :  { %2040 = vsyncpa [#allocation3], 1 }
 0x457   :  { %2042 = vsyncpa [#allocation3 + $0x1], 1 }
 0x458   :  { %2043 = vsyncpa [#allocation6], 1 }
 0x459   :  { %2044 = vsyncpa [#allocation9], 1 }
 0x45a   :  { %2045 = vsyncpa [#allocation4], 1 }
 0x45b   :  { %2047 = vsyncpa [#allocation4 + $0x1], 1 }

// kernel: tpu_custom_call.1
= control target key start
LH: loop header
LB: loop body
LE: loop exit
PB: predicated region body
PF: predicated region fallthrough
CT: control target
= control target key end

     0   :  { %s3740_s0 = inlined_call_operand.hbm [shape: f32[16,64,256], index: 0, kind: input, shape index: {}]   ;;  %s3741_s1 = inlined_call_operand.hbm [shape: f32[256,512], index: 1, kind: input, shape index: {}]   ;;  %s3742_s2 = inlined_call_operand.vmem [shape: f32[1,512], index: 2, kind: input, shape index: {}]   ;;  %s3743_s3 = inlined_call_operand.hbm [shape: f32[512,128], index: 3, kind: input, shape index: {}]   ;;  %s3744_s4 = inlined_call_operand.vmem [shape: f32[1,128], index: 4, kind: input, shape index: {}]   ;;  %s3745_s5 = inlined_call_operand.hbm [shape: f32[128,128], index: 5, kind: input, shape index: {}]   ;;  %s3746_s6 = inlined_call_operand.vmem [shape: f32[1,128], index: 6, kind: input, shape index: {}]   ;;  %s3747_s7 = inlined_call_operand.hbm [shape: f32[16,128], index: 7, kind: output, shape index: {}]  }
   0x1   :  { %3753 = sst [smem:[#allocation17_spill]] %s3741_s1 }
   0x2   :  { %12 = vsyncpa [#allocation3], 0 }
   0x3   :  { %14 = vsyncpa [#allocation3 + $0x1], 0 }
   0x4   :  { %15 = vsyncpa [#allocation6], 0 }
   0x5   :  { %16 = vsyncpa [#allocation9], 0 }
   0x6   :  { %17 = vsyncpa [#allocation4], 0 }
   0x7   :  { %19 = vsyncpa [#allocation4 + $0x1], 0  ;;  %s2813_s24 = smov 0   ;;  %s2815_s25 = smov 0  }
   0x8   :  { %s2817_s26 = smov 0   ;;  %s2819_s27 = smov 0  }
   0x9 LB: > { %s2834_s28 = sadd.s32 4294967295, %s2757_s27   ;;  %s2121_s29 = sadd.s32 4294967294, %s2757_s27   ;;  %s2757_s27 = sphi %s2819_s27, %s3795_s27   ;;  %s2753_s26 = sphi %s2817_s26, %s3794_s26   ;;  %s2749_s25 = sphi %s2815_s25, %s3793_s25   ;;  %s2745_s24 = sphi %s2813_s24, %s3792_s24  }
   0xa   : > { %p45_p0 = scmp.ne.s32.totalorder %s2749_s25, %s2745_s24  ;;  %p3748_p1 = scmp.eq.s32.totalorder %s2834_s28, 0 }
   0xb   : > { %p201_p3 = scmp.eq.s32.totalorder %s2121_s29, 1  ;;  %p2122_p5 = scmp.ge.s32.totalorder %s2757_s27, 1 }
   0xc   : > { %p2843_p4 = por %p3748_p1, %p45_p0  ;;  %p208_p7 = scmp.lt.s32.totalorder %s2757_s27, 3 }
   0xd   : > { %p2848_p6 = por %p201_p3, %p45_p0  ;;  %s2759_s10 = smov [#allocation5]  }
   0xe   : > { %s3754_s30 = scalar_select %p2843_p4, 1, 0 }
   0xf   : > { %s3755_s8 = scalar_select %p2848_p6, 1, 0 }
  0x10   : > { %p2853_p8 = pnand %p2122_p5, %p208_p7  ;;  %s220_s11 = sshll.u32 %s2759_s10, 4  ;;  %s2857_s11 = int_to_ptr.vmem [resolvable:$true] %s220_s11 }
  0x11   : > { %3756 = sst [smem:[#allocation15_spill]] %s3755_s8  ;;  %s2760_s13 = smov [#allocation7]  }
  0x12   : > { %s3757_s9 = scalar_select %p2853_p8, 1, 0 }
  0x13   : > { %p2499_p9 = pneg %p2853_p8  ;;  %s236_s14 = sshll.u32 %s2760_s13, 4  ;;  %s2868_s14 = int_to_ptr.vmem [resolvable:$true] %s236_s14 }
  0x14   : > { %s3759_s1 = sld [smem:[#allocation17_spill]] }
  0x15   : > { %p2864_p11 = pnand %p2499_p9, %p3748_p1 }
  0x17   : > { %p2878_p13 = pneg %p2864_p11 }
  0x1a   : > { %s2569_s17 = scalar_lea.hbm %s3759_s1, 16384 }
  0x1b   : > { %p2570_p12 = scmp.ne.s32.totalorder %s3759_s1, %s2569_s17  ;;  %p2576_p5 = scmp.lt.u32.totalorder %s2569_s17, %s3759_s1 }
  0x1d   : > { %p2572_p0 = pnand %p2878_p13, %p2570_p12 }
  0x1f   : > { %p2573_p3 = pneg %p2572_p0 }
  0x21   : > { %p2578_p7 = pnand %p2576_p5, %p2573_p3 }
  0x23   : > { %2581 = shalt.err (!%p2578_p7)
}
  0x24   : > { %s2582_s23 = scalar_lea.vmem %s2857_s11, 16384  ;;  %p2590_p2 = scmp.lt.s32.totalorder %s2857_s11, %s2857_s11 }
  0x25   : > { %p2583_p9 = scmp.ne.s32.totalorder %s2857_s11, %s2582_s23  ;;  %p2591_p6 = scmp.lt.s32.totalorder %s2582_s23, %s2582_s23 }
  0x27   : > { %p2585_p10 = pnand %p2583_p9, %p2878_p13  ;;  %p2592_p12 = por %p2591_p6, %p2590_p2 }
  0x29   : > { %p2586_p1 = pneg %p2585_p10 }
  0x2b   : > { %p2593_p0 = pnand %p2592_p12, %p2586_p1 }
  0x2d   : > { %2596 = shalt.err (!%p2593_p0)
}
  0x2e   : > { %s2761_s29 = smov 512   ;;  %s2762_s10 = smov 32  }
  0x2f   : > { %2502 = dma.hbm_to_vmem [thread:$0]  (!%p2864_p11), %s3759_s1, 16384, %s2857_s11, [#allocation6], %s2761_s29, %s2761_s29, %s2762_s10  }
  0x30   : > { %s2597_s18 = scalar_lea.hbm %s3743_s3, 8192 }
  0x31   : > { %p2598_p2 = scmp.ne.s32.totalorder %s3743_s3, %s2597_s18  ;;  %p2604_p10 = scmp.lt.u32.totalorder %s2597_s18, %s3743_s3 }
  0x33   : > { %p2600_p1 = pnand %p2598_p2, %p2878_p13 }
  0x35   : > { %p2601_p6 = pneg %p2600_p1 }
  0x37   : > { %p2606_p3 = pnand %p2604_p10, %p2601_p6 }
  0x39   : > { %2609 = shalt.err (!%p2606_p3)
}
  0x3a   : > { %s2610_s11 = scalar_lea.vmem %s2868_s14, 8192  ;;  %p2618_p12 = scmp.lt.s32.totalorder %s2868_s14, %s2868_s14 }
  0x3b   : > { %p2611_p5 = scmp.ne.s32.totalorder %s2868_s14, %s2610_s11  ;;  %p2619_p0 = scmp.lt.s32.totalorder %s2610_s11, %s2610_s11 }
  0x3d   : > { %p2613_p7 = pnand %p2611_p5, %p2878_p13  ;;  %p2620_p2 = por %p2619_p0, %p2618_p12 }
  0x3f   : > { %p2614_p9 = pneg %p2613_p7 }
  0x41   : > { %p2621_p1 = pnand %p2620_p2, %p2614_p9 }
  0x43   : > { %2624 = shalt.err (!%p2621_p1)
}
  0x44   : > { %s2763_s29 = smov 128   ;;  %s2764_s10 = smov 8  }
  0x45   : > { %2505 = dma.hbm_to_vmem [thread:$0]  (!%p2864_p11), %s3743_s3, 8192, %s2868_s14, [#allocation6], %s2763_s29, %s2763_s29, %s2764_s10  }
  0x46   : > { %s2765_s16 = smov [#allocation8]   ;;  %s2923_s18 = sadd.s32 1, %s2757_s27  }
  0x47   : > { %s252_s17 = sshll.u32 %s2765_s16, 4  ;;  %s2625_s22 = scalar_lea.hbm %s3745_s5, 2048  ;;  %s253_s17 = int_to_ptr.vmem [resolvable:$true] %s252_s17 }
  0x48   : > { %p2626_p6 = scmp.ne.s32.totalorder %s3745_s5, %s2625_s22  ;;  %p2632_p5 = scmp.lt.u32.totalorder %s2625_s22, %s3745_s5 }
  0x4a   : > { %p2628_p10 = pnand %p2626_p6, %p2878_p13 }
  0x4c   : > { %p2629_p3 = pneg %p2628_p10 }
  0x4e   : > { %p2634_p7 = pnand %p2632_p5, %p2629_p3 }
  0x50   : > { %2637 = shalt.err (!%p2634_p7)
}
  0x51   : > { %s2638_s14 = scalar_lea.vmem %s253_s17, 2048  ;;  %p2646_p2 = scmp.lt.s32.totalorder %s253_s17, %s253_s17 }
  0x52   : > { %p2639_p9 = scmp.ne.s32.totalorder %s253_s17, %s2638_s14  ;;  %p2647_p1 = scmp.lt.s32.totalorder %s2638_s14, %s2638_s14 }
  0x54   : > { %p2641_p12 = pnand %p2639_p9, %p2878_p13  ;;  %p2648_p4 = por %p2647_p1, %p2646_p2 }
  0x56   : > { %p2642_p0 = pneg %p2641_p12 }
  0x58   : > { %p2649_p8 = pnand %p2648_p4, %p2642_p0 }
  0x5a   : > { %2652 = shalt.err (!%p2649_p8)
}
  0x5b   : > { %2508 = dma.hbm_to_vmem [thread:$0]  (!%p2864_p11), %s3745_s5, 2048, %s253_s17, [#allocation9], %s2763_s29, %s2763_s29, %s2764_s10  }
  0x5c   : > { %s29_s1 = ssub.s32 %s2757_s27, %s2923_s18  ;;  %s32_s8 = sadd.s32 1, %s2753_s26 }
  0x5d   : > { %p30_p4 = scmp.eq.s32.totalorder %s29_s1, 0  ;;  %p39_p8 = scmp.ne.s32.totalorder %s2753_s26, %s2749_s25 }
  0x5e   : > { %p40_p13 = scmp.eq.s32.totalorder %s2757_s27, 0  ;;  %p2520_p6 = scmp.lt.s32.totalorder %s2757_s27, 2 }
  0x5f   : > { %s2951_s12 = scalar_select %p30_p4, %s2753_s26, %s32_s8  }
  0x60   : > { %p41_p10 = por %p40_p13, %p39_p8  ;;  %p3761_p3 = scmp.eq.s32.totalorder %s2834_s28, 1 }
  0x61   : > { %s269_s16 = sand.u32 1, %s2753_s26   ;;  %s2144_s19 = sshll.u32 %s2757_s27, 14 }
  0x62   : > { %p2955_p5 = por %p3761_p3, %p39_p8  ;;  %s2127_s21 = sshll.u32 %s269_s16, 10 }
  0x63   : > { %s2964_s29 = scalar_lea.hbm %s3740_s0, %s2144_s19  ;;  %s273_s10 = scalar_lea.vmem [#allocation2], %s2127_s21 }
  0x64   : > { %s281_s17 = sshll.u32 %s273_s10, 4  ;;  %p2966_p11 = pnand %p2520_p6, %p41_p10  ;;  %s2970_s17 = int_to_ptr.vmem [resolvable:$true] %s281_s17 }
  0x65   : > { %s2972_s14 = scalar_lea.sflag [#allocation3], %s269_s16  ;;  %s2653_s13 = scalar_lea.hbm %s2964_s29, 16384 }
  0x66   : > { %p2654_p7 = scmp.ne.s32.totalorder %s2964_s29, %s2653_s13  ;;  %p2655_p9 = pneg %p2966_p11 }
  0x67   : > { %s2658_s8 = scalar_lea.hbm %s3740_s0, 32768  ;;  %p2659_p2 = scmp.lt.u32.totalorder %s2964_s29, %s3740_s0 }
  0x68   : > { %p2656_p12 = pnand %p2655_p9, %p2654_p7  ;;  %p2660_p1 = scmp.lt.u32.totalorder %s2658_s8, %s2653_s13 }
  0x69   : > { %p2662_p8 = scmp.lt.u32.totalorder %s2653_s13, %s2964_s29 }
  0x6a   : > { %p2657_p0 = pneg %p2656_p12  ;;  %p2661_p4 = por %p2660_p1, %p2659_p2 }
  0x6c   : > { %p2663_p13 = por %p2662_p8, %p2661_p4 }
  0x6e   : > { %p2664_p6 = pnand %p2663_p13, %p2657_p0 }
  0x70   : > { %2667 = shalt.err (!%p2664_p6)
}
  0x71   : > { %s2668_s16 = scalar_lea.vmem %s2970_s17, 16384  ;;  %s2766_s22 = smov [#allocation2]  }
  0x72   : > { %p2669_p10 = scmp.ne.s32.totalorder %s2970_s17, %s2668_s16  ;;  %s2673_s23 = sshll.u32 %s2766_s22, 4  ;;  %s2674_s23 = int_to_ptr.vmem [resolvable:$false] %s2673_s23 }
  0x73   : > { %s2675_s10 = scalar_lea.vmem %s2674_s23, 32768  ;;  %p2676_p12 = scmp.lt.s32.totalorder %s2970_s17, %s2674_s23 }
  0x74   : > { %p2671_p3 = pnand %p2669_p10, %p2655_p9  ;;  %p2677_p2 = scmp.lt.s32.totalorder %s2675_s10, %s2668_s16 }
  0x76   : > { %p2672_p7 = pneg %p2671_p3  ;;  %p2678_p1 = por %p2677_p2, %p2676_p12 }
  0x78   : > { %p2679_p4 = pnand %p2678_p1, %p2672_p7 }
  0x7a   : > { %2682 = shalt.err (!%p2679_p4)
}
  0x7b   : > { %s2767_s13 = smov 256   ;;  %s2768_s15 = smov 16  }
  0x7c   : > { %2512 = dma.hbm_to_vmem [thread:$0]  (!%p2966_p11), %s2964_s29, 16384, %s2970_s17, %s2972_s14, %s2767_s13, %s2767_s13, %s2768_s15  }
  0x7d   : > { %p3764_p9 = scmp.ne.s32.totalorder %s3757_s9, 0 }
  0x7f   : > { %293 = sbr.rel (%p3764_p9) target bundleno = 1090 (0x442), region = 48 }
  0x86   : > { %s3003_s1 = sand.u32 1, %s2749_s25   ;;  %p3765_p0 = scmp.ne.s32.totalorder %s3754_s30, 0 }
  0x87   : > { %s2132_s8 = sshll.u32 %s3003_s1, 10  ;;  %s296_s19 = scalar_lea.sflag [#allocation3], %s3003_s1 }
  0x88   : > { %s3007_s21 = scalar_lea.vmem [#allocation2], %s2132_s8 }
  0x89   : > { %2728 = dma.done.wait (%p3765_p0), %s296_s19, 16384  }
  0x8a   : > { %2730 = vsyncadd (%p3765_p0), %s296_s19, 4294950912  ;;  %p3766_p11 = scmp.eq.s32.totalorder %s2834_s28, 0 }
  0x8c   : > { %2732 = dma.done.wait (%p3766_p11), [#allocation6], 24576   ;;  %p3767_p8 = pmov %p3766_p11 }
  0x8e   : > { %2734 = vsyncadd (%p3767_p8), [#allocation6], 4294942720  ;;  %p3768_p13 = pmov %p3767_p8 }
  0x8f   : > { %p3769_p6 = pmov %p3767_p8 }
  0x90   : > { %2736 = dma.done.wait (%p3768_p13), [#allocation9], 2048  }
  0x91   : > { %2738 = vsyncadd (%p3769_p6), [#allocation9], 4294965248  ;;  %v1368_v0 = vld [vmem:[#allocation5 + $0x8] sm:$0xff]  ;;  %v1370_v2 = vld [vmem:[#allocation5 + $0x18] sm:$0xff]  ;;  %vm1533_vm0 = vcmask 1041409   ;;  %vm1535_vm1 = vcmask 1042434  }
  0x92   : > { %v1372_v1 = vld [vmem:[#allocation5 + $0x28] sm:$0xff]  ;;  %v1374_v4 = vld [vmem:[#allocation5 + $0x38] sm:$0xff]  ;;  %v1367_v5 = vld [vmem:[#allocation5] sm:$0xff]  ;;  %vm1537_vm2 = vcmask 1043459   ;;  %vm1539_vm3 = vcmask 1044484   ;;  %vm1541_vm4 = vcmask 1045509  }
  0x93   : > { %v2267_v3 = vpack.c.bf16 %v1372_v1, %v1368_v0  ;;  %v1371_v6 = vld [vmem:[#allocation5 + $0x20] sm:$0xff]  ;;  %v2331_v7 = vpack.c.bf16 %v1374_v4, %v1370_v2  ;;  %v1369_v9 = vld [vmem:[#allocation5 + $0x10] sm:$0xff]  ;;  %v1376_v11 = vld [vmem:[#allocation5 + $0x48] sm:$0xff]  ;;  %vm1543_vm5 = vcmask 1046534   ;;  %vm1545_vm6 = vcmask 1047559   ;;  %s2136_s11 = sshll.u32 %s3003_s1, 3 }
  0x94   : > { %v2269_v8 = vpack.c.bf16 %v1371_v6, %v1367_v5  ;;  %v1373_v10 = vld [vmem:[#allocation5 + $0x30] sm:$0xff]  ;;  %v1380_v13 = vld [vmem:[#allocation5 + $0x68] sm:$0xff]  ;;  %v1378_v14 = vld [vmem:[#allocation5 + $0x58] sm:$0xff]  ;;  %vm2770_vm7 = vmmov 0   ;;  %s2140_s22 = sshll.u32 %s2834_s28, 7  ;;  %s341_s23 = scalar_lea.vmem [#allocation10], %s2136_s11 }
  0x95   : > { %2268 = vmatprep.subr.bf16.mxu0 %v2267_v3  ;;  %v2333_v12 = vpack.c.bf16 %v1373_v10, %v1369_v9  ;;  %v1382_v15 = vld [vmem:[#allocation5 + $0x78] sm:$0xff]  ;;  %2332 = vmatprep.subr.bf16.mxu1 %v2331_v7  ;;  %v2271_v16 = vpack.c.bf16 %v1380_v13, %v1376_v11  ;;  %v1375_v18 = vld [vmem:[#allocation5 + $0x40] sm:$0xff]  ;;  %v1377_v20 = vld [vmem:[#allocation5 + $0x50] sm:$0xff]  ;;  %s2022_s10 = sshll.u32 %s341_s23, 4  ;;  %s3696_s8 = scalar_lea.hbm %s3747_s7, %s2140_s22  ;;  %s3698_s10 = int_to_ptr.vmem [resolvable:$true] %s2022_s10 }
  0x96   : > { %2270 = vmatpush1.bf16.msra.mxu0 %v2269_v8  ;;  %v2335_v17 = vpack.c.bf16 %v1382_v15, %v1378_v14  ;;  %v1379_v19 = vld [vmem:[#allocation5 + $0x60] sm:$0xff]  ;;  %v1381_v22 = vld [vmem:[#allocation5 + $0x70] sm:$0xff]  ;;  %v1384_v23 = vld [vmem:[#allocation5 + $0x88] sm:$0xff]  ;;  %s2009_s19 = scalar_lea.sflag [#allocation4], %s3003_s1  ;;  %s2772_s28 = smov [#allocation10]  }
  0x97   : > { %2334 = vmatpush1.bf16.msra.mxu1 %v2333_v12  ;;  %v2273_v21 = vpack.c.bf16 %v1379_v19, %v1375_v18  ;;  %v1388_v24 = vld [vmem:[#allocation5 + $0xa8] sm:$0xff]  ;;  %2272 = vmatprep.subr.bf16.mxu0 %v2271_v16  ;;  %v2337_v25 = vpack.c.bf16 %v1381_v22, %v1377_v20  ;;  %v1386_v27 = vld [vmem:[#allocation5 + $0x98] sm:$0xff]  ;;  %v1383_v29 = vld [vmem:[#allocation5 + $0x80] sm:$0xff]  ;;  %s2687_s30 = sshll.u32 %s2772_s28, 4  ;;  %s2688_s30 = int_to_ptr.vmem [resolvable:$false] %s2687_s30 }
  0x98   : > { %2336 = vmatprep.subr.bf16.mxu1 %v2335_v17  ;;  %v2275_v26 = vpack.c.bf16 %v1388_v24, %v1384_v23  ;;  %v1390_v28 = vld [vmem:[#allocation5 + $0xb8] sm:$0xff]  ;;  %v1387_v31 = vld [vmem:[#allocation5 + $0xa0] sm:$0xff]  ;;  %v1385_v32 = vld [vmem:[#allocation5 + $0x90] sm:$0xff]  ;;  %s2689_s9 = scalar_lea.vmem %s2688_s30, 256  ;;  %p2690_p12 = scmp.lt.s32.totalorder %s3698_s10, %s2688_s30 }
  0x99   : > { %v2339_v30 = vpack.c.bf16 %v1390_v28, %v1386_v27  ;;  %v1389_v33 = vld [vmem:[#allocation5 + $0xb0] sm:$0xff]  ;;  %v2277_v34 = vpack.c.bf16 %v1387_v31, %v1383_v29  ;;  %v1392_v35 = vld [vmem:[#allocation5 + $0xc8] sm:$0xff]  ;;  %v1394_v37 = vld [vmem:[#allocation5 + $0xd8] sm:$0xff] }
  0x9a   : > { %2274 = vmatpush1.bf16.msra.mxu0 %v2273_v21  ;;  %v1396_v36 = vld [vmem:[#allocation5 + $0xe8] sm:$0xff]  ;;  %v2341_v38 = vpack.c.bf16 %v1389_v33, %v1385_v32  ;;  %v1398_v40 = vld [vmem:[#allocation5 + $0xf8] sm:$0xff]  ;;  %v1391_v41 = vld [vmem:[#allocation5 + $0xc0] sm:$0xff] }
  0x9b   : > { %2338 = vmatpush1.bf16.msra.mxu1 %v2337_v25  ;;  %2276 = vmatprep.subr.bf16.mxu0 %v2275_v26  ;;  %v2279_v39 = vpack.c.bf16 %v1396_v36, %v1392_v35  ;;  %v1395_v42 = vld [vmem:[#allocation5 + $0xe0] sm:$0xff]  ;;  %v2343_v43 = vpack.c.bf16 %v1398_v40, %v1394_v37  ;;  %v1393_v44 = vld [vmem:[#allocation5 + $0xd0] sm:$0xff]  ;;  %v1400_v46 = vld [vmem:[#allocation5 + $0x108] sm:$0xff] }
  0x9c   : > { %2340 = vmatprep.subr.bf16.mxu1 %v2339_v30  ;;  %v1397_v45 = vld [vmem:[#allocation5 + $0xf0] sm:$0xff]  ;;  %v1404_v47 = vld [vmem:[#allocation5 + $0x128] sm:$0xff]  ;;  %v1402_v48 = vld [vmem:[#allocation5 + $0x118] sm:$0xff]  ;;  %v2281_v50 = vpack.c.bf16 %v1395_v42, %v1391_v41 }
  0x9d   : > { %v1406_v49 = vld [vmem:[#allocation5 + $0x138] sm:$0xff]  ;;  %v2345_v51 = vpack.c.bf16 %v1397_v45, %v1393_v44  ;;  %v2283_v52 = vpack.c.bf16 %v1404_v47, %v1400_v46  ;;  %v1399_v53 = vld [vmem:[#allocation5 + $0x100] sm:$0xff]  ;;  %v1401_v55 = vld [vmem:[#allocation5 + $0x110] sm:$0xff] }
  0x9e   : > { %2278 = vmatpush1.bf16.msra.mxu0 %v2277_v34  ;;  %v1403_v54 = vld [vmem:[#allocation5 + $0x120] sm:$0xff]  ;;  %v2347_v56 = vpack.c.bf16 %v1406_v49, %v1402_v48  ;;  %v1405_v57 = vld [vmem:[#allocation5 + $0x130] sm:$0xff]  ;;  %v1408_v58 = vld [vmem:[#allocation5 + $0x148] sm:$0xff] }
  0x9f   : > { %2342 = vmatpush1.bf16.msra.mxu1 %v2341_v38  ;;  %2280 = vmatprep.subr.bf16.mxu0 %v2279_v39  ;;  %v1412_v59 = vld [vmem:[#allocation5 + $0x168] sm:$0xff]  ;;  %v1410_v60 = vld [vmem:[#allocation5 + $0x158] sm:$0xff]  ;;  %v2285_v62 = vpack.c.bf16 %v1403_v54, %v1399_v53  ;;  %v2349_v63 = vpack.c.bf16 %v1405_v57, %v1401_v55  ;;  %v1407_v1 = vld [vmem:[#allocation5 + $0x140] sm:$0xff] }
  0xa0   : > { %2344 = vmatprep.subr.bf16.mxu1 %v2343_v43  ;;  %v1414_v61 = vld [vmem:[#allocation5 + $0x178] sm:$0xff]  ;;  %v2287_v0 = vpack.c.bf16 %v1412_v59, %v1408_v58  ;;  %v1411_v2 = vld [vmem:[#allocation5 + $0x160] sm:$0xff]  ;;  %v1409_v3 = vld [vmem:[#allocation5 + $0x150] sm:$0xff] }
  0xa1   : > { %v2351_v4 = vpack.c.bf16 %v1414_v61, %v1410_v60  ;;  %v1413_v5 = vld [vmem:[#allocation5 + $0x170] sm:$0xff]  ;;  %v1416_v6 = vld [vmem:[#allocation5 + $0x188] sm:$0xff]  ;;  %v1418_v8 = vld [vmem:[#allocation5 + $0x198] sm:$0xff]  ;;  %v2289_v10 = vpack.c.bf16 %v1411_v2, %v1407_v1 }
  0xa2   : > { %2282 = vmatpush1.bf16.msra.mxu0 %v2281_v50  ;;  %v1420_v7 = vld [vmem:[#allocation5 + $0x1a8] sm:$0xff]  ;;  %v1422_v9 = vld [vmem:[#allocation5 + $0x1b8] sm:$0xff]  ;;  %v2353_v11 = vpack.c.bf16 %v1413_v5, %v1409_v3  ;;  %v1415_v13 = vld [vmem:[#allocation5 + $0x180] sm:$0xff] }
  0xa3   : > { %2346 = vmatpush1.bf16.msra.mxu1 %v2345_v51  ;;  %2284 = vmatprep.subr.bf16.mxu0 %v2283_v52  ;;  %v2291_v12 = vpack.c.bf16 %v1420_v7, %v1416_v6  ;;  %v1419_v14 = vld [vmem:[#allocation5 + $0x1a0] sm:$0xff]  ;;  %v1417_v15 = vld [vmem:[#allocation5 + $0x190] sm:$0xff]  ;;  %v2355_v16 = vpack.c.bf16 %v1422_v9, %v1418_v8  ;;  %v1424_v18 = vld [vmem:[#allocation5 + $0x1c8] sm:$0xff] }
  0xa4   : > { %2348 = vmatprep.subr.bf16.mxu1 %v2347_v56  ;;  %v1421_v17 = vld [vmem:[#allocation5 + $0x1b0] sm:$0xff]  ;;  %v1428_v19 = vld [vmem:[#allocation5 + $0x1e8] sm:$0xff]  ;;  %v1426_v20 = vld [vmem:[#allocation5 + $0x1d8] sm:$0xff]  ;;  %v2293_v22 = vpack.c.bf16 %v1419_v14, %v1415_v13 }
  0xa5   : > { %v1430_v21 = vld [vmem:[#allocation5 + $0x1f8] sm:$0xff]  ;;  %v2357_v23 = vpack.c.bf16 %v1421_v17, %v1417_v15  ;;  %v2295_v24 = vpack.c.bf16 %v1428_v19, %v1424_v18  ;;  %v1423_v25 = vld [vmem:[#allocation5 + $0x1c0] sm:$0xff]  ;;  %v1425_v27 = vld [vmem:[#allocation5 + $0x1d0] sm:$0xff] }
  0xa6   : > { %2286 = vmatpush1.bf16.msra.mxu0 %v2285_v62  ;;  %v1427_v26 = vld [vmem:[#allocation5 + $0x1e0] sm:$0xff]  ;;  %v2359_v28 = vpack.c.bf16 %v1430_v21, %v1426_v20  ;;  %v1429_v29 = vld [vmem:[#allocation5 + $0x1f0] sm:$0xff]  ;;  %v1432_v30 = vld [vmem:[#allocation5 + $0x208] sm:$0xff] }
  0xa7   : > { %2350 = vmatpush1.bf16.msra.mxu1 %v2349_v63  ;;  %2288 = vmatprep.subr.bf16.mxu0 %v2287_v0  ;;  %v1436_v31 = vld [vmem:[#allocation5 + $0x228] sm:$0xff]  ;;  %v1434_v32 = vld [vmem:[#allocation5 + $0x218] sm:$0xff]  ;;  %v2297_v34 = vpack.c.bf16 %v1427_v26, %v1423_v25  ;;  %v1431_v35 = vld [vmem:[#allocation5 + $0x200] sm:$0xff]  ;;  %v2361_v36 = vpack.c.bf16 %v1429_v29, %v1425_v27 }
  0xa8   : > { %2352 = vmatprep.subr.bf16.mxu1 %v2351_v4  ;;  %v1438_v33 = vld [vmem:[#allocation5 + $0x238] sm:$0xff]  ;;  %v2299_v37 = vpack.c.bf16 %v1436_v31, %v1432_v30  ;;  %v1435_v38 = vld [vmem:[#allocation5 + $0x220] sm:$0xff]  ;;  %v1433_v39 = vld [vmem:[#allocation5 + $0x210] sm:$0xff] }
  0xa9   : > { %v1437_v40 = vld [vmem:[#allocation5 + $0x230] sm:$0xff]  ;;  %v2363_v41 = vpack.c.bf16 %v1438_v33, %v1434_v32  ;;  %v1440_v42 = vld [vmem:[#allocation5 + $0x248] sm:$0xff]  ;;  %v1442_v44 = vld [vmem:[#allocation5 + $0x258] sm:$0xff]  ;;  %v2301_v48 = vpack.c.bf16 %v1435_v38, %v1431_v35 }
  0xaa   : > { %2290 = vmatpush1.bf16.msra.mxu0 %v2289_v10  ;;  %v1444_v43 = vld [vmem:[#allocation5 + $0x268] sm:$0xff]  ;;  %v1446_v45 = vld [vmem:[#allocation5 + $0x278] sm:$0xff]  ;;  %v3021_v46 = vld [vmem:[#allocation5 + $0x240] sm:$0xff]  ;;  %v2365_v53 = vpack.c.bf16 %v1437_v40, %v1433_v39 }
  0xab   : > { %2354 = vmatpush1.bf16.msra.mxu1 %v2353_v11  ;;  %2292 = vmatprep.subr.bf16.mxu0 %v2291_v12  ;;  %v3023_v47 = vld [vmem:[#allocation5 + $0x260] sm:$0xff]  ;;  %v3025_v49 = vld [vmem:[#allocation5 + $0x250] sm:$0xff]  ;;  %v3029_v51 = vld [vmem:[#allocation5 + $0x288] sm:$0xff]  ;;  %v2303_v54 = vpack.c.bf16 %v1444_v43, %v1440_v42  ;;  %v2367_v63 = vpack.c.bf16 %v1446_v45, %v1442_v44 }
  0xac   : > { %2356 = vmatprep.subr.bf16.mxu1 %v2355_v16  ;;  %v3027_v50 = vld [vmem:[#allocation5 + $0x270] sm:$0xff]  ;;  %v3031_v52 = vld [vmem:[#allocation5 + $0x2a8] sm:$0xff]  ;;  %v3033_v55 = vld [vmem:[#allocation5 + $0x298] sm:$0xff]  ;;  %v2305_v16 = vpack.c.bf16 %v3023_v47, %v3021_v46 }
  0xad   : > { %v3035_v56 = vld [vmem:[#allocation5 + $0x2b8] sm:$0xff]  ;;  %v3037_v57 = vld [vmem:[#allocation5 + $0x280] sm:$0xff]  ;;  %v3041_v59 = vld [vmem:[#allocation5 + $0x290] sm:$0xff] }
  0xae   : > { %2294 = vmatpush1.bf16.msra.mxu0 %v2293_v22  ;;  %v3039_v58 = vld [vmem:[#allocation5 + $0x2a0] sm:$0xff]  ;;  %v3043_v60 = vld [vmem:[#allocation5 + $0x2b0] sm:$0xff]  ;;  %v3045_v61 = vld [vmem:[#allocation5 + $0x2c8] sm:$0xff]  ;;  %v2369_v22 = vpack.c.bf16 %v3027_v50, %v3025_v49  ;;  %v2371_v27 = vpack.c.bf16 %v3035_v56, %v3033_v55 }
  0xaf   : > { %2358 = vmatpush1.bf16.msra.mxu1 %v2357_v23  ;;  %2296 = vmatprep.subr.bf16.mxu0 %v2295_v24  ;;  %v3047_v62 = vld [vmem:[#allocation5 + $0x2e8] sm:$0xff]  ;;  %v3049_v0 = vld [vmem:[#allocation5 + $0x2d8] sm:$0xff]  ;;  %v3053_v2 = vld [vmem:[#allocation5 + $0x2c0] sm:$0xff]  ;;  %v2307_v23 = vpack.c.bf16 %v3031_v52, %v3029_v51  ;;  %v2373_v29 = vpack.c.bf16 %v3043_v60, %v3041_v59 }
  0xb0   : > { %2360 = vmatprep.subr.bf16.mxu1 %v2359_v28  ;;  %v3051_v1 = vld [vmem:[#allocation5 + $0x2f8] sm:$0xff]  ;;  %v3055_v3 = vld [vmem:[#allocation5 + $0x2e0] sm:$0xff]  ;;  %v3057_v4 = vld [vmem:[#allocation5 + $0x2d0] sm:$0xff]  ;;  %v2309_v28 = vpack.c.bf16 %v3039_v58, %v3037_v57  ;;  %v2311_v30 = vpack.c.bf16 %v3047_v62, %v3045_v61 }
  0xb1   : > { %v3059_v5 = vld [vmem:[#allocation5 + $0x2f0] sm:$0xff]  ;;  %v3061_v6 = vld [vmem:[#allocation5 + $0x308] sm:$0xff]  ;;  %v3065_v8 = vld [vmem:[#allocation5 + $0x318] sm:$0xff]  ;;  %v2313_v35 = vpack.c.bf16 %v3055_v3, %v3053_v2 }
  0xb2   : > { %2298 = vmatpush1.bf16.msra.mxu0 %v2297_v34  ;;  %v3063_v7 = vld [vmem:[#allocation5 + $0x328] sm:$0xff]  ;;  %v3067_v9 = vld [vmem:[#allocation5 + $0x338] sm:$0xff]  ;;  %v3069_v10 = vld [vmem:[#allocation5 + $0x300] sm:$0xff]  ;;  %v2375_v34 = vpack.c.bf16 %v3051_v1, %v3049_v0 }
  0xb3   : > { %2362 = vmatpush1.bf16.msra.mxu1 %v2361_v36  ;;  %2300 = vmatprep.subr.bf16.mxu0 %v2299_v37  ;;  %v3071_v11 = vld [vmem:[#allocation5 + $0x320] sm:$0xff]  ;;  %v3073_v12 = vld [vmem:[#allocation5 + $0x310] sm:$0xff]  ;;  %v3077_v14 = vld [vmem:[#allocation5 + $0x348] sm:$0xff] }
  0xb4   : > { %2364 = vmatprep.subr.bf16.mxu1 %v2363_v41  ;;  %v3075_v13 = vld [vmem:[#allocation5 + $0x330] sm:$0xff]  ;;  %v3079_v15 = vld [vmem:[#allocation5 + $0x368] sm:$0xff]  ;;  %v3083_v17 = vld [vmem:[#allocation5 + $0x358] sm:$0xff] }
  0xb5   : > { %v3085_v18 = vld [vmem:[#allocation5 + $0x378] sm:$0xff]  ;;  %v3087_v19 = vld [vmem:[#allocation5 + $0x340] sm:$0xff]  ;;  %v3091_v21 = vld [vmem:[#allocation5 + $0x350] sm:$0xff] }
  0xb6   : > { %2302 = vmatpush1.bf16.msra.mxu0 %v2301_v48  ;;  %v3089_v20 = vld [vmem:[#allocation5 + $0x360] sm:$0xff]  ;;  %v3097_v24 = vld [vmem:[#allocation5 + $0x370] sm:$0xff]  ;;  %v3099_v25 = vld [vmem:[#allocation5 + $0x388] sm:$0xff] }
  0xb7   : > { %2366 = vmatpush1.bf16.msra.mxu1 %v2365_v53  ;;  %2304 = vmatprep.subr.bf16.mxu0 %v2303_v54  ;;  %v3101_v26 = vld [vmem:[#allocation5 + $0x3a8] sm:$0xff]  ;;  %v3111_v31 = vld [vmem:[#allocation5 + $0x398] sm:$0xff]  ;;  %v3115_v33 = vld [vmem:[#allocation5 + $0x380] sm:$0xff] }
  0xb8   : > { %2368 = vmatprep.subr.bf16.mxu1 %v2367_v63  ;;  %v3113_v32 = vld [vmem:[#allocation5 + $0x3b8] sm:$0xff]  ;;  %v3125_v38 = vld [vmem:[#allocation5 + $0x3a0] sm:$0xff]  ;;  %v3127_v39 = vld [vmem:[#allocation5 + $0x390] sm:$0xff] }
  0xb9   : > { %v3129_v40 = vld [vmem:[#allocation5 + $0x3b0] sm:$0xff]  ;;  %v3139_v45 = vld [vmem:[#allocation5 + $0x3c8] sm:$0xff]  ;;  %v3143_v47 = vld [vmem:[#allocation5 + $0x3d8] sm:$0xff] }
  0xba   : > { %2306 = vmatpush1.bf16.msra.mxu0 %v2305_v16  ;;  %v3141_v46 = vld [vmem:[#allocation5 + $0x3e8] sm:$0xff]  ;;  %v3151_v51 = vld [vmem:[#allocation5 + $0x3f8] sm:$0xff]  ;;  %v3153_v52 = vld [vmem:[#allocation5 + $0x3c0] sm:$0xff] }
  0xbb   : > { %2370 = vmatpush1.bf16.msra.mxu1 %v2369_v22  ;;  %2308 = vmatprep.subr.bf16.mxu0 %v2307_v23  ;;  %v3155_v53 = vld [vmem:[#allocation5 + $0x3e0] sm:$0xff]  ;;  %v3165_v58 = vld [vmem:[#allocation5 + $0x3d0] sm:$0xff]  ;;  %v344_v60 = vld [vmem:[%s3007_s21 + $0x8] sm:$0xff] }
  0xbc   : > { %2372 = vmatprep.subr.bf16.mxu1 %v2371_v27  ;;  %3770 = vst [vmem:[#allocation16_spill] sm:$0xff] %v3165_v58  ;;  %v3167_v59 = vld [vmem:[#allocation5 + $0x3f0] sm:$0xff]  ;;  %v346_v0 = vld [vmem:[%s3007_s21 + $0x88] sm:$0xff]  ;;  %v365_v3 = vrot.slane %v344_v60, 4 }
  0xbd   : > { %v348_v1 = vld [vmem:[%s3007_s21 + $0x108] sm:$0xff]  ;;  %v377_v57 = vrot.slane %v346_v0, 4 }
  0xbe   : > { %v350_v2 = vld [vmem:[%s3007_s21 + $0x188] sm:$0xff]  ;;  %2310 = vmatpush1.bf16.msra.mxu0 %v2309_v28  ;;  %v389_v61 = vrot.slane %v348_v1, 4  ;;  %v366_v55 = vadd.f32 %v365_v3, %v344_v60  ;;  %v482_v3 = vld [vmem:[%s3007_s21 + $0x298] sm:$0xff] }
  0xbf   : > { %v352_v22 = vld [vmem:[%s3007_s21 + $0x208] sm:$0xff]  ;;  %v401_v56 = vrot.slane %v350_v2, 4  ;;  %2374 = vmatpush1.bf16.msra.mxu1 %v2373_v29  ;;  %2312 = vmatprep.subr.bf16.mxu0 %v2311_v30  ;;  %v378_v49 = vadd.f32 %v377_v57, %v346_v0  ;;  %v3771_v30 = vpack.c.bf16 %v3059_v5, %v3057_v4 }
  0xc0   : > { %v354_v23 = vld [vmem:[%s3007_s21 + $0x288] sm:$0xff]  ;;  %v413_v54 = vrot.slane %v352_v22, 4  ;;  %2376 = vmatprep.subr.bf16.mxu1 %v2375_v34  ;;  %v390_v48 = vadd.f32 %v389_v61, %v348_v1  ;;  %v367_v43 = vrot.slane %v366_v55, 2  ;;  %v3772_v34 = vpack.c.bf16 %v3063_v7, %v3061_v6 }
  0xc1   : > { %v356_v27 = vld [vmem:[%s3007_s21 + $0x308] sm:$0xff]  ;;  %v425_v63 = vrot.slane %v354_v23, 4  ;;  %v402_v28 = vadd.f32 %v401_v56, %v350_v2  ;;  %v379_v37 = vrot.slane %v378_v49, 2  ;;  %v3774_v7 = vpack.c.bf16 %v3071_v11, %v3069_v10  ;;  %v480_v2 = vld [vmem:[%s3007_s21 + $0x218] sm:$0xff] }
  0xc2   : > { %v358_v62 = vld [vmem:[%s3007_s21 + $0x388] sm:$0xff]  ;;  %v437_v50 = vrot.slane %v356_v27, 4  ;;  %v414_v16 = vadd.f32 %v413_v54, %v352_v22  ;;  %2314 = vmatpush1.bf16.msra.mxu0 %v2313_v35  ;;  %v391_v36 = vrot.slane %v390_v48, 2  ;;  %v368_v57 = vadd.f32 %v367_v43, %v366_v55 }
  0xc3   : > { %v449_v44 = vrot.slane %v358_v62, 4  ;;  %v426_v42 = vadd.f32 %v425_v63, %v354_v23  ;;  %v403_v58 = vrot.slane %v402_v28, 2  ;;  %2378 = vmatpush1.bf16.msra.mxu1 %v3771_v30  ;;  %2316 = vmatprep.subr.bf16.mxu0 %v3772_v34  ;;  %v3773_v35 = vpack.c.bf16 %v3067_v9, %v3065_v8  ;;  %v472_v9 = vld [vmem:[%s3007_s21 + $0x18] sm:$0xff] }
  0xc4   : > { %v438_v41 = vadd.f32 %v437_v50, %v356_v27  ;;  %v415_v56 = vrot.slane %v414_v16, 2  ;;  %v380_v50 = vadd.f32 %v379_v37, %v378_v49  ;;  %v392_v61 = vadd.f32 %v391_v36, %v390_v48  ;;  %v474_v48 = vld [vmem:[%s3007_s21 + $0x98] sm:$0xff] }
  0xc5   : > { %v450_v29 = vadd.f32 %v449_v44, %v358_v62  ;;  %v427_v60 = vrot.slane %v426_v42, 2  ;;  %2380 = vmatprep.subr.bf16.mxu1 %v3773_v35  ;;  %v404_v44 = vadd.f32 %v403_v58, %v402_v28  ;;  %v369_v63 = vrot.slane %v368_v57, 1  ;;  %v476_v49 = vld [vmem:[%s3007_s21 + $0x118] sm:$0xff] }
  0xc6   : > { %v439_v54 = vrot.slane %v438_v41, 2  ;;  %v416_v4 = vadd.f32 %v415_v56, %v414_v16  ;;  %2318 = vmatpush1.bf16.msra.mxu0 %v3774_v7  ;;  %v381_v43 = vrot.slane %v380_v50, 1  ;;  %v393_v55 = vrot.slane %v392_v61, 1  ;;  %v478_v58 = vld [vmem:[%s3007_s21 + $0x198] sm:$0xff] }
  0xc7   : > { %v451_v62 = vrot.slane %v450_v29, 2  ;;  %v428_v5 = vadd.f32 %v427_v60, %v426_v42  ;;  %v405_v0 = vrot.slane %v404_v44, 1  ;;  %v3775_v36 = vpack.c.bf16 %v3075_v13, %v3073_v12  ;;  %v484_v16 = vld [vmem:[%s3007_s21 + $0x318] sm:$0xff] }
  0xc8   : > { %v440_v6 = vadd.f32 %v439_v54, %v438_v41  ;;  %v3776_v37 = vpack.c.bf16 %v3079_v15, %v3077_v14  ;;  %v3204_v41 = vadd.f32 %v369_v63, %v368_v57  ;;  %v417_v10 = vrot.slane %v416_v4, 1  ;;  %v486_v28 = vld [vmem:[%s3007_s21 + $0x398] sm:$0xff] }
  0xc9   : > { %v452_v8 = vadd.f32 %v451_v62, %v450_v29  ;;  %2382 = vmatpush1.bf16.msra.mxu1 %v3775_v36  ;;  %v429_v11 = vrot.slane %v428_v5, 1  ;;  %v3777_v1 = vpack.c.bf16 %v3085_v18, %v3083_v17  ;;  %v3212_v12 = vadd.f32 %v381_v43, %v380_v50 }
  0xca   : > { %2320 = vmatprep.subr.bf16.mxu0 %v3776_v37  ;;  %v441_v42 = vrot.slane %v440_v6, 1  ;;  %v3214_v13 = vadd.f32 %v393_v55, %v392_v61  ;;  %v3216_v14 = vadd.f32 %v405_v0, %v404_v44  ;;  %v3221_v22 = vadd.f32 %v417_v10, %v416_v4 }
  0xcb   : > { %2384 = vmatprep.subr.bf16.mxu1 %v3777_v1  ;;  %v453_v15 = vrot.slane %v452_v8, 1  ;;  %v3223_v23 = vadd.f32 %v429_v11, %v428_v5  ;;  %v493_v29 = vrot.slane %v472_v9, 4  ;;  %v3778_v17 = vpack.c.bf16 %v3089_v20, %v3087_v19 }
  0xcc   : > { %v3225_v27 = vadd.f32 %v441_v42, %v440_v6  ;;  %v505_v30 = vrot.slane %v474_v48, 4  ;;  %v517_v34 = vrot.slane %v476_v49, 4  ;;  %v529_v57 = vrot.slane %v478_v58, 4 }
  0xcd   : > { %2322 = vmatpush1.bf16.msra.mxu0 %v3778_v17  ;;  %v3231_v18 = vadd.f32 %v453_v15, %v452_v8  ;;  %v3779_v56 = vpack.c.bf16 %v3097_v24, %v3091_v21  ;;  %v3780_v60 = vpack.c.bf16 %v3101_v26, %v3099_v25  ;;  %v494_v54 = vadd.f32 %v493_v29, %v472_v9  ;;  %v600_v29 = vld [vmem:[%s3007_s21 + $0x28] sm:$0xff] }
  0xce   : > { %v541_v35 = vrot.slane %v480_v2, 4  ;;  %v553_v50 = vrot.slane %v482_v3, 4  ;;  %v565_v61 = vrot.slane %v484_v16, 4  ;;  %v3781_v19 = vpack.c.bf16 %v3113_v32, %v3111_v31 }
  0xcf   : > { %2386 = vmatpush1.bf16.msra.mxu1 %v3779_v56  ;;  %2324 = vmatprep.subr.bf16.mxu0 %v3780_v60  ;;  %v506_v20 = vadd.f32 %v505_v30, %v474_v48  ;;  %v518_v44 = vadd.f32 %v517_v34, %v476_v49  ;;  %v530_v62 = vadd.f32 %v529_v57, %v478_v58  ;;  %v577_v63 = vrot.slane %v486_v28, 4  ;;  %v602_v57 = vld [vmem:[%s3007_s21 + $0xa8] sm:$0xff] }
  0xd0   : > { %2388 = vmatprep.subr.bf16.mxu1 %v3781_v19  ;;  %v495_v4 = vrot.slane %v494_v54, 2  ;;  %v542_v5 = vadd.f32 %v541_v35, %v480_v2  ;;  %v554_v21 = vadd.f32 %v553_v50, %v482_v3  ;;  %v566_v24 = vadd.f32 %v565_v61, %v484_v16  ;;  %v604_v56 = vld [vmem:[%s3007_s21 + $0x128] sm:$0xff] }
  0xd1   : > { %v3782_v25 = vpack.c.bf16 %v3125_v38, %v3115_v33  ;;  %v507_v26 = vrot.slane %v506_v20, 2  ;;  %v519_v6 = vrot.slane %v518_v44, 2  ;;  %v531_v7 = vrot.slane %v530_v62, 2  ;;  %v606_v60 = vld [vmem:[%s3007_s21 + $0x1a8] sm:$0xff] }
  0xd2   : > { %v578_v43 = vadd.f32 %v577_v63, %v486_v28  ;;  %v3783_v31 = vpack.c.bf16 %v3129_v40, %v3127_v39  ;;  %v3784_v32 = vpack.c.bf16 %v3141_v46, %v3139_v45  ;;  %v496_v55 = vadd.f32 %v495_v4, %v494_v54  ;;  %v608_v19 = vld [vmem:[%s3007_s21 + $0x228] sm:$0xff] }
  0xd3   : > { %2326 = vmatpush1.bf16.msra.mxu0 %v3782_v25  ;;  %v543_v0 = vrot.slane %v542_v5, 2  ;;  %v555_v8 = vrot.slane %v554_v21, 2  ;;  %v567_v9 = vrot.slane %v566_v24, 2  ;;  %v3785_v33 = vpack.c.bf16 %v3151_v51, %v3143_v47  ;;  %v3787_v47 = vld [vmem:[#allocation16_spill] sm:$0xff] }
  0xd4   : > { %2390 = vmatpush1.bf16.msra.mxu1 %v3783_v31  ;;  %2328 = vmatprep.subr.bf16.mxu0 %v3784_v32  ;;  %v508_v38 = vadd.f32 %v507_v26, %v506_v20  ;;  %v520_v36 = vadd.f32 %v519_v6, %v518_v44  ;;  %v532_v37 = vadd.f32 %v531_v7, %v530_v62  ;;  %v579_v10 = vrot.slane %v578_v43, 2  ;;  %v610_v20 = vld [vmem:[%s3007_s21 + $0x2a8] sm:$0xff] }
  0xd5   : > { %2392 = vmatprep.subr.bf16.mxu1 %v3785_v33  ;;  %v497_v11 = vrot.slane %v496_v55, 1  ;;  %v544_v42 = vadd.f32 %v543_v0, %v542_v5  ;;  %v556_v39 = vadd.f32 %v555_v8, %v554_v21  ;;  %v568_v40 = vadd.f32 %v567_v9, %v566_v24  ;;  %v612_v44 = vld [vmem:[%s3007_s21 + $0x328] sm:$0xff] }
  0xd6   : > { %v3786_v45 = vpack.c.bf16 %v3155_v53, %v3153_v52  ;;  %v509_v46 = vrot.slane %v508_v38, 1  ;;  %v521_v48 = vrot.slane %v520_v36, 1  ;;  %v533_v49 = vrot.slane %v532_v37, 1 }
  0xd7   : > { %v580_v58 = vadd.f32 %v579_v10, %v578_v43  ;;  %v3788_v51 = vpack.c.bf16 %v3167_v59, %v3787_v47  ;;  %v498_v1 = vadd.f32 %v497_v11, %v496_v55  ;;  %v545_v15 = vrot.slane %v544_v42, 1 }
  0xd8   : > { %2330 = vmatpush1.bf16.msra.mxu0 %v3786_v45  ;;  %v557_v2 = vrot.slane %v556_v39, 1  ;;  %v569_v3 = vrot.slane %v568_v40, 1  ;;  %v510_v16 = vadd.f32 %v509_v46, %v508_v38  ;;  %v522_v28 = vadd.f32 %v521_v48, %v520_v36 }
  0xd9   : > { %2394 = vmatpush1.bf16.msra.mxu1 %v3788_v51  ;;  %v534_v52 = vadd.f32 %v533_v49, %v532_v37  ;;  %v581_v53 = vrot.slane %v580_v58, 1  ;;  %v546_v17 = vadd.f32 %v545_v15, %v544_v42  ;;  %v3262_v59 = vadd.f32 %v498_v1, %v3204_v41 }
  0xda   : > { %v558_v30 = vadd.f32 %v557_v2, %v556_v39  ;;  %v570_v34 = vadd.f32 %v569_v3, %v568_v40  ;;  %v3268_v35 = vadd.f32 %v510_v16, %v3212_v12  ;;  %v3271_v50 = vadd.f32 %v522_v28, %v3214_v13  ;;  %v614_v12 = vld [vmem:[%s3007_s21 + $0x3a8] sm:$0xff] }
  0xdb   : > { %v582_v54 = vadd.f32 %v581_v53, %v580_v58  ;;  %v3274_v61 = vadd.f32 %v534_v52, %v3216_v14  ;;  %v3280_v62 = vadd.f32 %v546_v17, %v3221_v22  ;;  %v621_v4 = vrot.slane %v600_v29, 4 }
  0xdc   : > { %v3283_v41 = vadd.f32 %v558_v30, %v3223_v23  ;;  %v3286_v63 = vadd.f32 %v570_v34, %v3225_v27  ;;  %v633_v5 = vrot.slane %v602_v57, 4  ;;  %v645_v14 = vrot.slane %v604_v56, 4 }
  0xdd   : > { %v3290_v13 = vadd.f32 %v582_v54, %v3231_v18  ;;  %v657_v21 = vrot.slane %v606_v60, 4  ;;  %v622_v24 = vadd.f32 %v621_v4, %v600_v29  ;;  %v669_v25 = vrot.slane %v608_v19, 4  ;;  %v728_v29 = vld [vmem:[%s3007_s21 + $0x38] sm:$0xff] }
  0xde   : > { %v681_v26 = vrot.slane %v610_v20, 4  ;;  %v693_v6 = vrot.slane %v612_v44, 4  ;;  %v634_v22 = vadd.f32 %v633_v5, %v602_v57  ;;  %v646_v7 = vadd.f32 %v645_v14, %v604_v56  ;;  %v730_v56 = vld [vmem:[%s3007_s21 + $0xb8] sm:$0xff] }
  0xdf   : > { %v658_v43 = vadd.f32 %v657_v21, %v606_v60  ;;  %v705_v23 = vrot.slane %v614_v12, 4  ;;  %v623_v31 = vrot.slane %v622_v24, 2  ;;  %v670_v32 = vadd.f32 %v669_v25, %v608_v19  ;;  %v732_v60 = vld [vmem:[%s3007_s21 + $0x138] sm:$0xff] }
  0xe0   : > { %v682_v27 = vadd.f32 %v681_v26, %v610_v20  ;;  %v694_v55 = vadd.f32 %v693_v6, %v612_v44  ;;  %v635_v0 = vrot.slane %v634_v22, 2  ;;  %v647_v8 = vrot.slane %v646_v7, 2  ;;  %v734_v54 = vld [vmem:[%s3007_s21 + $0x1b8] sm:$0xff] }
  0xe1   : > { %v659_v9 = vrot.slane %v658_v43, 2  ;;  %v706_v18 = vadd.f32 %v705_v23, %v614_v12  ;;  %v624_v33 = vadd.f32 %v623_v31, %v622_v24  ;;  %v671_v38 = vrot.slane %v670_v32, 2  ;;  %v736_v4 = vld [vmem:[%s3007_s21 + $0x238] sm:$0xff] }
  0xe2   : > { %v683_v36 = vrot.slane %v682_v27, 2  ;;  %v695_v37 = vrot.slane %v694_v55, 2  ;;  %v636_v10 = vadd.f32 %v635_v0, %v634_v22  ;;  %v648_v11 = vadd.f32 %v647_v8, %v646_v7  ;;  %v738_v5 = vld [vmem:[%s3007_s21 + $0x2b8] sm:$0xff] }
  0xe3   : > { %v660_v42 = vadd.f32 %v659_v9, %v658_v43  ;;  %v707_v39 = vrot.slane %v706_v18, 2  ;;  %v625_v40 = vrot.slane %v624_v33, 1  ;;  %v672_v45 = vadd.f32 %v671_v38, %v670_v32  ;;  %v740_v14 = vld [vmem:[%s3007_s21 + $0x338] sm:$0xff] }
  0xe4   : > { %v684_v46 = vadd.f32 %v683_v36, %v682_v27  ;;  %v696_v48 = vadd.f32 %v695_v37, %v694_v55  ;;  %v637_v49 = vrot.slane %v636_v10, 1  ;;  %v649_v58 = vrot.slane %v648_v11, 1 }
  0xe5   : > { %v661_v47 = vrot.slane %v660_v42, 1  ;;  %v708_v51 = vadd.f32 %v707_v39, %v706_v18  ;;  %v626_v1 = vadd.f32 %v625_v40, %v624_v33  ;;  %v673_v15 = vrot.slane %v672_v45, 1 }
  0xe6   : > { %v685_v2 = vrot.slane %v684_v46, 1  ;;  %v697_v3 = vrot.slane %v696_v48, 1  ;;  %v638_v16 = vadd.f32 %v637_v49, %v636_v10  ;;  %v650_v28 = vadd.f32 %v649_v58, %v648_v11 }
  0xe7   : > { %v662_v52 = vadd.f32 %v661_v47, %v660_v42  ;;  %v709_v53 = vrot.slane %v708_v51, 1  ;;  %v674_v17 = vadd.f32 %v673_v15, %v672_v45  ;;  %v3294_v57 = vadd.f32 %v626_v1, %v3262_v59 }
  0xe8   : > { %v686_v30 = vadd.f32 %v685_v2, %v684_v46  ;;  %v698_v34 = vadd.f32 %v697_v3, %v696_v48  ;;  %v3300_v20 = vadd.f32 %v638_v16, %v3268_v35  ;;  %v3303_v44 = vadd.f32 %v650_v28, %v3271_v50  ;;  %v742_v35 = vld [vmem:[%s3007_s21 + $0x3b8] sm:$0xff] }
  0xe9   : > { %v710_v19 = vadd.f32 %v709_v53, %v708_v51  ;;  %v3306_v12 = vadd.f32 %v662_v52, %v3274_v61  ;;  %v3312_v21 = vadd.f32 %v674_v17, %v3280_v62  ;;  %v749_v25 = vrot.slane %v728_v29, 4 }
  0xea   : > { %v3315_v59 = vadd.f32 %v686_v30, %v3283_v41  ;;  %v3318_v24 = vadd.f32 %v698_v34, %v3286_v63  ;;  %v761_v26 = vrot.slane %v730_v56, 4  ;;  %v773_v61 = vrot.slane %v732_v60, 4 }
  0xeb   : > { %v3322_v50 = vadd.f32 %v710_v19, %v3290_v13  ;;  %v785_v6 = vrot.slane %v734_v54, 4  ;;  %v750_v22 = vadd.f32 %v749_v25, %v728_v29  ;;  %v797_v7 = vrot.slane %v736_v4, 4  ;;  %v856_v29 = vld [vmem:[%s3007_s21 + $0x48] sm:$0xff] }
  0xec   : > { %v809_v43 = vrot.slane %v738_v5, 4  ;;  %v821_v23 = vrot.slane %v740_v14, 4  ;;  %v762_v62 = vadd.f32 %v761_v26, %v730_v56  ;;  %v774_v31 = vadd.f32 %v773_v61, %v732_v60  ;;  %v858_v60 = vld [vmem:[%s3007_s21 + $0xc8] sm:$0xff] }
  0xed   : > { %v786_v32 = vadd.f32 %v785_v6, %v734_v54  ;;  %v833_v41 = vrot.slane %v742_v35, 4  ;;  %v751_v27 = vrot.slane %v750_v22, 2  ;;  %v798_v55 = vadd.f32 %v797_v7, %v736_v4  ;;  %v860_v54 = vld [vmem:[%s3007_s21 + $0x148] sm:$0xff] }
  0xee   : > { %v810_v63 = vadd.f32 %v809_v43, %v738_v5  ;;  %v822_v0 = vadd.f32 %v821_v23, %v740_v14  ;;  %v763_v8 = vrot.slane %v762_v62, 2  ;;  %v775_v9 = vrot.slane %v774_v31, 2  ;;  %v862_v19 = vld [vmem:[%s3007_s21 + $0x1c8] sm:$0xff] }
  0xef   : > { %v787_v18 = vrot.slane %v786_v32, 2  ;;  %v834_v13 = vadd.f32 %v833_v41, %v742_v35  ;;  %v752_v33 = vadd.f32 %v751_v27, %v750_v22  ;;  %v799_v38 = vrot.slane %v798_v55, 2  ;;  %v864_v25 = vld [vmem:[%s3007_s21 + $0x248] sm:$0xff] }
  0xf0   : > { %v811_v36 = vrot.slane %v810_v63, 2  ;;  %v823_v37 = vrot.slane %v822_v0, 2  ;;  %v764_v10 = vadd.f32 %v763_v8, %v762_v62  ;;  %v776_v11 = vadd.f32 %v775_v9, %v774_v31  ;;  %v866_v26 = vld [vmem:[%s3007_s21 + $0x2c8] sm:$0xff] }
  0xf1   : > { %v788_v42 = vadd.f32 %v787_v18, %v786_v32  ;;  %v835_v39 = vrot.slane %v834_v13, 2  ;;  %v753_v40 = vrot.slane %v752_v33, 1  ;;  %v800_v45 = vadd.f32 %v799_v38, %v798_v55  ;;  %v868_v61 = vld [vmem:[%s3007_s21 + $0x348] sm:$0xff] }
  0xf2   : > { %v812_v46 = vadd.f32 %v811_v36, %v810_v63  ;;  %v824_v48 = vadd.f32 %v823_v37, %v822_v0  ;;  %v765_v49 = vrot.slane %v764_v10, 1  ;;  %v777_v58 = vrot.slane %v776_v11, 1 }
  0xf3   : > { %v789_v47 = vrot.slane %v788_v42, 1  ;;  %v836_v51 = vadd.f32 %v835_v39, %v834_v13  ;;  %v754_v1 = vadd.f32 %v753_v40, %v752_v33  ;;  %v801_v15 = vrot.slane %v800_v45, 1 }
  0xf4   : > { %v813_v2 = vrot.slane %v812_v46, 1  ;;  %v825_v3 = vrot.slane %v824_v48, 1  ;;  %v766_v16 = vadd.f32 %v765_v49, %v764_v10  ;;  %v778_v28 = vadd.f32 %v777_v58, %v776_v11 }
  0xf5   : > { %v790_v52 = vadd.f32 %v789_v47, %v788_v42  ;;  %v837_v53 = vrot.slane %v836_v51, 1  ;;  %v802_v17 = vadd.f32 %v801_v15, %v800_v45  ;;  %v3326_v56 = vadd.f32 %v754_v1, %v3294_v57 }
  0xf6   : > { %v814_v30 = vadd.f32 %v813_v2, %v812_v46  ;;  %v826_v34 = vadd.f32 %v825_v3, %v824_v48  ;;  %v3332_v5 = vadd.f32 %v766_v16, %v3300_v20  ;;  %v3335_v14 = vadd.f32 %v778_v28, %v3303_v44  ;;  %v870_v20 = vld [vmem:[%s3007_s21 + $0x3c8] sm:$0xff] }
  0xf7   : > { %v838_v4 = vadd.f32 %v837_v53, %v836_v51  ;;  %v3338_v35 = vadd.f32 %v790_v52, %v3306_v12  ;;  %v3344_v6 = vadd.f32 %v802_v17, %v3312_v21  ;;  %v877_v7 = vrot.slane %v856_v29, 4 }
  0xf8   : > { %v3347_v57 = vadd.f32 %v814_v30, %v3315_v59  ;;  %v3350_v22 = vadd.f32 %v826_v34, %v3318_v24  ;;  %v889_v43 = vrot.slane %v858_v60, 4  ;;  %v901_v12 = vrot.slane %v860_v54, 4 }
  0xf9   : > { %v3354_v44 = vadd.f32 %v838_v4, %v3322_v50  ;;  %v913_v23 = vrot.slane %v862_v19, 4  ;;  %v878_v62 = vadd.f32 %v877_v7, %v856_v29  ;;  %v925_v31 = vrot.slane %v864_v25, 4  ;;  %v984_v29 = vld [vmem:[%s3007_s21 + $0x58] sm:$0xff] }
  0xfa   : > { %v937_v32 = vrot.slane %v866_v26, 4  ;;  %v949_v41 = vrot.slane %v868_v61, 4  ;;  %v890_v21 = vadd.f32 %v889_v43, %v858_v60  ;;  %v902_v27 = vadd.f32 %v901_v12, %v860_v54  ;;  %v986_v54 = vld [vmem:[%s3007_s21 + $0xd8] sm:$0xff] }
  0xfb   : > { %v914_v55 = vadd.f32 %v913_v23, %v862_v19  ;;  %v961_v59 = vrot.slane %v870_v20, 4  ;;  %v879_v63 = vrot.slane %v878_v62, 2  ;;  %v926_v0 = vadd.f32 %v925_v31, %v864_v25  ;;  %v988_v19 = vld [vmem:[%s3007_s21 + $0x158] sm:$0xff] }
  0xfc   : > { %v938_v24 = vadd.f32 %v937_v32, %v866_v26  ;;  %v950_v8 = vadd.f32 %v949_v41, %v868_v61  ;;  %v891_v9 = vrot.slane %v890_v21, 2  ;;  %v903_v18 = vrot.slane %v902_v27, 2  ;;  %v990_v4 = vld [vmem:[%s3007_s21 + $0x1d8] sm:$0xff] }
  0xfd   : > { %v915_v13 = vrot.slane %v914_v55, 2  ;;  %v962_v50 = vadd.f32 %v961_v59, %v870_v20  ;;  %v880_v33 = vadd.f32 %v879_v63, %v878_v62  ;;  %v927_v38 = vrot.slane %v926_v0, 2  ;;  %v992_v7 = vld [vmem:[%s3007_s21 + $0x258] sm:$0xff] }
  0xfe   : > { %v939_v36 = vrot.slane %v938_v24, 2  ;;  %v951_v37 = vrot.slane %v950_v8, 2  ;;  %v892_v10 = vadd.f32 %v891_v9, %v890_v21  ;;  %v904_v11 = vadd.f32 %v903_v18, %v902_v27  ;;  %v994_v43 = vld [vmem:[%s3007_s21 + $0x2d8] sm:$0xff] }
  0xff   : > { %v916_v42 = vadd.f32 %v915_v13, %v914_v55  ;;  %v963_v39 = vrot.slane %v962_v50, 2  ;;  %v881_v40 = vrot.slane %v880_v33, 1  ;;  %v928_v45 = vadd.f32 %v927_v38, %v926_v0  ;;  %v996_v12 = vld [vmem:[%s3007_s21 + $0x358] sm:$0xff] }
 0x100   : > { %v940_v46 = vadd.f32 %v939_v36, %v938_v24  ;;  %v952_v48 = vadd.f32 %v951_v37, %v950_v8  ;;  %v893_v49 = vrot.slane %v892_v10, 1  ;;  %v905_v58 = vrot.slane %v904_v11, 1 }
 0x101   : > { %v917_v47 = vrot.slane %v916_v42, 1  ;;  %v964_v51 = vadd.f32 %v963_v39, %v962_v50  ;;  %v882_v1 = vadd.f32 %v881_v40, %v880_v33  ;;  %v929_v15 = vrot.slane %v928_v45, 1 }
 0x102   : > { %v941_v2 = vrot.slane %v940_v46, 1  ;;  %v953_v3 = vrot.slane %v952_v48, 1  ;;  %v894_v16 = vadd.f32 %v893_v49, %v892_v10  ;;  %v906_v28 = vadd.f32 %v905_v58, %v904_v11 }
 0x103   : > { %v918_v52 = vadd.f32 %v917_v47, %v916_v42  ;;  %v965_v53 = vrot.slane %v964_v51, 1  ;;  %v930_v17 = vadd.f32 %v929_v15, %v928_v45  ;;  %v3358_v60 = vadd.f32 %v882_v1, %v3326_v56 }
 0x104   : > { %v942_v30 = vadd.f32 %v941_v2, %v940_v46  ;;  %v954_v34 = vadd.f32 %v953_v3, %v952_v48  ;;  %v3364_v26 = vadd.f32 %v894_v16, %v3332_v5  ;;  %v3367_v61 = vadd.f32 %v906_v28, %v3335_v14  ;;  %v998_v5 = vld [vmem:[%s3007_s21 + $0x3d8] sm:$0xff] }
 0x105   : > { %v966_v25 = vadd.f32 %v965_v53, %v964_v51  ;;  %v3370_v20 = vadd.f32 %v918_v52, %v3338_v35  ;;  %v3376_v23 = vadd.f32 %v930_v17, %v3344_v6  ;;  %v1005_v31 = vrot.slane %v984_v29, 4 }
 0x106   : > { %v3379_v56 = vadd.f32 %v942_v30, %v3347_v57  ;;  %v3382_v62 = vadd.f32 %v954_v34, %v3350_v22  ;;  %v1017_v32 = vrot.slane %v986_v54, 4  ;;  %v1029_v35 = vrot.slane %v988_v19, 4 }
 0x107   : > { %v3386_v14 = vadd.f32 %v966_v25, %v3354_v44  ;;  %v1041_v41 = vrot.slane %v990_v4, 4  ;;  %v1006_v21 = vadd.f32 %v1005_v31, %v984_v29  ;;  %v1053_v27 = vrot.slane %v992_v7, 4  ;;  %v1112_v29 = vld [vmem:[%s3007_s21 + $0x68] sm:$0xff] }
 0x108   : > { %v1065_v55 = vrot.slane %v994_v43, 4  ;;  %v1077_v59 = vrot.slane %v996_v12, 4  ;;  %v1018_v6 = vadd.f32 %v1017_v32, %v986_v54  ;;  %v1030_v63 = vadd.f32 %v1029_v35, %v988_v19  ;;  %v1114_v19 = vld [vmem:[%s3007_s21 + $0xe8] sm:$0xff] }
 0x109   : > { %v1042_v0 = vadd.f32 %v1041_v41, %v990_v4  ;;  %v1089_v57 = vrot.slane %v998_v5, 4  ;;  %v1007_v24 = vrot.slane %v1006_v21, 2  ;;  %v1054_v8 = vadd.f32 %v1053_v27, %v992_v7  ;;  %v1116_v4 = vld [vmem:[%s3007_s21 + $0x168] sm:$0xff] }
 0x10a   : > { %v1066_v22 = vadd.f32 %v1065_v55, %v994_v43  ;;  %v1078_v9 = vadd.f32 %v1077_v59, %v996_v12  ;;  %v1019_v18 = vrot.slane %v1018_v6, 2  ;;  %v1031_v13 = vrot.slane %v1030_v63, 2  ;;  %v1118_v25 = vld [vmem:[%s3007_s21 + $0x1e8] sm:$0xff] }
 0x10b   : > { %v1043_v50 = vrot.slane %v1042_v0, 2  ;;  %v1090_v44 = vadd.f32 %v1089_v57, %v998_v5  ;;  %v1008_v33 = vadd.f32 %v1007_v24, %v1006_v21  ;;  %v1055_v38 = vrot.slane %v1054_v8, 2  ;;  %v1120_v31 = vld [vmem:[%s3007_s21 + $0x268] sm:$0xff] }
 0x10c   : > { %v1067_v36 = vrot.slane %v1066_v22, 2  ;;  %v1079_v37 = vrot.slane %v1078_v9, 2  ;;  %v1020_v10 = vadd.f32 %v1019_v18, %v1018_v6  ;;  %v1032_v11 = vadd.f32 %v1031_v13, %v1030_v63  ;;  %v1122_v32 = vld [vmem:[%s3007_s21 + $0x2e8] sm:$0xff] }
 0x10d   : > { %v1044_v42 = vadd.f32 %v1043_v50, %v1042_v0  ;;  %v1091_v39 = vrot.slane %v1090_v44, 2  ;;  %v1009_v40 = vrot.slane %v1008_v33, 1  ;;  %v1056_v45 = vadd.f32 %v1055_v38, %v1054_v8  ;;  %v1124_v35 = vld [vmem:[%s3007_s21 + $0x368] sm:$0xff] }
 0x10e   : > { %v1068_v46 = vadd.f32 %v1067_v36, %v1066_v22  ;;  %v1080_v48 = vadd.f32 %v1079_v37, %v1078_v9  ;;  %v1021_v49 = vrot.slane %v1020_v10, 1  ;;  %v1033_v58 = vrot.slane %v1032_v11, 1 }
 0x10f   : > { %v1045_v47 = vrot.slane %v1044_v42, 1  ;;  %v1092_v51 = vadd.f32 %v1091_v39, %v1090_v44  ;;  %v1010_v1 = vadd.f32 %v1009_v40, %v1008_v33  ;;  %v1057_v15 = vrot.slane %v1056_v45, 1 }
 0x110   : > { %v1069_v2 = vrot.slane %v1068_v46, 1  ;;  %v1081_v3 = vrot.slane %v1080_v48, 1  ;;  %v1022_v16 = vadd.f32 %v1021_v49, %v1020_v10  ;;  %v1034_v28 = vadd.f32 %v1033_v58, %v1032_v11 }
 0x111   : > { %v1046_v52 = vadd.f32 %v1045_v47, %v1044_v42  ;;  %v1093_v53 = vrot.slane %v1092_v51, 1  ;;  %v1058_v17 = vadd.f32 %v1057_v15, %v1056_v45  ;;  %v3390_v54 = vadd.f32 %v1010_v1, %v3358_v60 }
 0x112   : > { %v1070_v30 = vadd.f32 %v1069_v2, %v1068_v46  ;;  %v1082_v34 = vadd.f32 %v1081_v3, %v1080_v48  ;;  %v3396_v43 = vadd.f32 %v1022_v16, %v3364_v26  ;;  %v3399_v12 = vadd.f32 %v1034_v28, %v3367_v61  ;;  %v1126_v26 = vld [vmem:[%s3007_s21 + $0x3e8] sm:$0xff] }
 0x113   : > { %v1094_v7 = vadd.f32 %v1093_v53, %v1092_v51  ;;  %v3402_v5 = vadd.f32 %v1046_v52, %v3370_v20  ;;  %v3408_v41 = vadd.f32 %v1058_v17, %v3376_v23  ;;  %v1133_v27 = vrot.slane %v1112_v29, 4 }
 0x114   : > { %v3411_v60 = vadd.f32 %v1070_v30, %v3379_v56  ;;  %v3414_v21 = vadd.f32 %v1082_v34, %v3382_v62  ;;  %v1145_v55 = vrot.slane %v1114_v19, 4  ;;  %v1157_v20 = vrot.slane %v1116_v4, 4 }
 0x115   : > { %v3418_v61 = vadd.f32 %v1094_v7, %v3386_v14  ;;  %v1169_v59 = vrot.slane %v1118_v25, 4  ;;  %v1134_v6 = vadd.f32 %v1133_v27, %v1112_v29  ;;  %v1181_v63 = vrot.slane %v1120_v31, 4  ;;  %v1240_v29 = vld [vmem:[%s3007_s21 + $0x78] sm:$0xff] }
 0x116   : > { %v1193_v0 = vrot.slane %v1122_v32, 4  ;;  %v1205_v57 = vrot.slane %v1124_v35, 4  ;;  %v1146_v23 = vadd.f32 %v1145_v55, %v1114_v19  ;;  %v1158_v24 = vadd.f32 %v1157_v20, %v1116_v4  ;;  %v1242_v4 = vld [vmem:[%s3007_s21 + $0xf8] sm:$0xff] }
 0x117   : > { %v1170_v8 = vadd.f32 %v1169_v59, %v1118_v25  ;;  %v1217_v56 = vrot.slane %v1126_v26, 4  ;;  %v1135_v22 = vrot.slane %v1134_v6, 2  ;;  %v1182_v9 = vadd.f32 %v1181_v63, %v1120_v31  ;;  %v1244_v25 = vld [vmem:[%s3007_s21 + $0x178] sm:$0xff] }
 0x118   : > { %v1194_v62 = vadd.f32 %v1193_v0, %v1122_v32  ;;  %v1206_v18 = vadd.f32 %v1205_v57, %v1124_v35  ;;  %v1147_v13 = vrot.slane %v1146_v23, 2  ;;  %v1159_v50 = vrot.slane %v1158_v24, 2  ;;  %v1246_v7 = vld [vmem:[%s3007_s21 + $0x1f8] sm:$0xff] }
 0x119   : > { %v1171_v44 = vrot.slane %v1170_v8, 2  ;;  %v1218_v14 = vadd.f32 %v1217_v56, %v1126_v26  ;;  %v1136_v33 = vadd.f32 %v1135_v22, %v1134_v6  ;;  %v1183_v38 = vrot.slane %v1182_v9, 2  ;;  %v1248_v27 = vld [vmem:[%s3007_s21 + $0x278] sm:$0xff] }
 0x11a   : > { %v1195_v36 = vrot.slane %v1194_v62, 2  ;;  %v1207_v37 = vrot.slane %v1206_v18, 2  ;;  %v1148_v10 = vadd.f32 %v1147_v13, %v1146_v23  ;;  %v1160_v11 = vadd.f32 %v1159_v50, %v1158_v24  ;;  %v1250_v55 = vld [vmem:[%s3007_s21 + $0x2f8] sm:$0xff] }
 0x11b   : > { %v1172_v42 = vadd.f32 %v1171_v44, %v1170_v8  ;;  %v1219_v39 = vrot.slane %v1218_v14, 2  ;;  %v1137_v40 = vrot.slane %v1136_v33, 1  ;;  %v1184_v45 = vadd.f32 %v1183_v38, %v1182_v9  ;;  %v1252_v20 = vld [vmem:[%s3007_s21 + $0x378] sm:$0xff] }
 0x11c   : > { %v1196_v46 = vadd.f32 %v1195_v36, %v1194_v62  ;;  %v1208_v48 = vadd.f32 %v1207_v37, %v1206_v18  ;;  %v1149_v49 = vrot.slane %v1148_v10, 1  ;;  %v1161_v58 = vrot.slane %v1160_v11, 1 }
 0x11d   : > { %v1173_v47 = vrot.slane %v1172_v42, 1  ;;  %v1220_v51 = vadd.f32 %v1219_v39, %v1218_v14  ;;  %v1138_v1 = vadd.f32 %v1137_v40, %v1136_v33  ;;  %v1185_v15 = vrot.slane %v1184_v45, 1 }
 0x11e   : > { %v1197_v2 = vrot.slane %v1196_v46, 1  ;;  %v1209_v3 = vrot.slane %v1208_v48, 1  ;;  %v1150_v16 = vadd.f32 %v1149_v49, %v1148_v10  ;;  %v1162_v28 = vadd.f32 %v1161_v58, %v1160_v11 }
 0x11f   : > { %v1174_v52 = vadd.f32 %v1173_v47, %v1172_v42  ;;  %v1221_v53 = vrot.slane %v1220_v51, 1  ;;  %v1186_v17 = vadd.f32 %v1185_v15, %v1184_v45  ;;  %v3422_v19 = vadd.f32 %v1138_v1, %v3390_v54 }
 0x120   : > { %v1198_v30 = vadd.f32 %v1197_v2, %v1196_v46  ;;  %v1210_v34 = vadd.f32 %v1209_v3, %v1208_v48  ;;  %v3428_v32 = vadd.f32 %v1150_v16, %v3396_v43  ;;  %v3431_v35 = vadd.f32 %v1162_v28, %v3399_v12  ;;  %v1254_v43 = vld [vmem:[%s3007_s21 + $0x3f8] sm:$0xff] }
 0x121   : > { %v1222_v31 = vadd.f32 %v1221_v53, %v1220_v51  ;;  %v3434_v26 = vadd.f32 %v1174_v52, %v3402_v5  ;;  %v3440_v59 = vadd.f32 %v1186_v17, %v3408_v41  ;;  %v1261_v63 = vrot.slane %v1240_v29, 4 }
 0x122   : > { %v3443_v54 = vadd.f32 %v1198_v30, %v3411_v60  ;;  %v3446_v6 = vadd.f32 %v1210_v34, %v3414_v21  ;;  %v1273_v0 = vrot.slane %v1242_v4, 4  ;;  %v1285_v5 = vrot.slane %v1244_v25, 4 }
 0x123   : > { %v3450_v12 = vadd.f32 %v1222_v31, %v3418_v61  ;;  %v1297_v57 = vrot.slane %v1246_v7, 4  ;;  %v1262_v23 = vadd.f32 %v1261_v63, %v1240_v29  ;;  %v1309_v24 = vrot.slane %v1248_v27, 4  ;;  %v343_v29 = vld [vmem:[%s3007_s21] sm:$0xff] }
 0x124   : > { %v1321_v8 = vrot.slane %v1250_v55, 4  ;;  %v1333_v56 = vrot.slane %v1252_v20, 4  ;;  %v1274_v41 = vadd.f32 %v1273_v0, %v1242_v4  ;;  %v1286_v22 = vadd.f32 %v1285_v5, %v1244_v25  ;;  %v345_v25 = vld [vmem:[%s3007_s21 + $0x80] sm:$0xff] }
 0x125   : > { %v1298_v9 = vadd.f32 %v1297_v57, %v1246_v7  ;;  %v1345_v60 = vrot.slane %v1254_v43, 4  ;;  %v1263_v62 = vrot.slane %v1262_v23, 2  ;;  %v1310_v18 = vadd.f32 %v1309_v24, %v1248_v27  ;;  %v347_v7 = vld [vmem:[%s3007_s21 + $0x100] sm:$0xff] }
 0x126   : > { %v1322_v21 = vadd.f32 %v1321_v8, %v1250_v55  ;;  %v1334_v13 = vadd.f32 %v1333_v56, %v1252_v20  ;;  %v1275_v50 = vrot.slane %v1274_v41, 2  ;;  %v1287_v44 = vrot.slane %v1286_v22, 2  ;;  %v351_v63 = vld [vmem:[%s3007_s21 + $0x200] sm:$0xff] }
 0x127   : > { %v1299_v61 = vrot.slane %v1298_v9, 2  ;;  %v1346_v14 = vadd.f32 %v1345_v60, %v1254_v43  ;;  %v1264_v33 = vadd.f32 %v1263_v62, %v1262_v23  ;;  %v1311_v38 = vrot.slane %v1310_v18, 2  ;;  %v349_v43 = vld [vmem:[%s3007_s21 + $0x180] sm:$0xff] }
 0x128   : > { %v1323_v36 = vrot.slane %v1322_v21, 2  ;;  %v1335_v37 = vrot.slane %v1334_v13, 2  ;;  %v1276_v10 = vadd.f32 %v1275_v50, %v1274_v41  ;;  %v1288_v11 = vadd.f32 %v1287_v44, %v1286_v22  ;;  %v353_v23 = vld [vmem:[%s3007_s21 + $0x280] sm:$0xff] }
 0x129   : > { %v1300_v42 = vadd.f32 %v1299_v61, %v1298_v9  ;;  %v1347_v39 = vrot.slane %v1346_v14, 2  ;;  %v1265_v40 = vrot.slane %v1264_v33, 1  ;;  %v1312_v45 = vadd.f32 %v1311_v38, %v1310_v18 }
 0x12a   : > { %v1324_v46 = vadd.f32 %v1323_v36, %v1322_v21  ;;  %v1336_v48 = vadd.f32 %v1335_v37, %v1334_v13  ;;  %v1277_v49 = vrot.slane %v1276_v10, 1  ;;  %v1289_v58 = vrot.slane %v1288_v11, 1  ;;  %v355_v13 = vld [vmem:[%s3007_s21 + $0x300] sm:$0xff] }
 0x12b   : > { %v1301_v47 = vrot.slane %v1300_v42, 1  ;;  %v1348_v51 = vadd.f32 %v1347_v39, %v1346_v14  ;;  %v1266_v1 = vadd.f32 %v1265_v40, %v1264_v33  ;;  %v1313_v15 = vrot.slane %v1312_v45, 1  ;;  %v357_v33 = vld [vmem:[%s3007_s21 + $0x380] sm:$0xff] }
 0x12c   : > { %v1325_v2 = vrot.slane %v1324_v46, 1  ;;  %v1337_v3 = vrot.slane %v1336_v48, 1  ;;  %v1278_v16 = vadd.f32 %v1277_v49, %v1276_v10  ;;  %v1290_v28 = vadd.f32 %v1289_v58, %v1288_v11 }
 0x12d   : > { %v1302_v52 = vadd.f32 %v1301_v47, %v1300_v42  ;;  %v1349_v53 = vrot.slane %v1348_v51, 1  ;;  %v1314_v17 = vadd.f32 %v1313_v15, %v1312_v45  ;;  %v1352_v4 = vadd.f32 %v1266_v1, %v3422_v19  ;;  %v471_v1 = vld [vmem:[%s3007_s21 + $0x10] sm:$0xff] }
 0x12e   : > { %v1326_v30 = vadd.f32 %v1325_v2, %v1324_v46  ;;  %v1338_v34 = vadd.f32 %v1337_v3, %v1336_v48  ;;  %v1354_v27 = vadd.f32 %v1278_v16, %v3428_v32  ;;  %v1356_v55 = vadd.f32 %v1290_v28, %v3431_v35  ;;  %v473_v3 = vld [vmem:[%s3007_s21 + $0x90] sm:$0xff] }
 0x12f   : > { %v1350_v31 = vadd.f32 %v1349_v53, %v1348_v51  ;;  %v1358_v20 = vadd.f32 %v1302_v52, %v3434_v26  ;;  %v1360_v0 = vadd.f32 %v1314_v17, %v3440_v59  ;;  %v359_v24 = vrot.slane %v343_v29, 4  ;;  %v475_v16 = vld [vmem:[%s3007_s21 + $0x110] sm:$0xff] }
 0x130   : > { %v1362_v5 = vadd.f32 %v1326_v30, %v3443_v54  ;;  %v1364_v57 = vadd.f32 %v1338_v34, %v3446_v6  ;;  %v1547_v8 = vsel %vm1533_vm0, %v1354_v27, %v1352_v4  ;;  %v371_v32 = vrot.slane %v345_v25, 4  ;;  %v477_v17 = vld [vmem:[%s3007_s21 + $0x190] sm:$0xff] }
 0x131   : > { %v1366_v19 = vadd.f32 %v1350_v31, %v3450_v12  ;;  %v383_v56 = vrot.slane %v347_v7, 4  ;;  %v1548_v35 = vsel %vm1535_vm1, %v1356_v55, %v1547_v8  ;;  %v360_v26 = vadd.f32 %v359_v24, %v343_v29  ;;  %v479_v30 = vld [vmem:[%s3007_s21 + $0x210] sm:$0xff] }
 0x132   : > { %v395_v41 = vrot.slane %v349_v43, 4  ;;  %v407_v22 = vrot.slane %v351_v63, 4  ;;  %v1549_v59 = vsel %vm1537_vm2, %v1358_v20, %v1548_v35  ;;  %v372_v54 = vadd.f32 %v371_v32, %v345_v25 }
 0x133   : > { %v384_v9 = vadd.f32 %v383_v56, %v347_v7  ;;  %v419_v6 = vrot.slane %v353_v23, 4  ;;  %v1550_v60 = vsel %vm1539_vm3, %v1360_v0, %v1549_v59  ;;  %v361_v62 = vrot.slane %v360_v26, 2  ;;  %v481_v7 = vld [vmem:[%s3007_s21 + $0x290] sm:$0xff] }
 0x134   : > { %v396_v12 = vadd.f32 %v395_v41, %v349_v43  ;;  %v408_v18 = vadd.f32 %v407_v22, %v351_v63  ;;  %v1551_v21 = vsel %vm1541_vm4, %v1362_v5, %v1550_v60  ;;  %v373_v50 = vrot.slane %v372_v54, 2  ;;  %v483_v22 = vld [vmem:[%s3007_s21 + $0x310] sm:$0xff] }
 0x135   : > { %v385_v44 = vrot.slane %v384_v9, 2  ;;  %v420_v61 = vadd.f32 %v419_v6, %v353_v23  ;;  %v1552_v14 = vsel %vm1543_vm5, %v1364_v57, %v1551_v21  ;;  %v362_v38 = vadd.f32 %v361_v62, %v360_v26  ;;  %v485_v60 = vld [vmem:[%s3007_s21 + $0x390] sm:$0xff] }
 0x136   : > { %v397_v36 = vrot.slane %v396_v12, 2  ;;  %v409_v37 = vrot.slane %v408_v18, 2  ;;  %v1553_v10 = vsel %vm1545_vm6, %v1366_v19, %v1552_v14  ;;  %v374_v11 = vadd.f32 %v373_v50, %v372_v54 }
 0x137   : > { %v386_v42 = vadd.f32 %v385_v44, %v384_v9  ;;  %v421_v39 = vrot.slane %v420_v61, 2  ;;  %1620 = vmatprep.mubr.f32.mxu0 %v1553_v10  ;;  %1691 = vmatprep.mubr.f32.mxu1 %v1553_v10  ;;  %v363_v40 = vrot.slane %v362_v38, 1  ;;  %v431_v48 = vrot.slane %v355_v13, 4 }
 0x138   : > { %v398_v45 = vadd.f32 %v397_v36, %v396_v12  ;;  %v410_v46 = vadd.f32 %v409_v37, %v408_v18  ;;  %v375_v49 = vrot.slane %v374_v11, 1  ;;  %v443_v51 = vrot.slane %v357_v33, 4 }
 0x139   : > { %v387_v58 = vrot.slane %v386_v42, 1  ;;  %v422_v47 = vadd.f32 %v421_v39, %v420_v61  ;;  %v432_v2 = vadd.f32 %v431_v48, %v355_v13  ;;  %v3478_v28 = vadd.f32 %v363_v40, %v362_v38 }
 0x13a   : > { %v399_v15 = vrot.slane %v398_v45, 1  ;;  %v3480_v52 = vadd.f32 %v375_v49, %v374_v11  ;;  %v411_v53 = vrot.slane %v410_v46, 1  ;;  %v444_v29 = vadd.f32 %v443_v51, %v357_v33 }
 0x13b   : > { %v3484_v34 = vadd.f32 %v387_v58, %v386_v42  ;;  %v423_v4 = vrot.slane %v422_v47, 1  ;;  %v433_v25 = vrot.slane %v432_v2, 2  ;;  %v487_v31 = vrot.slane %v471_v1, 4 }
 0x13c   : > { %v3487_v27 = vadd.f32 %v399_v15, %v398_v45  ;;  %v445_v55 = vrot.slane %v444_v29, 2  ;;  %v499_v20 = vrot.slane %v473_v3, 4  ;;  %v511_v43 = vrot.slane %v475_v16, 4 }
 0x13d   : > { %v434_v63 = vadd.f32 %v433_v25, %v432_v2  ;;  %v488_v0 = vadd.f32 %v487_v31, %v471_v1  ;;  %v523_v5 = vrot.slane %v477_v17, 4  ;;  %v535_v57 = vrot.slane %v479_v30, 4  ;;  %v607_v25 = vld [vmem:[%s3007_s21 + $0x220] sm:$0xff] }
 0x13e   : > { %v446_v23 = vadd.f32 %v445_v55, %v444_v29  ;;  %v500_v24 = vadd.f32 %v499_v20, %v473_v3  ;;  %v512_v19 = vadd.f32 %v511_v43, %v475_v16  ;;  %v547_v8 = vrot.slane %v481_v7, 4  ;;  %v601_v3 = vld [vmem:[%s3007_s21 + $0xa0] sm:$0xff] }
 0x13f   : > { %v3489_v32 = vadd.f32 %v411_v53, %v410_v46  ;;  %v489_v56 = vrot.slane %v488_v0, 2  ;;  %v524_v35 = vadd.f32 %v523_v5, %v477_v17  ;;  %v536_v26 = vadd.f32 %v535_v57, %v479_v30  ;;  %v603_v16 = vld [vmem:[%s3007_s21 + $0x120] sm:$0xff] }
 0x140   : > { %v3491_v41 = vadd.f32 %v423_v4, %v422_v47  ;;  %v501_v59 = vrot.slane %v500_v24, 2  ;;  %v513_v54 = vrot.slane %v512_v19, 2  ;;  %v548_v9 = vadd.f32 %v547_v8, %v481_v7  ;;  %v599_v47 = vld [vmem:[%s3007_s21 + $0x20] sm:$0xff] }
 0x141   : > { %v435_v6 = vrot.slane %v434_v63, 1  ;;  %v490_v62 = vadd.f32 %v489_v56, %v488_v0  ;;  %v525_v12 = vrot.slane %v524_v35, 2  ;;  %v537_v18 = vrot.slane %v536_v26, 2  ;;  %v605_v4 = vld [vmem:[%s3007_s21 + $0x1a0] sm:$0xff] }
 0x142   : > { %v447_v21 = vrot.slane %v446_v23, 1  ;;  %v502_v13 = vadd.f32 %v501_v59, %v500_v24  ;;  %v514_v50 = vadd.f32 %v513_v54, %v512_v19  ;;  %v549_v44 = vrot.slane %v548_v9, 2  ;;  %v609_v20 = vld [vmem:[%s3007_s21 + $0x2a0] sm:$0xff] }
 0x143   : > { %v491_v61 = vrot.slane %v490_v62, 1  ;;  %v526_v14 = vadd.f32 %v525_v12, %v524_v35  ;;  %v538_v33 = vadd.f32 %v537_v18, %v536_v26  ;;  %v559_v38 = vrot.slane %v483_v22, 4  ;;  %v611_v54 = vld [vmem:[%s3007_s21 + $0x320] sm:$0xff] }
 0x144   : > { %v503_v36 = vrot.slane %v502_v13, 1  ;;  %v515_v37 = vrot.slane %v514_v50, 1  ;;  %v550_v10 = vadd.f32 %v549_v44, %v548_v9  ;;  %v571_v11 = vrot.slane %v485_v60, 4  ;;  %v613_v12 = vld [vmem:[%s3007_s21 + $0x3a0] sm:$0xff] }
 0x145   : > { %v492_v42 = vadd.f32 %v491_v61, %v490_v62  ;;  %v527_v39 = vrot.slane %v526_v14, 1  ;;  %v539_v40 = vrot.slane %v538_v33, 1  ;;  %v560_v45 = vadd.f32 %v559_v38, %v483_v22 }
 0x146   : > { %v504_v46 = vadd.f32 %v503_v36, %v502_v13  ;;  %v516_v48 = vadd.f32 %v515_v37, %v514_v50  ;;  %v551_v49 = vrot.slane %v550_v10, 1  ;;  %v572_v58 = vadd.f32 %v571_v11, %v485_v60 }
 0x147   : > { %v3496_v51 = vadd.f32 %v435_v6, %v434_v63  ;;  %v3498_v1 = vadd.f32 %v447_v21, %v446_v23  ;;  %v528_v15 = vadd.f32 %v527_v39, %v526_v14  ;;  %v561_v2 = vrot.slane %v560_v45, 2 }
 0x148   : > { %v540_v53 = vadd.f32 %v539_v40, %v538_v33  ;;  %v552_v29 = vadd.f32 %v551_v49, %v550_v10  ;;  %v573_v17 = vrot.slane %v572_v58, 2  ;;  %v3503_v30 = vadd.f32 %v492_v42, %v3478_v28 }
 0x149   : > { %v562_v7 = vadd.f32 %v561_v2, %v560_v45  ;;  %v3508_v31 = vadd.f32 %v504_v46, %v3480_v52  ;;  %v3511_v55 = vadd.f32 %v516_v48, %v3484_v34  ;;  %v615_v43 = vrot.slane %v599_v47, 4 }
 0x14a   : > { %v574_v63 = vadd.f32 %v573_v17, %v572_v58  ;;  %v3515_v0 = vadd.f32 %v528_v15, %v3487_v27  ;;  %v627_v5 = vrot.slane %v601_v3, 4  ;;  %v639_v57 = vrot.slane %v603_v16, 4 }
 0x14b   : > { %v563_v28 = vrot.slane %v562_v7, 1  ;;  %v616_v23 = vadd.f32 %v615_v43, %v599_v47  ;;  %v651_v24 = vrot.slane %v605_v4, 4  ;;  %v663_v19 = vrot.slane %v607_v25, 4  ;;  %v727_v47 = vld [vmem:[%s3007_s21 + $0x30] sm:$0xff] }
 0x14c   : > { %v575_v8 = vrot.slane %v574_v63, 1  ;;  %v628_v52 = vadd.f32 %v627_v5, %v601_v3  ;;  %v640_v56 = vadd.f32 %v639_v57, %v603_v16  ;;  %v675_v35 = vrot.slane %v609_v20, 4  ;;  %v735_v43 = vld [vmem:[%s3007_s21 + $0x230] sm:$0xff] }
 0x14d   : > { %v3518_v34 = vadd.f32 %v540_v53, %v3489_v32  ;;  %v617_v26 = vrot.slane %v616_v23, 2  ;;  %v652_v22 = vadd.f32 %v651_v24, %v605_v4  ;;  %v664_v59 = vadd.f32 %v663_v19, %v607_v25  ;;  %v729_v53 = vld [vmem:[%s3007_s21 + $0xb0] sm:$0xff] }
 0x14e   : > { %v3521_v27 = vadd.f32 %v552_v29, %v3491_v41  ;;  %v629_v9 = vrot.slane %v628_v52, 2  ;;  %v641_v6 = vrot.slane %v640_v56, 2  ;;  %v676_v60 = vadd.f32 %v675_v35, %v609_v20  ;;  %v731_v29 = vld [vmem:[%s3007_s21 + $0x130] sm:$0xff] }
 0x14f   : > { %v564_v62 = vadd.f32 %v563_v28, %v562_v7  ;;  %v618_v18 = vadd.f32 %v617_v26, %v616_v23  ;;  %v653_v21 = vrot.slane %v652_v22, 2  ;;  %v665_v13 = vrot.slane %v664_v59, 2  ;;  %v733_v20 = vld [vmem:[%s3007_s21 + $0x1b0] sm:$0xff] }
 0x150   : > { %v576_v50 = vadd.f32 %v575_v8, %v574_v63  ;;  %v630_v44 = vadd.f32 %v629_v9, %v628_v52  ;;  %v642_v61 = vadd.f32 %v641_v6, %v640_v56  ;;  %v677_v32 = vrot.slane %v676_v60, 2  ;;  %v739_v6 = vld [vmem:[%s3007_s21 + $0x330] sm:$0xff] }
 0x151   : > { %v619_v14 = vrot.slane %v618_v18, 1  ;;  %v654_v33 = vadd.f32 %v653_v21, %v652_v22  ;;  %v666_v38 = vadd.f32 %v665_v13, %v664_v59  ;;  %v687_v36 = vrot.slane %v611_v54, 4  ;;  %v741_v21 = vld [vmem:[%s3007_s21 + $0x3b0] sm:$0xff] }
 0x152   : > { %v631_v41 = vrot.slane %v630_v44, 1  ;;  %v643_v37 = vrot.slane %v642_v61, 1  ;;  %v678_v10 = vadd.f32 %v677_v32, %v676_v60  ;;  %v699_v11 = vrot.slane %v613_v12, 4 }
 0x153   : > { %v620_v42 = vadd.f32 %v619_v14, %v618_v18  ;;  %v655_v39 = vrot.slane %v654_v33, 1  ;;  %v667_v40 = vrot.slane %v666_v38, 1  ;;  %v688_v45 = vadd.f32 %v687_v36, %v611_v54 }
 0x154   : > { %v632_v46 = vadd.f32 %v631_v41, %v630_v44  ;;  %v644_v48 = vadd.f32 %v643_v37, %v642_v61  ;;  %v679_v49 = vrot.slane %v678_v10, 1  ;;  %v700_v58 = vadd.f32 %v699_v11, %v613_v12 }
 0x155   : > { %v3527_v15 = vadd.f32 %v564_v62, %v3496_v51  ;;  %v3530_v2 = vadd.f32 %v576_v50, %v3498_v1  ;;  %v656_v3 = vadd.f32 %v655_v39, %v654_v33  ;;  %v689_v16 = vrot.slane %v688_v45, 2  ;;  %v737_v1 = vld [vmem:[%s3007_s21 + $0x2b0] sm:$0xff] }
 0x156   : > { %v668_v17 = vadd.f32 %v667_v40, %v666_v38  ;;  %v680_v4 = vadd.f32 %v679_v49, %v678_v10  ;;  %v701_v25 = vrot.slane %v700_v58, 2  ;;  %v3535_v7 = vadd.f32 %v620_v42, %v3503_v30 }
 0x157   : > { %v690_v63 = vadd.f32 %v689_v16, %v688_v45  ;;  %v3540_v5 = vadd.f32 %v632_v46, %v3508_v31  ;;  %v3543_v51 = vadd.f32 %v644_v48, %v3511_v55  ;;  %v743_v57 = vrot.slane %v727_v47, 4 }
 0x158   : > { %v702_v28 = vadd.f32 %v701_v25, %v700_v58  ;;  %v3547_v23 = vadd.f32 %v656_v3, %v3515_v0  ;;  %v755_v24 = vrot.slane %v729_v53, 4  ;;  %v767_v19 = vrot.slane %v731_v29, 4 }
 0x159   : > { %v691_v30 = vrot.slane %v690_v63, 1  ;;  %v744_v8 = vadd.f32 %v743_v57, %v727_v47  ;;  %v779_v52 = vrot.slane %v733_v20, 4  ;;  %v791_v56 = vrot.slane %v735_v43, 4  ;;  %v855_v47 = vld [vmem:[%s3007_s21 + $0x40] sm:$0xff] }
 0x15a   : > { %v703_v35 = vrot.slane %v702_v28, 1  ;;  %v756_v31 = vadd.f32 %v755_v24, %v729_v53  ;;  %v768_v26 = vadd.f32 %v767_v19, %v731_v29  ;;  %v803_v22 = vrot.slane %v737_v1, 4  ;;  %v863_v57 = vld [vmem:[%s3007_s21 + $0x240] sm:$0xff] }
 0x15b   : > { %v3550_v55 = vadd.f32 %v668_v17, %v3518_v34  ;;  %v745_v59 = vrot.slane %v744_v8, 2  ;;  %v780_v54 = vadd.f32 %v779_v52, %v733_v20  ;;  %v792_v9 = vadd.f32 %v791_v56, %v735_v43  ;;  %v857_v17 = vld [vmem:[%s3007_s21 + $0xc0] sm:$0xff] }
 0x15c   : > { %v3553_v0 = vadd.f32 %v680_v4, %v3521_v27  ;;  %v757_v60 = vrot.slane %v756_v31, 2  ;;  %v769_v62 = vrot.slane %v768_v26, 2  ;;  %v804_v12 = vadd.f32 %v803_v22, %v737_v1  ;;  %v859_v4 = vld [vmem:[%s3007_s21 + $0x140] sm:$0xff] }
 0x15d   : > { %v692_v18 = vadd.f32 %v691_v30, %v690_v63  ;;  %v746_v13 = vadd.f32 %v745_v59, %v744_v8  ;;  %v781_v50 = vrot.slane %v780_v54, 2  ;;  %v793_v44 = vrot.slane %v792_v9, 2  ;;  %v861_v1 = vld [vmem:[%s3007_s21 + $0x1c0] sm:$0xff] }
 0x15e   : > { %v704_v61 = vadd.f32 %v703_v35, %v702_v28  ;;  %v758_v32 = vadd.f32 %v757_v60, %v756_v31  ;;  %v770_v14 = vadd.f32 %v769_v62, %v768_v26  ;;  %v805_v34 = vrot.slane %v804_v12, 2  ;;  %v867_v62 = vld [vmem:[%s3007_s21 + $0x340] sm:$0xff] }
 0x15f   : > { %v747_v33 = vrot.slane %v746_v13, 1  ;;  %v782_v38 = vadd.f32 %v781_v50, %v780_v54  ;;  %v794_v36 = vadd.f32 %v793_v44, %v792_v9  ;;  %v815_v41 = vrot.slane %v739_v6, 4  ;;  %v869_v50 = vld [vmem:[%s3007_s21 + $0x3c0] sm:$0xff] }
 0x160   : > { %v759_v27 = vrot.slane %v758_v32, 1  ;;  %v771_v37 = vrot.slane %v770_v14, 1  ;;  %v806_v10 = vadd.f32 %v805_v34, %v804_v12  ;;  %v827_v11 = vrot.slane %v741_v21, 4 }
 0x161   : > { %v748_v42 = vadd.f32 %v747_v33, %v746_v13  ;;  %v783_v39 = vrot.slane %v782_v38, 1  ;;  %v795_v40 = vrot.slane %v794_v36, 1  ;;  %v816_v45 = vadd.f32 %v815_v41, %v739_v6 }
 0x162   : > { %v760_v46 = vadd.f32 %v759_v27, %v758_v32  ;;  %v772_v48 = vadd.f32 %v771_v37, %v770_v14  ;;  %v807_v49 = vrot.slane %v806_v10, 1  ;;  %v828_v58 = vadd.f32 %v827_v11, %v741_v21 }
 0x163   : > { %v3559_v3 = vadd.f32 %v692_v18, %v3527_v15  ;;  %v3562_v16 = vadd.f32 %v704_v61, %v3530_v2  ;;  %v784_v53 = vadd.f32 %v783_v39, %v782_v38  ;;  %v817_v29 = vrot.slane %v816_v45, 2  ;;  %v865_v2 = vld [vmem:[%s3007_s21 + $0x2c0] sm:$0xff] }
 0x164   : > { %v796_v25 = vadd.f32 %v795_v40, %v794_v36  ;;  %v808_v20 = vadd.f32 %v807_v49, %v806_v10  ;;  %v829_v43 = vrot.slane %v828_v58, 2  ;;  %v3567_v63 = vadd.f32 %v748_v42, %v3535_v7 }
 0x165   : > { %v818_v28 = vadd.f32 %v817_v29, %v816_v45  ;;  %v3572_v24 = vadd.f32 %v760_v46, %v3540_v5  ;;  %v3575_v15 = vadd.f32 %v772_v48, %v3543_v51  ;;  %v871_v19 = vrot.slane %v855_v47, 4 }
 0x166   : > { %v830_v30 = vadd.f32 %v829_v43, %v828_v58  ;;  %v3579_v8 = vadd.f32 %v784_v53, %v3547_v23  ;;  %v883_v52 = vrot.slane %v857_v17, 4  ;;  %v895_v56 = vrot.slane %v859_v4, 4 }
 0x167   : > { %v819_v7 = vrot.slane %v818_v28, 1  ;;  %v872_v35 = vadd.f32 %v871_v19, %v855_v47  ;;  %v907_v31 = vrot.slane %v861_v1, 4  ;;  %v919_v26 = vrot.slane %v863_v57, 4  ;;  %v983_v47 = vld [vmem:[%s3007_s21 + $0x50] sm:$0xff] }
 0x168   : > { %v831_v22 = vrot.slane %v830_v30, 1  ;;  %v884_v5 = vadd.f32 %v883_v52, %v857_v17  ;;  %v896_v59 = vadd.f32 %v895_v56, %v859_v4  ;;  %v931_v54 = vrot.slane %v865_v2, 4  ;;  %v991_v19 = vld [vmem:[%s3007_s21 + $0x250] sm:$0xff] }
 0x169   : > { %v3582_v51 = vadd.f32 %v796_v25, %v3550_v55  ;;  %v873_v9 = vrot.slane %v872_v35, 2  ;;  %v908_v6 = vadd.f32 %v907_v31, %v861_v1  ;;  %v920_v60 = vadd.f32 %v919_v26, %v863_v57  ;;  %v985_v25 = vld [vmem:[%s3007_s21 + $0xd0] sm:$0xff] }
 0x16a   : > { %v3585_v23 = vadd.f32 %v808_v20, %v3553_v0  ;;  %v885_v12 = vrot.slane %v884_v5, 2  ;;  %v897_v18 = vrot.slane %v896_v59, 2  ;;  %v932_v21 = vadd.f32 %v931_v54, %v865_v2  ;;  %v987_v20 = vld [vmem:[%s3007_s21 + $0x150] sm:$0xff] }
 0x16b   : > { %v820_v13 = vadd.f32 %v819_v7, %v818_v28  ;;  %v874_v44 = vadd.f32 %v873_v9, %v872_v35  ;;  %v909_v61 = vrot.slane %v908_v6, 2  ;;  %v921_v32 = vrot.slane %v920_v60, 2  ;;  %v989_v2 = vld [vmem:[%s3007_s21 + $0x1d0] sm:$0xff] }
 0x16c   : > { %v832_v14 = vadd.f32 %v831_v22, %v830_v30  ;;  %v886_v34 = vadd.f32 %v885_v12, %v884_v5  ;;  %v898_v33 = vadd.f32 %v897_v18, %v896_v59  ;;  %v933_v55 = vrot.slane %v932_v21, 2  ;;  %v995_v18 = vld [vmem:[%s3007_s21 + $0x350] sm:$0xff] }
 0x16d   : > { %v875_v38 = vrot.slane %v874_v44, 1  ;;  %v910_v36 = vadd.f32 %v909_v61, %v908_v6  ;;  %v922_v41 = vadd.f32 %v921_v32, %v920_v60  ;;  %v943_v27 = vrot.slane %v867_v62, 4  ;;  %v997_v61 = vld [vmem:[%s3007_s21 + $0x3d0] sm:$0xff] }
 0x16e   : > { %v887_v0 = vrot.slane %v886_v34, 1  ;;  %v899_v37 = vrot.slane %v898_v33, 1  ;;  %v934_v10 = vadd.f32 %v933_v55, %v932_v21  ;;  %v955_v11 = vrot.slane %v869_v50, 4 }
 0x16f   : > { %v876_v42 = vadd.f32 %v875_v38, %v874_v44  ;;  %v911_v39 = vrot.slane %v910_v36, 1  ;;  %v923_v40 = vrot.slane %v922_v41, 1  ;;  %v944_v45 = vadd.f32 %v943_v27, %v867_v62 }
 0x170   : > { %v888_v46 = vadd.f32 %v887_v0, %v886_v34  ;;  %v900_v48 = vadd.f32 %v899_v37, %v898_v33  ;;  %v935_v49 = vrot.slane %v934_v10, 1  ;;  %v956_v58 = vadd.f32 %v955_v11, %v869_v50 }
 0x171   : > { %v3591_v53 = vadd.f32 %v820_v13, %v3559_v3  ;;  %v3594_v29 = vadd.f32 %v832_v14, %v3562_v16  ;;  %v912_v17 = vadd.f32 %v911_v39, %v910_v36  ;;  %v945_v4 = vrot.slane %v944_v45, 2  ;;  %v993_v16 = vld [vmem:[%s3007_s21 + $0x2d0] sm:$0xff] }
 0x172   : > { %v924_v43 = vadd.f32 %v923_v40, %v922_v41  ;;  %v936_v1 = vadd.f32 %v935_v49, %v934_v10  ;;  %v957_v57 = vrot.slane %v956_v58, 2  ;;  %v3599_v28 = vadd.f32 %v876_v42, %v3567_v63 }
 0x173   : > { %v946_v30 = vadd.f32 %v945_v4, %v944_v45  ;;  %v3604_v52 = vadd.f32 %v888_v46, %v3572_v24  ;;  %v3607_v3 = vadd.f32 %v900_v48, %v3575_v15  ;;  %v999_v56 = vrot.slane %v983_v47, 4 }
 0x174   : > { %v958_v7 = vadd.f32 %v957_v57, %v956_v58  ;;  %v3611_v35 = vadd.f32 %v912_v17, %v3579_v8  ;;  %v1011_v31 = vrot.slane %v985_v25, 4  ;;  %v1023_v26 = vrot.slane %v987_v20, 4 }
 0x175   : > { %v947_v63 = vrot.slane %v946_v30, 1  ;;  %v1000_v22 = vadd.f32 %v999_v56, %v983_v47  ;;  %v1035_v5 = vrot.slane %v989_v2, 4  ;;  %v1047_v59 = vrot.slane %v991_v19, 4  ;;  %v1111_v47 = vld [vmem:[%s3007_s21 + $0x60] sm:$0xff] }
 0x176   : > { %v959_v54 = vrot.slane %v958_v7, 1  ;;  %v1012_v24 = vadd.f32 %v1011_v31, %v985_v25  ;;  %v1024_v9 = vadd.f32 %v1023_v26, %v987_v20  ;;  %v1059_v6 = vrot.slane %v993_v16, 4  ;;  %v1119_v56 = vld [vmem:[%s3007_s21 + $0x260] sm:$0xff] }
 0x177   : > { %v3614_v15 = vadd.f32 %v924_v43, %v3582_v51  ;;  %v1001_v60 = vrot.slane %v1000_v22, 2  ;;  %v1036_v62 = vadd.f32 %v1035_v5, %v989_v2  ;;  %v1048_v12 = vadd.f32 %v1047_v59, %v991_v19  ;;  %v1113_v43 = vld [vmem:[%s3007_s21 + $0xe0] sm:$0xff] }
 0x178   : > { %v3617_v8 = vadd.f32 %v936_v1, %v3585_v23  ;;  %v1013_v21 = vrot.slane %v1012_v24, 2  ;;  %v1025_v13 = vrot.slane %v1024_v9, 2  ;;  %v1060_v50 = vadd.f32 %v1059_v6, %v993_v16  ;;  %v1115_v1 = vld [vmem:[%s3007_s21 + $0x160] sm:$0xff] }
 0x179   : > { %v948_v44 = vadd.f32 %v947_v63, %v946_v30  ;;  %v1002_v32 = vadd.f32 %v1001_v60, %v1000_v22  ;;  %v1037_v14 = vrot.slane %v1036_v62, 2  ;;  %v1049_v34 = vrot.slane %v1048_v12, 2  ;;  %v1117_v16 = vld [vmem:[%s3007_s21 + $0x1e0] sm:$0xff] }
 0x17a   : > { %v960_v33 = vadd.f32 %v959_v54, %v958_v7  ;;  %v1014_v55 = vadd.f32 %v1013_v21, %v1012_v24  ;;  %v1026_v38 = vadd.f32 %v1025_v13, %v1024_v9  ;;  %v1061_v51 = vrot.slane %v1060_v50, 2  ;;  %v1123_v13 = vld [vmem:[%s3007_s21 + $0x360] sm:$0xff] }
 0x17b   : > { %v1003_v36 = vrot.slane %v1002_v32, 1  ;;  %v1038_v41 = vadd.f32 %v1037_v14, %v1036_v62  ;;  %v1050_v27 = vadd.f32 %v1049_v34, %v1048_v12  ;;  %v1071_v0 = vrot.slane %v995_v18, 4  ;;  %v1125_v14 = vld [vmem:[%s3007_s21 + $0x3e0] sm:$0xff] }
 0x17c   : > { %v1015_v23 = vrot.slane %v1014_v55, 1  ;;  %v1027_v37 = vrot.slane %v1026_v38, 1  ;;  %v1062_v10 = vadd.f32 %v1061_v51, %v1060_v50  ;;  %v1083_v11 = vrot.slane %v997_v61, 4 }
 0x17d   : > { %v1004_v42 = vadd.f32 %v1003_v36, %v1002_v32  ;;  %v1039_v39 = vrot.slane %v1038_v41, 1  ;;  %v1051_v40 = vrot.slane %v1050_v27, 1  ;;  %v1072_v45 = vadd.f32 %v1071_v0, %v995_v18 }
 0x17e   : > { %v1016_v46 = vadd.f32 %v1015_v23, %v1014_v55  ;;  %v1028_v48 = vadd.f32 %v1027_v37, %v1026_v38  ;;  %v1063_v49 = vrot.slane %v1062_v10, 1  ;;  %v1084_v58 = vadd.f32 %v1083_v11, %v997_v61 }
 0x17f   : > { %v3623_v17 = vadd.f32 %v948_v44, %v3591_v53  ;;  %v3626_v4 = vadd.f32 %v960_v33, %v3594_v29  ;;  %v1040_v25 = vadd.f32 %v1039_v39, %v1038_v41  ;;  %v1073_v20 = vrot.slane %v1072_v45, 2  ;;  %v1121_v29 = vld [vmem:[%s3007_s21 + $0x2e0] sm:$0xff] }
 0x180   : > { %v1052_v57 = vadd.f32 %v1051_v40, %v1050_v27  ;;  %v1064_v2 = vadd.f32 %v1063_v49, %v1062_v10  ;;  %v1085_v19 = vrot.slane %v1084_v58, 2  ;;  %v3631_v30 = vadd.f32 %v1004_v42, %v3599_v28 }
 0x181   : > { %v1074_v7 = vadd.f32 %v1073_v20, %v1072_v45  ;;  %v3636_v31 = vadd.f32 %v1016_v46, %v3604_v52  ;;  %v3639_v53 = vadd.f32 %v1028_v48, %v3607_v3  ;;  %v1127_v26 = vrot.slane %v1111_v47, 4 }
 0x182   : > { %v1086_v63 = vadd.f32 %v1085_v19, %v1084_v58  ;;  %v3643_v22 = vadd.f32 %v1040_v25, %v3611_v35  ;;  %v1139_v5 = vrot.slane %v1113_v43, 4  ;;  %v1151_v59 = vrot.slane %v1115_v1, 4 }
 0x183   : > { %v1075_v28 = vrot.slane %v1074_v7, 1  ;;  %v1128_v54 = vadd.f32 %v1127_v26, %v1111_v47  ;;  %v1163_v24 = vrot.slane %v1117_v16, 4  ;;  %v1175_v9 = vrot.slane %v1119_v56, 4  ;;  %v1239_v47 = vld [vmem:[%s3007_s21 + $0x70] sm:$0xff] }
 0x184   : > { %v1087_v6 = vrot.slane %v1086_v63, 1  ;;  %v1140_v52 = vadd.f32 %v1139_v5, %v1113_v43  ;;  %v1152_v60 = vadd.f32 %v1151_v59, %v1115_v1  ;;  %v1187_v62 = vrot.slane %v1121_v29, 4  ;;  %v1247_v26 = vld [vmem:[%s3007_s21 + $0x270] sm:$0xff] }
 0x185   : > { %v3646_v3 = vadd.f32 %v1052_v57, %v3614_v15  ;;  %v1129_v12 = vrot.slane %v1128_v54, 2  ;;  %v1164_v18 = vadd.f32 %v1163_v24, %v1117_v16  ;;  %v1176_v21 = vadd.f32 %v1175_v9, %v1119_v56  ;;  %v1241_v57 = vld [vmem:[%s3007_s21 + $0xf0] sm:$0xff] }
 0x186   : > { %v3649_v35 = vadd.f32 %v1064_v2, %v3617_v8  ;;  %v1141_v50 = vrot.slane %v1140_v52, 2  ;;  %v1153_v44 = vrot.slane %v1152_v60, 2  ;;  %v1188_v61 = vadd.f32 %v1187_v62, %v1121_v29  ;;  %v1243_v2 = vld [vmem:[%s3007_s21 + $0x170] sm:$0xff] }
 0x187   : > { %v1076_v32 = vadd.f32 %v1075_v28, %v1074_v7  ;;  %v1130_v34 = vadd.f32 %v1129_v12, %v1128_v54  ;;  %v1165_v33 = vrot.slane %v1164_v18, 2  ;;  %v1177_v55 = vrot.slane %v1176_v21, 2  ;;  %v1245_v29 = vld [vmem:[%s3007_s21 + $0x1f0] sm:$0xff] }
 0x188   : > { %v1088_v38 = vadd.f32 %v1087_v6, %v1086_v63  ;;  %v1142_v51 = vadd.f32 %v1141_v50, %v1140_v52  ;;  %v1154_v36 = vadd.f32 %v1153_v44, %v1152_v60  ;;  %v1189_v15 = vrot.slane %v1188_v61, 2  ;;  %v1249_v59 = vld [vmem:[%s3007_s21 + $0x2f0] sm:$0xff] }
 0x189   : > { %v1131_v41 = vrot.slane %v1130_v34, 1  ;;  %v1166_v27 = vadd.f32 %v1165_v33, %v1164_v18  ;;  %v1178_v0 = vadd.f32 %v1177_v55, %v1176_v21  ;;  %v1199_v23 = vrot.slane %v1123_v13, 4  ;;  %v1253_v33 = vld [vmem:[%s3007_s21 + $0x3f0] sm:$0xff] }
 0x18a   : > { %v1143_v8 = vrot.slane %v1142_v51, 1  ;;  %v1155_v37 = vrot.slane %v1154_v36, 1  ;;  %v1190_v10 = vadd.f32 %v1189_v15, %v1188_v61  ;;  %v1211_v11 = vrot.slane %v1125_v14, 4 }
 0x18b   : > { %v1132_v42 = vadd.f32 %v1131_v41, %v1130_v34  ;;  %v1167_v39 = vrot.slane %v1166_v27, 1  ;;  %v1179_v40 = vrot.slane %v1178_v0, 1  ;;  %v1200_v45 = vadd.f32 %v1199_v23, %v1123_v13 }
 0x18c   : > { %v1144_v46 = vadd.f32 %v1143_v8, %v1142_v51  ;;  %v1156_v48 = vadd.f32 %v1155_v37, %v1154_v36  ;;  %v1191_v49 = vrot.slane %v1190_v10, 1  ;;  %v1212_v58 = vadd.f32 %v1211_v11, %v1125_v14 }
 0x18d   : > { %v3655_v25 = vadd.f32 %v1076_v32, %v3623_v17  ;;  %v3658_v20 = vadd.f32 %v1088_v38, %v3626_v4  ;;  %v1168_v43 = vadd.f32 %v1167_v39, %v1166_v27  ;;  %v1201_v1 = vrot.slane %v1200_v45, 2 }
 0x18e   : > { %v1180_v19 = vadd.f32 %v1179_v40, %v1178_v0  ;;  %v1192_v16 = vadd.f32 %v1191_v49, %v1190_v10  ;;  %v1213_v56 = vrot.slane %v1212_v58, 2  ;;  %v1223_v7 = vadd.f32 %v1132_v42, %v3631_v30 }
 0x18f   : > { %v1202_v63 = vadd.f32 %v1201_v1, %v1200_v45  ;;  %v1225_v5 = vadd.f32 %v1144_v46, %v3636_v31  ;;  %v1227_v17 = vadd.f32 %v1156_v48, %v3639_v53  ;;  %v1255_v28 = vrot.slane %v1239_v47, 4 }
 0x190   : > { %v1214_v4 = vadd.f32 %v1213_v56, %v1212_v58  ;;  %v1229_v54 = vadd.f32 %v1168_v43, %v3643_v22  ;;  %v1267_v24 = vrot.slane %v1241_v57, 4  ;;  %v1279_v9 = vrot.slane %v1243_v2, 4  ;;  %v1251_v22 = vld [vmem:[%s3007_s21 + $0x370] sm:$0xff]  ;;  %v1719_v43 = vld [vmem:[#allocation7 + $0x88] sm:$0xff]  ;;  %s2683_s21 = scalar_lea.vmem %s3698_s10, 128 }
 0x191   : > { %v1203_v6 = vrot.slane %v1202_v63, 1  ;;  %v1256_v52 = vadd.f32 %v1255_v28, %v1239_v47  ;;  %v1291_v60 = vrot.slane %v1245_v29, 4  ;;  %v1303_v30 = vrot.slane %v1247_v26, 4  ;;  %v1718_v47 = vld [vmem:[#allocation7 + $0x80] sm:$0xff]  ;;  %v1751_v56 = vld [vmem:[#allocation7 + $0x188] sm:$0xff]  ;;  %p2684_p10 = scmp.ne.s32.totalorder %s3698_s10, %s2683_s21  ;;  %p2691_p2 = scmp.lt.s32.totalorder %s2689_s9, %s2683_s21 }
 0x192   : > { %v1215_v62 = vrot.slane %v1214_v4, 1  ;;  %v1268_v12 = vadd.f32 %v1267_v24, %v1241_v57  ;;  %v1280_v18 = vadd.f32 %v1279_v9, %v1243_v2  ;;  %v1315_v21 = vrot.slane %v1249_v59, 4 }
 0x193   : > { %v1231_v31 = vadd.f32 %v1180_v19, %v3646_v3  ;;  %v1257_v53 = vrot.slane %v1256_v52, 2  ;;  %v1292_v13 = vadd.f32 %v1291_v60, %v1245_v29  ;;  %v1304_v50 = vadd.f32 %v1303_v30, %v1247_v26  ;;  %p2685_p3 = pnand %p2684_p10, %p2955_p5  ;;  %p2692_p1 = por %p2691_p2, %p2690_p12 }
 0x194   : > { %v1233_v44 = vadd.f32 %v1192_v16, %v3649_v35  ;;  %v1269_v61 = vrot.slane %v1268_v12, 2  ;;  %v1281_v32 = vrot.slane %v1280_v18, 2  ;;  %v1316_v14 = vadd.f32 %v1315_v21, %v1249_v59  ;;  %v1750_v16 = vld [vmem:[#allocation7 + $0x180] sm:$0xff] }
 0x195   : > { %v1204_v34 = vadd.f32 %v1203_v6, %v1202_v63  ;;  %v1258_v55 = vadd.f32 %v1257_v53, %v1256_v52  ;;  %v1293_v38 = vrot.slane %v1292_v13, 2  ;;  %v1305_v51 = vrot.slane %v1304_v50, 2  ;;  %p2686_p7 = pneg %p2685_p3 }
 0x196   : > { %v1216_v36 = vadd.f32 %v1215_v62, %v1214_v4  ;;  %v1270_v15 = vadd.f32 %v1269_v61, %v1268_v12  ;;  %v1282_v41 = vadd.f32 %v1281_v32, %v1280_v18  ;;  %v1317_v27 = vrot.slane %v1316_v14, 2  ;;  %v1721_v61 = vld [vmem:[#allocation7 + $0x98] sm:$0xff]  ;;  %v1752_v32 = vld [vmem:[#allocation7 + $0x190] sm:$0xff] }
 0x197   : > { %v1259_v0 = vrot.slane %v1258_v55, 1  ;;  %v1294_v3 = vadd.f32 %v1293_v38, %v1292_v13  ;;  %v1306_v23 = vadd.f32 %v1305_v51, %v1304_v50  ;;  %v1327_v8 = vrot.slane %v1251_v22, 4  ;;  %v1734_v13 = vld [vmem:[#allocation7 + $0x100] sm:$0xff]  ;;  %v1735_v50 = vld [vmem:[#allocation7 + $0x108] sm:$0xff]  ;;  %v1704_v38 = vld [vmem:[#allocation7 + $0x10] sm:$0xff]  ;;  %p2693_p4 = pnand %p2692_p1, %p2686_p7 }
 0x198   : > { %v1271_v37 = vrot.slane %v1270_v15, 1  ;;  %v1283_v10 = vrot.slane %v1282_v41, 1  ;;  %v1318_v35 = vadd.f32 %v1317_v27, %v1316_v14  ;;  %v1339_v11 = vrot.slane %v1253_v33, 4  ;;  %v1753_v14 = vld [vmem:[#allocation7 + $0x198] sm:$0xff]  ;;  %v1736_v27 = vld [vmem:[#allocation7 + $0x110] sm:$0xff] }
 0x199   : > { %v1260_v42 = vadd.f32 %v1259_v0, %v1258_v55  ;;  %v1295_v39 = vrot.slane %v1294_v3, 1  ;;  %v1307_v40 = vrot.slane %v1306_v23, 1  ;;  %v1328_v45 = vadd.f32 %v1327_v8, %v1251_v22  ;;  %v1705_v51 = vld [vmem:[#allocation7 + $0x18] sm:$0xff]  ;;  %v1723_v8 = vld [vmem:[#allocation7 + $0xa8] sm:$0xff] }
 0x19a   : > { %v1272_v46 = vadd.f32 %v1271_v37, %v1270_v15  ;;  %v1284_v48 = vadd.f32 %v1283_v10, %v1282_v41  ;;  %v1319_v49 = vrot.slane %v1318_v35, 1  ;;  %v1340_v58 = vadd.f32 %v1339_v11, %v1253_v33  ;;  %v1737_v0 = vld [vmem:[#allocation7 + $0x118] sm:$0xff]  ;;  %v1754_v37 = vld [vmem:[#allocation7 + $0x1a0] sm:$0xff]  ;;  %v1755_v10 = vld [vmem:[#allocation7 + $0x1a8] sm:$0xff] }
 0x19b   : > { %v1296_v1 = vadd.f32 %v1295_v39, %v1294_v3  ;;  %v1308_v57 = vadd.f32 %v1307_v40, %v1306_v23  ;;  %v1329_v2 = vrot.slane %v1328_v45, 2  ;;  %v1351_v19 = vadd.f32 %v1260_v42, %v1223_v7  ;;  %v1722_v3 = vld [vmem:[#allocation7 + $0xa0] sm:$0xff]  ;;  %v1707_v39 = vld [vmem:[#allocation7 + $0x28] sm:$0xff] }
 0x19c   : > { %v1320_v29 = vadd.f32 %v1319_v49, %v1318_v35  ;;  %v1341_v26 = vrot.slane %v1340_v58, 2  ;;  %v1353_v63 = vadd.f32 %v1272_v46, %v1225_v5  ;;  %v1355_v59 = vadd.f32 %v1284_v48, %v1227_v17  ;;  %v1702_v17 = vld [vmem:[#allocation7] sm:$0xff]  ;;  %v1739_v48 = vld [vmem:[#allocation7 + $0x128] sm:$0xff]  ;;  %v1724_v49 = vld [vmem:[#allocation7 + $0xb0] sm:$0xff] }
 0x19d   : > { %v1330_v28 = vadd.f32 %v1329_v2, %v1328_v45  ;;  %v1357_v4 = vadd.f32 %v1296_v1, %v1229_v54  ;;  %v1359_v24 = vadd.f32 %v1308_v57, %v1231_v31  ;;  %v2395_v9 = vpack.c.bf16 %v1719_v43, %v1718_v47  ;;  %v1703_v54 = vld [vmem:[#allocation7 + $0x8] sm:$0xff]  ;;  %v1706_v42 = vld [vmem:[#allocation7 + $0x20] sm:$0xff]  ;;  %v1756_v47 = vld [vmem:[#allocation7 + $0x1b0] sm:$0xff] }
 0x19e   : > { %v1342_v6 = vadd.f32 %v1341_v26, %v1340_v58  ;;  %v1361_v52 = vadd.f32 %v1320_v29, %v1233_v44  ;;  %v1534_v60 = vsel %vm1533_vm0, %v1353_v63, %v1351_v19  ;;  %v2427_v30 = vpack.c.bf16 %v1751_v56, %v1750_v16  ;;  %v1720_v44 = vld [vmem:[#allocation7 + $0x90] sm:$0xff]  ;;  %v1738_v46 = vld [vmem:[#allocation7 + $0x120] sm:$0xff]  ;;  %v1725_v58 = vld [vmem:[#allocation7 + $0xb8] sm:$0xff] }
 0x19f   : > { %v1235_v62 = vadd.f32 %v1204_v34, %v3655_v25  ;;  %v1331_v12 = vrot.slane %v1330_v28, 1  ;;  %v1536_v7 = vsel %vm1535_vm1, %v1355_v59, %v1534_v60  ;;  %2396 = vmatprep.subr.bf16.mxu0 %v2395_v9  ;;  %v1237_v18 = vadd.f32 %v1216_v36, %v3658_v20  ;;  %v1757_v43 = vld [vmem:[#allocation7 + $0x1b8] sm:$0xff]  ;;  %v1708_v2 = vld [vmem:[#allocation7 + $0x30] sm:$0xff]  ;;  %v1726_v63 = vld [vmem:[#allocation7 + $0xc0] sm:$0xff] }
 0x1a0   : > { %v1343_v21 = vrot.slane %v1342_v6, 1  ;;  %v1538_v5 = vsel %vm1537_vm2, %v1357_v4, %v1536_v7  ;;  %2428 = vmatprep.subr.bf16.mxu1 %v2427_v30  ;;  %v2397_v33 = vpack.c.bf16 %v1703_v54, %v1702_v17  ;;  %v2429_v55 = vpack.c.bf16 %v1735_v50, %v1734_v13  ;;  %v1709_v19 = vld [vmem:[#allocation7 + $0x38] sm:$0xff]  ;;  %v1740_v29 = vld [vmem:[#allocation7 + $0x130] sm:$0xff]  ;;  %v1727_v59 = vld [vmem:[#allocation7 + $0xc8] sm:$0xff] }
 0x1a1   : > { %v1332_v31 = vadd.f32 %v1331_v12, %v1330_v28  ;;  %v1540_v53 = vsel %vm1539_vm3, %v1359_v24, %v1538_v5  ;;  %v2399_v15 = vpack.c.bf16 %v1721_v61, %v1720_v44  ;;  %v2431_v41 = vpack.c.bf16 %v1753_v14, %v1752_v32  ;;  %v1741_v26 = vld [vmem:[#allocation7 + $0x138] sm:$0xff]  ;;  %v1758_v28 = vld [vmem:[#allocation7 + $0x1c0] sm:$0xff]  ;;  %v1759_v4 = vld [vmem:[#allocation7 + $0x1c8] sm:$0xff] }
 0x1a2   : > { %v1344_v22 = vadd.f32 %v1343_v21, %v1342_v6  ;;  %v1542_v25 = vsel %vm1541_vm4, %v1361_v52, %v1540_v53  ;;  %v2401_v35 = vpack.c.bf16 %v1705_v51, %v1704_v38  ;;  %v2433_v11 = vpack.c.bf16 %v1737_v0, %v1736_v27  ;;  %v1710_v6 = vld [vmem:[#allocation7 + $0x40] sm:$0xff]  ;;  %v1711_v52 = vld [vmem:[#allocation7 + $0x48] sm:$0xff]  ;;  %v1728_v7 = vld [vmem:[#allocation7 + $0xd0] sm:$0xff] }
 0x1a3   : > { %v1363_v34 = vadd.f32 %v1332_v31, %v1235_v62  ;;  %v2403_v40 = vpack.c.bf16 %v1723_v8, %v1722_v3  ;;  %v2435_v45 = vpack.c.bf16 %v1755_v10, %v1754_v37  ;;  %v2405_v1 = vpack.c.bf16 %v1707_v39, %v1706_v42  ;;  %v1742_v62 = vld [vmem:[#allocation7 + $0x140] sm:$0xff]  ;;  %v1743_v12 = vld [vmem:[#allocation7 + $0x148] sm:$0xff]  ;;  %v1760_v21 = vld [vmem:[#allocation7 + $0x1d0] sm:$0xff] }
 0x1a4   : > { %v1365_v20 = vadd.f32 %v1344_v22, %v1237_v18  ;;  %v2437_v57 = vpack.c.bf16 %v1739_v48, %v1738_v46  ;;  %v2407_v16 = vpack.c.bf16 %v1725_v58, %v1724_v49  ;;  %v2439_v56 = vpack.c.bf16 %v1757_v43, %v1756_v47  ;;  %v1729_v18 = vld [vmem:[#allocation7 + $0xd8] sm:$0xff]  ;;  %v1712_v31 = vld [vmem:[#allocation7 + $0x50] sm:$0xff]  ;;  %v1731_v61 = vld [vmem:[#allocation7 + $0xe8] sm:$0xff] }
 0x1a5   : > { %v1544_v36 = vsel %vm1543_vm5, %v1363_v34, %v1542_v25  ;;  %v2409_v24 = vpack.c.bf16 %v1709_v19, %v1708_v2  ;;  %v2441_v9 = vpack.c.bf16 %v1741_v26, %v1740_v29  ;;  %v2411_v60 = vpack.c.bf16 %v1727_v59, %v1726_v63  ;;  %v1761_v5 = vld [vmem:[#allocation7 + $0x1d8] sm:$0xff]  ;;  %v1744_v44 = vld [vmem:[#allocation7 + $0x150] sm:$0xff]  ;;  %v1730_v25 = vld [vmem:[#allocation7 + $0xe0] sm:$0xff] }
 0x1a6   : > { %v1546_v23 = vsel %vm1545_vm6, %v1365_v20, %v1544_v36  ;;  %v2443_v30 = vpack.c.bf16 %v1759_v4, %v1758_v28  ;;  %v2413_v17 = vpack.c.bf16 %v1711_v52, %v1710_v6  ;;  %v2445_v54 = vpack.c.bf16 %v1743_v12, %v1742_v62  ;;  %v1713_v53 = vld [vmem:[#allocation7 + $0x58] sm:$0xff]  ;;  %v1762_v32 = vld [vmem:[#allocation7 + $0x1e0] sm:$0xff]  ;;  %v1763_v14 = vld [vmem:[#allocation7 + $0x1e8] sm:$0xff] }
 0x1a7   : > { %1621 = vmatmul.mubr.f32.vlgmr.msra.gmra.mrb[0].mxu0 %v1546_v23  ;;  %1692 = vmatmul.mubr.f32.vlgmr.msra.gmra.mrb[0].mxu1 %v1546_v23  ;;  %v2415_v13 = vpack.c.bf16 %v1729_v18, %v1728_v7  ;;  %v2447_v50 = vpack.c.bf16 %v1761_v5, %v1760_v21  ;;  %v1745_v22 = vld [vmem:[#allocation7 + $0x158] sm:$0xff]  ;;  %v2417_v34 = vpack.c.bf16 %v1713_v53, %v1712_v31  ;;  %v1714_v38 = vld [vmem:[#allocation7 + $0x60] sm:$0xff]  ;;  %v1715_v51 = vld [vmem:[#allocation7 + $0x68] sm:$0xff]  ;;  %v2769_v46 = vmov 0.0|0.0  }
 0x1a8   : > { %2398 = vmatpush3.bf16.msra.mxu0 %v2397_v33  ;;  %2430 = vmatpush3.bf16.msra.mxu1 %v2429_v55  ;;  %v2449_v20 = vpack.c.bf16 %v1745_v22, %v1744_v44  ;;  %v2419_v33 = vpack.c.bf16 %v1731_v61, %v1730_v25  ;;  %v2451_v55 = vpack.c.bf16 %v1763_v14, %v1762_v32  ;;  %v1746_v36 = vld [vmem:[#allocation7 + $0x160] sm:$0xff]  ;;  %v1732_v0 = vld [vmem:[#allocation7 + $0xf0] sm:$0xff]  ;;  %v1733_v3 = vld [vmem:[#allocation7 + $0xf8] sm:$0xff]  ;;  %v1497_v48 = vlaneseq }
 0x1a9   : > { %2400 = vmatprep.subr.bf16.mxu0 %v2399_v15  ;;  %2432 = vmatprep.subr.bf16.mxu1 %v2431_v41  ;;  %v2421_v15 = vpack.c.bf16 %v1715_v51, %v1714_v38  ;;  %v1747_v41 = vld [vmem:[#allocation7 + $0x168] sm:$0xff]  ;;  %v1764_v23 = vld [vmem:[#allocation7 + $0x1f0] sm:$0xff]  ;;  %v2423_v8 = vpack.c.bf16 %v1733_v3, %v1732_v0  ;;  %v1765_v37 = vld [vmem:[#allocation7 + $0x1f8] sm:$0xff] }
 0x1aa   : > { %v2453_v27 = vpack.c.bf16 %v1747_v41, %v1746_v36  ;;  %v1716_v10 = vld [vmem:[#allocation7 + $0x70] sm:$0xff]  ;;  %v1498_v49 = vshrl.u32 %v1497_v48, 7  ;;  %v1495_v43 = vld [vmem:[%s3742_s2] sm:$0xf]  ;;  %v1917_v21 = vld [vmem:[#allocation8 + $0x18] sm:$0xff]  ;;  %v2771_v36 = vmov 0.0  }
 0x1ab   : > { %v1748_v39 = vld [vmem:[#allocation7 + $0x170] sm:$0xff]  ;;  %v1922_v44 = vld [vmem:[#allocation8 + $0x40] sm:$0xff]  ;;  %v1923_v22 = vld [vmem:[#allocation8 + $0x48] sm:$0xff] }
 0x1ac   : > { %2402 = vmatpush3.bf16.msra.mxu0 %v2401_v35  ;;  %2434 = vmatpush3.bf16.msra.mxu1 %v2433_v11  ;;  %v1717_v35 = vld [vmem:[#allocation7 + $0x78] sm:$0xff]  ;;  %v2455_v11 = vpack.c.bf16 %v1765_v37, %v1764_v23  ;;  %v1499_v58 = vsub.s32 0, %v1498_v49  ;;  %v1507_v47 = vsub.s32 2, %v1498_v49  ;;  %v1916_v18 = vld [vmem:[#allocation8 + $0x10] sm:$0xff]  ;;  %v2472_v25 = vpack.c.bf16 %v1923_v22, %v1922_v44 }
 0x1ad   : > { %2404 = vmatprep.subr.bf16.mxu0 %v2403_v40  ;;  %2436 = vmatprep.subr.bf16.mxu1 %v2435_v45  ;;  %v2425_v42 = vpack.c.bf16 %v1717_v35, %v1716_v10  ;;  %v1749_v40 = vld [vmem:[#allocation7 + $0x178] sm:$0xff]  ;;  %v2463_v5 = vpack.c.bf16 %v1917_v21, %v1916_v18  ;;  %v1920_v53 = vld [vmem:[#allocation8 + $0x30] sm:$0xff] }
 0x1ae   : > { %v2457_v45 = vpack.c.bf16 %v1749_v40, %v1748_v39  ;;  %v1500_v2 = vrot.slane %v1495_v43, %v1499_v58  ;;  %v1508_v19 = vrot.slane %v1495_v43, %v1507_v47  ;;  %v1924_v61 = vld [vmem:[#allocation8 + $0x50] sm:$0xff]  ;;  %v1925_v32 = vld [vmem:[#allocation8 + $0x58] sm:$0xff] }
 0x1af   : > { %v2475_v14 = vpack.c.bf16 %v1925_v32, %v1924_v61  ;;  %v1929_v38 = vld [vmem:[#allocation8 + $0x78] sm:$0xff] }
 0x1b0   : > { %2406 = vmatpush3.bf16.msra.mxu0 %v2405_v1  ;;  %2438 = vmatpush3.bf16.msra.mxu1 %v2437_v57  ;;  %v1503_v1 = vsub.s32 1, %v1498_v49  ;;  %v1511_v57 = vsub.s32 3, %v1498_v49 }
 0x1b1   : > { %2408 = vmatprep.subr.bf16.mxu0 %v2407_v16  ;;  %2440 = vmatprep.subr.bf16.mxu1 %v2439_v56 }
 0x1b2   : > { %v1504_v16 = vrot.slane %v1495_v43, %v1503_v1  ;;  %v1512_v56 = vrot.slane %v1495_v43, %v1511_v57 }
 0x1b4   : > { %2410 = vmatpush3.bf16.msra.mxu0 %v2409_v24  ;;  %2442 = vmatpush3.bf16.msra.mxu1 %v2441_v9  ;;  %v1914_v24 = vld [vmem:[#allocation8] sm:$0xff]  ;;  %v1915_v9 = vld [vmem:[#allocation8 + $0x8] sm:$0xff] }
 0x1b5   : > { %2412 = vmatprep.subr.bf16.mxu0 %v2411_v60  ;;  %2444 = vmatprep.subr.bf16.mxu1 %v2443_v30  ;;  %v2460_v12 = vpack.c.bf16 %v1915_v9, %v1914_v24 }
 0x1b8   : > { %2414 = vmatpush3.bf16.msra.mxu0 %v2413_v17  ;;  %2446 = vmatpush3.bf16.msra.mxu1 %v2445_v54  ;;  %v1918_v17 = vld [vmem:[#allocation8 + $0x20] sm:$0xff]  ;;  %v1919_v54 = vld [vmem:[#allocation8 + $0x28] sm:$0xff] }
 0x1b9   : > { %2416 = vmatprep.subr.bf16.mxu0 %v2415_v13  ;;  %2448 = vmatprep.subr.bf16.mxu1 %v2447_v50  ;;  %v2466_v31 = vpack.c.bf16 %v1919_v54, %v1918_v17  ;;  %v1921_v13 = vld [vmem:[#allocation8 + $0x38] sm:$0xff] }
 0x1ba   : > { %v2469_v50 = vpack.c.bf16 %v1921_v13, %v1920_v53 }
 0x1bc   : > { %2418 = vmatpush3.bf16.msra.mxu0 %v2417_v34  ;;  %2450 = vmatpush3.bf16.msra.mxu1 %v2449_v20  ;;  %v1926_v34 = vld [vmem:[#allocation8 + $0x60] sm:$0xff]  ;;  %v1927_v20 = vld [vmem:[#allocation8 + $0x68] sm:$0xff] }
 0x1bd   : > { %2420 = vmatprep.subr.bf16.mxu0 %v2419_v33  ;;  %2452 = vmatprep.subr.bf16.mxu1 %v2451_v55  ;;  %v2478_v33 = vpack.c.bf16 %v1927_v20, %v1926_v34  ;;  %v1928_v55 = vld [vmem:[#allocation8 + $0x70] sm:$0xff] }
 0x1be   : > { %v2481_v51 = vpack.c.bf16 %v1929_v38, %v1928_v55 }
 0x1c0   : > { %2422 = vmatpush3.bf16.msra.mxu0 %v2421_v15  ;;  %2454 = vmatpush3.bf16.msra.mxu1 %v2453_v27  ;;  %v2137_v27 = vld [vmem:[%s3744_s4] ss:$0 sm:$0xff] }
 0x1c1   : > { %2424 = vmatprep.subr.bf16.mxu0 %v2423_v8  ;;  %2456 = vmatprep.subr.bf16.mxu1 %v2455_v11  ;;  %v2138_v11 = vld [vmem:[%s3746_s6] ss:$0 sm:$0xff] }
 0x1c4   : > { %2426 = vmatpush3.bf16.msra.mxu0 %v2425_v42  ;;  %2458 = vmatpush3.bf16.msra.mxu1 %v2457_v45 }
 0x1c5   : > { %2459 = vmatprep.subr.bf16.mxu0 %v2769_v46 }
 0x27a   : > { %v1622_v29 = vpop.f32.mrb[0].mxu0  ;;  %v1693_v26 = vpop.f32.mrb[0].mxu1 }
 0x27b   : > { %v1623_v63 = vadd.f32 %v1622_v29, %v1500_v2  ;;  %v1694_v59 = vadd.f32 %v1693_v26, %v1508_v19  ;;  %v1624_v28 = vpop.f32.mrb[1].mxu0  ;;  %v1695_v4 = vpop.f32.mrb[1].mxu1 }
 0x27c   : > { %v1625_v6 = vadd.f32 %v1624_v28, %v1504_v16  ;;  %v1696_v52 = vadd.f32 %v1695_v4, %v1512_v56 }
 0x27d   : > { %v1700_v60 = vmax.f32 %v1694_v59, 0.0  ;;  %v1698_v7 = vmax.f32 %v1623_v63, 0.0 }
 0x27e   : > { %v1699_v30 = vmax.f32 %v1625_v6, 0.0  ;;  %v1701_v62 = vmax.f32 %v1696_v52, 0.0 }
 0x280   : > { %1837 = vmatprep.mubr.f32.mxu0 %v1699_v30  ;;  %1907 = vmatprep.mubr.f32.mxu1 %v1701_v62 }
 0x281   : > { %1838 = vmatmul.mubr.f32.vlgmr.msra.gmra.mrb[2].mxu0 %v1698_v7  ;;  %1908 = vmatmul.mubr.f32.vlgmr.msra.gmra.mrb[2].mxu1 %v1700_v60 }
 0x282   : > { %2461 = vmatpush3.bf16.msra.mxu0 %v2460_v12  ;;  %2264 = vmatprep.mubr.msk.f32.mxu0 %vm2770_vm7, %v2771_v36 }
 0x283   : > { %2462 = vmatprep.subr.bf16.mxu0 %v2769_v46 }
 0x286   : > { %2464 = vmatpush3.bf16.msra.mxu0 %v2463_v5 }
 0x287   : > { %2465 = vmatprep.subr.bf16.mxu0 %v2769_v46 }
 0x28a   : > { %2467 = vmatpush3.bf16.msra.mxu0 %v2466_v31 }
 0x28b   : > { %2468 = vmatprep.subr.bf16.mxu0 %v2769_v46 }
 0x28e   : > { %2470 = vmatpush3.bf16.msra.mxu0 %v2469_v50 }
 0x28f   : > { %2471 = vmatprep.subr.bf16.mxu0 %v2769_v46 }
 0x292   : > { %2473 = vmatpush3.bf16.msra.mxu0 %v2472_v25 }
 0x293   : > { %2474 = vmatprep.subr.bf16.mxu0 %v2769_v46 }
 0x296   : > { %2476 = vmatpush3.bf16.msra.mxu0 %v2475_v14 }
 0x297   : > { %2477 = vmatprep.subr.bf16.mxu0 %v2769_v46 }
 0x29a   : > { %2479 = vmatpush3.bf16.msra.mxu0 %v2478_v33 }
 0x29b   : > { %2480 = vmatprep.subr.bf16.mxu0 %v2769_v46 }
 0x29e   : > { %2482 = vmatpush3.bf16.msra.mxu0 %v2481_v51 }
 0x354   : > { %v2177_v15 = vpop.f32.mrb[2].mxu0  ;;  %v2212_v41 = vpop.f32.mrb[2].mxu1 }
 0x355   : > { %v2178_v0 = vpop.f32.mrb[3].mxu0  ;;  %v2213_v3 = vpop.f32.mrb[3].mxu1 }
 0x356   : > { %v2179_v23 = vadd.f32 %v2178_v0, %v2177_v15  ;;  %v2214_v8 = vadd.f32 %v2213_v3, %v2212_v41 }
 0x358   : > { %v1840_v37 = vadd.f32 %v2179_v23, %v2137_v27 }
 0x35a   : > { %v1910_v10 = vadd.f32 %v2214_v8, %v1840_v37 }
 0x35c   : > { %v1913_v35 = vmax.f32 %v1910_v10, 0.0 }
 0x35e   : > { %2265 = vmatmul.mubr.f32.vlgmr.msra.gmra.mrb[4].mxu0 %v1913_v35 }
 0x431   : > { %v2003_v42 = vpop.f32.mrb[4].mxu0 }
 0x432   : > { %v2004_v39 = vadd.f32 %v2138_v11, %v2003_v42  ;;  %v2266_v40 = vpop.f32.mrb[5].mxu0 }
 0x434   : > { %2007 = vst [vmem:[%s341_s23] sm:$0xff] %v2004_v39 }
 0x435   : > { %2696 = shalt.err (!%p2693_p4)
}
 0x436   : > { %s2697_s1 = scalar_lea.hbm %s3696_s8, 128  ;;  %s2701_s11 = scalar_lea.hbm %s3747_s7, 256 }
 0x437   : > { %p2698_p9 = scmp.ne.s32.totalorder %s3696_s8, %s2697_s1  ;;  %p2702_p8 = scmp.lt.u32.totalorder %s3696_s8, %s3747_s7 }
 0x438   : > { %p2703_p13 = scmp.lt.u32.totalorder %s2701_s11, %s2697_s1  ;;  %p2705_p10 = scmp.lt.u32.totalorder %s2697_s1, %s3696_s8 }
 0x439   : > { %p2699_p0 = pnand %p2698_p9, %p2955_p5 }
 0x43a   : > { %p2704_p6 = por %p2703_p13, %p2702_p8 }
 0x43b   : > { %p2700_p11 = pneg %p2699_p0 }
 0x43c   : > { %p2706_p3 = por %p2705_p10, %p2704_p6 }
 0x43e   : > { %p2707_p7 = pnand %p2706_p3, %p2700_p11 }
 0x440   : > { %2710 = shalt.err (!%p2707_p7)
}
 0x441   : > { %2497 = dma.vmem_to_hbm [thread:$0]  (%p2955_p5), %s3698_s10, 128, %s3696_s8, %s2009_s19  }
 0x442 PF: > { %s3789_s22 = sld [smem:[#allocation15_spill]]  ;;  %s2034_s23 = sand.u32 1, %s2745_s24  }
 0x443   : > { %p3791_p2 = scmp.ge.s32.totalorder %s2757_s27, 2  ;;  %s2035_s13 = scalar_lea.sflag [#allocation4], %s2034_s23 }
 0x448   : > { %p3790_p12 = scmp.ne.s32.totalorder %s3789_s22, 0 }
 0x44a   : > { %p2514_p1 = pnand %p3791_p2, %p3790_p12 }
 0x44c   : > { %2740 = dma.done.wait (!%p2514_p1), %s2035_s13, 128  }
 0x44d   : > { %2742 = vsyncadd (!%p2514_p1), %s2035_s13, 4294967168  ;;  %p22_p4 = scmp.ge.s32.totalorder %s2923_s18, 4   ;;  %s3792_s24 = smov %s2749_s25 }
 0x44e   : > { %s3793_s25 = smov %s2753_s26  ;;  %s3794_s26 = smov %s2951_s12 }
 0x44f   : > { %s3795_s27 = smov %s2923_s18  ;;  %24 = sbr.rel (!%p22_p4) target bundleno = 9 (0x9), region = 105 }
 0x456   :  { %2040 = vsyncpa [#allocation3], 1 }
 0x457   :  { %2042 = vsyncpa [#allocation3 + $0x1], 1 }
 0x458   :  { %2043 = vsyncpa [#allocation6], 1 }
 0x459   :  { %2044 = vsyncpa [#allocation9], 1 }
 0x45a   :  { %2045 = vsyncpa [#allocation4], 1 }
 0x45b   :  { %2047 = vsyncpa [#allocation4 + $0x1], 1 }

</bundles_post_ra>
